<compile_context>
chip_gen: v7x
topology: tpu7x:2x2x1
jax: 0.10.0
libtpu: 0.0.40
codegen_flags: <defaults>
</compile_context>

<pallas_src>
import functools
import math

import jax
import jax.numpy as jnp
from jax import lax
from jax.experimental import pallas as pl
from jax.experimental.pallas import tpu as pltpu


_EPS = 1e-5
_NEG = -1e30  # where-select mask fill (no additive-finfo.min overflow hazard)


def _ln(v, g, b, eps=_EPS):
    """Row-wise layernorm in f32 (rsqrt goes to the EUP)."""
    mu = jnp.mean(v, axis=-1, keepdims=True)
    vc = v - mu
    var = jnp.mean(vc * vc, axis=-1, keepdims=True)
    return vc * lax.rsqrt(var + eps) * g + b


def _bf16(x):
    return x.astype(jnp.bfloat16)


# ----------------------------- shared encoder-layer body -----------------------------

def _encoder_layer(x, lw, *, num_heads, seq_len, num_seqs, causal):
    """One HF CLIPEncoderLayer on the batch-folded (num_seqs*seq_len, D) slab.

    lw = (ln1g, ln1b, wqkv, bqkv, wo, bo, ln2g, ln2b, wfc1, bfc1, wfc2, bfc2);
    matmul weights are bf16, biases/LN params f32.  Everything elementwise stays f32.
    """
    (ln1g, ln1b, wqkv, bqkv, wo, bo, ln2g, ln2b, wfc1, bfc1, wfc2, bfc2) = lw
    BS, D = x.shape
    H = num_heads
    hd = D // H

    # --- pre-LN self-attention (CLIP q-scale pre-folded into wqkv / bqkv) ---
    h = _ln(x, ln1g, ln1b)
    qkv = jnp.dot(_bf16(h), wqkv, preferred_element_type=jnp.float32) + bqkv      # (BS, 3D) f32

    # block-diagonal (per-sequence) mask, + causal inside each block; built once per layer
    # with comparisons only (no vector div/mod), applied with a select (no additive mask).
    ri = lax.broadcasted_iota(jnp.int32, (BS, BS), 0)
    ci = lax.broadcasted_iota(jnp.int32, (BS, BS), 1)
    blocks = []
    for s in range(num_seqs):
        rb = (ri >= s * seq_len) & (ri < (s + 1) * seq_len)
        cb = (ci >= s * seq_len) & (ci < (s + 1) * seq_len)
        blocks.append(rb & cb)
    keep = functools.reduce(jnp.logical_or, blocks)
    if causal:
        keep = keep & (ri >= ci)          # same-block rows share the offset, so r>=c suffices

    dn_qk = (((1,), (1,)), ((), ()))      # (BS,hd) x (BS,hd) -> (BS,BS); no explicit k.T
    attn_acc = None
    for hi in range(H):                   # static unroll; heads are cheap lane slices
        q_h = _bf16(qkv[:, hi * hd:(hi + 1) * hd])
        k_h = _bf16(qkv[:, D + hi * hd:D + (hi + 1) * hd])
        v_h = _bf16(qkv[:, 2 * D + hi * hd:2 * D + (hi + 1) * hd])
        s = lax.dot_general(q_h, k_h, dn_qk, preferred_element_type=jnp.float32)  # (BS, BS)
        s = jnp.where(keep, s, _NEG)
        s = s - jnp.max(s, axis=-1, keepdims=True)
        ps = jnp.exp(s)
        ps = ps * pl.reciprocal(jnp.sum(ps, axis=-1, keepdims=True), approx=True)
        o_h = jnp.dot(_bf16(ps), v_h, preferred_element_type=jnp.float32)          # (BS, hd)
        # fold the head concatenate into the out-projection: attn @ wo == sum_h o_h @ wo[h]
        contrib = jnp.dot(_bf16(o_h), wo[hi * hd:(hi + 1) * hd, :],
                          preferred_element_type=jnp.float32)
        attn_acc = contrib if attn_acc is None else attn_acc + contrib
    x = x + attn_acc + bo

    # --- pre-LN MLP (quick_gelu), f32 elementwise ---
    h2 = _ln(x, ln2g, ln2b)
    m = jnp.dot(_bf16(h2), wfc1, preferred_element_type=jnp.float32) + bfc1
    m = m * jax.nn.sigmoid(1.702 * m)
    m = jnp.dot(_bf16(m), wfc2, preferred_element_type=jnp.float32) + bfc2
    return x + m


# ----------------------------- vision tower (ONE pallas_call) -----------------------------

def _vision_tower_kernel(patches_ref, pw_ref, cls_ref, pos_ref, preg_ref, preb_ref,
                         prompts_ref, ppw_ref, ppb_ref,
                         ln1g_ref, ln1b_ref, wqkv_ref, bqkv_ref, wo_ref, bo_ref,
                         ln2g_ref, ln2b_ref, wfc1_ref, bfc1_ref, wfc2_ref, bfc2_ref,
                         out_ref, x_sc,
                         *, num_heads, batch, num_patches, prompt_len, pmt_deep):
    l = pl.program_id(0)
    B, Np, P = batch, num_patches, prompt_len
    S = 1 + P + Np

    # step 0: CLIPVisionEmbeddings + pre_layrnorm, written into the VMEM-resident activation
    # with the prompt slots left for the splice below (in-kernel incorporate_prompt).
    @pl.when(l == 0)
    def _init():
        pe = jnp.dot(_bf16(patches_ref[...]), pw_ref[...],
                     preferred_element_type=jnp.float32)                        # (B*Np, D)
        cls_row = _ln(cls_ref[...] + pos_ref[0:1, :], preg_ref[...], preb_ref[...])   # (1, D)
        pos_p = pos_ref[1:, :]                                                   # (Np, D)
        for b in range(B):
            x_sc[pl.ds(b * S, 1), :] = cls_row
            x_sc[pl.ds(b * S + 1 + P, Np), :] = _ln(pe[b * Np:(b + 1) * Np] + pos_p,
                                                    preg_ref[...], preb_ref[...])

    # every step: project + splice this layer's prompt rows (shallow at l==0, deep[l-1] after);
    # prompt dropout is identity in eval mode.
    proj_p = jnp.dot(_bf16(prompts_ref[0]), ppw_ref[...],
                     preferred_element_type=jnp.float32) + ppb_ref[...]          # (P, D)
    if pmt_deep:
        for b in range(B):
            x_sc[pl.ds(b * S + 1, P), :] = proj_p
    else:
        @pl.when(l == 0)
        def _splice0():
            for b in range(B):
                x_sc[pl.ds(b * S + 1, P), :] = proj_p

    # one fused encoder layer over the whole (B*S, D) slab
    lw = (ln1g_ref[0], ln1b_ref[0], wqkv_ref[0], bqkv_ref[0], wo_ref[0], bo_ref[0],
          ln2g_ref[0], ln2b_ref[0], wfc1_ref[0], bfc1_ref[0], wfc2_ref[0], bfc2_ref[0])
    x = _encoder_layer(x_sc[...], lw, num_heads=num_heads, seq_len=S, num_seqs=B, causal=False)
    x_sc[...] = x

    # last step: pooled CLS rows (post_layernorm + visual_projection live in the head kernel)
    @pl.when(l == pl.num_programs(0) - 1)
    def _pool():
        out_ref[...] = jnp.concatenate([x[b * S:b * S + 1, :] for b in range(B)], axis=0)


def _fixed(shape):
    n = len(shape)
    return pl.BlockSpec(shape, lambda l, n=n: (0,) * n)


def _per_layer(shape):
    n = len(shape)
    return pl.BlockSpec(shape, lambda l, n=n: (l,) + (0,) * (n - 1))


def _layer_specs(D, MLP):
    return [_per_layer((1, 1, D)), _per_layer((1, 1, D)),          # ln1 g, b
            _per_layer((1, D, 3 * D)), _per_layer((1, 1, 3 * D)),  # wqkv, bqkv
            _per_layer((1, D, D)), _per_layer((1, 1, D)),          # wo, bo
            _per_layer((1, 1, D)), _per_layer((1, 1, D)),          # ln2 g, b
            _per_layer((1, D, MLP)), _per_layer((1, 1, MLP)),      # wfc1, bfc1
            _per_layer((1, MLP, D)), _per_layer((1, 1, D))]        # wfc2, bfc2


def _layer_args(lw):
    return [lw["ln1_g"], lw["ln1_b"], lw["wqkv"], lw["bqkv"], lw["wo"], lw["bo"],
            lw["ln2_g"], lw["ln2_b"], lw["wfc1"], lw["bfc1"], lw["wfc2"], lw["bfc2"]]


def vision_tower(patches2d, batch, p, cfg):
    """patches2d: (B*Np, C*ph*pw) pre-unfolded patches.  Returns pooled CLS (B, D)."""
    BNp, PD = patches2d.shape
    B = batch
    Np = BNp // B
    D, P, Lv, MLP = cfg["v_dim"], cfg["prompt_len"], cfg["v_layers"], cfg["v_mlp"]
    pd = p["all_prompts"].shape[-1]
    S = 1 + P + Np

    return pl.pallas_call(
        functools.partial(_vision_tower_kernel, num_heads=cfg["v_heads"], batch=B,
                          num_patches=Np, prompt_len=P, pmt_deep=cfg["pmt_deep"]),
        out_shape=jax.ShapeDtypeStruct((B, D), jnp.float32),
        grid=(Lv,),
        in_specs=[_fixed((BNp, PD)), _fixed((PD, D)), _fixed((1, D)), _fixed((Np + 1, D)),
                  _fixed((1, D)), _fixed((1, D)),
                  _per_layer((1, P, pd)), _fixed((pd, D)), _fixed((1, D))]
                 + _layer_specs(D, MLP),
        out_specs=pl.BlockSpec((B, D), lambda l: (0, 0)),
        scratch_shapes=[pltpu.VMEM((B * S, D), jnp.float32)],
        compiler_params=pltpu.CompilerParams(dimension_semantics=("arbitrary",)),
        # TODO(synk): at real CLIP dims (D=768+, MLP=3072+) raise vmem_limit_bytes and K-tile the
        # MLP matmuls so the per-layer resident weights fit VMEM (esp. v7x's 64 MiB).
    )(patches2d, p["v_patch_w"], p["v_class_emb"], p["v_pos_emb"],
      p["v_pre_ln_g"], p["v_pre_ln_b"],
      p["all_prompts"], p["prompt_proj_w"], p["prompt_proj_b"],
      *_layer_args(p["v_layers"]))


# ----------------------------- text tower (ONE pallas_call) -----------------------------

def _text_tower_kernel(x_ref, pool_ref,
                       ln1g_ref, ln1b_ref, wqkv_ref, bqkv_ref, wo_ref, bo_ref,
                       ln2g_ref, ln2b_ref, wfc1_ref, bfc1_ref, wfc2_ref, bfc2_ref,
                       out_ref, x_sc, *, num_heads, seq_len, num_seqs):
    l = pl.program_id(0)

    @pl.when(l == 0)
    def _init():
        x_sc[...] = x_ref[...]

    lw = (ln1g_ref[0], ln1b_ref[0], wqkv_ref[0], bqkv_ref[0], wo_ref[0], bo_ref[0],
          ln2g_ref[0], ln2b_ref[0], wfc1_ref[0], bfc1_ref[0], wfc2_ref[0], bfc2_ref[0])
    x = _encoder_layer(x_sc[...], lw, num_heads=num_heads, seq_len=seq_len,
                       num_seqs=num_seqs, causal=True)
    x_sc[...] = x

    @pl.when(l == pl.num_programs(0) - 1)
    def _pool():
        # EOT pooling as a one-hot matmul; final_layer_norm is row-wise and applied in the head.
        out_ref[...] = jnp.dot(pool_ref[...], x, preferred_element_type=jnp.float32)


def text_tower(x_emb2d, pool, num_seqs, p, cfg):
    CL, D = x_emb2d.shape
    L = cfg["t_len"]
    Lt, MLP = cfg["t_layers"], cfg["t_mlp"]
    C = num_seqs
    return pl.pallas_call(
        functools.partial(_text_tower_kernel, num_heads=cfg["t_heads"], seq_len=L, num_seqs=C),
        out_shape=jax.ShapeDtypeStruct((C, D), jnp.float32),
        grid=(Lt,),
        in_specs=[_fixed((CL, D)), _fixed((C, CL))] + _layer_specs(D, MLP),
        out_specs=pl.BlockSpec((C, D), lambda l: (0, 0)),
        scratch_shapes=[pltpu.VMEM((CL, D), jnp.float32)],
        compiler_params=pltpu.CompilerParams(dimension_semantics=("arbitrary",)),
    )(x_emb2d, pool, *_layer_args(p["t_layers"]))


# ----------------------------- CLIP head -----------------------------

def _head_kernel(img_ref, vg_ref, vb_ref, vproj_ref,
                 txt_ref, tg_ref, tb_ref, tproj_ref, s_ref, o_ref):
    iv = jnp.dot(_bf16(_ln(img_ref[...], vg_ref[...], vb_ref[...])), vproj_ref[...],
                 preferred_element_type=jnp.float32)
    tv = jnp.dot(_bf16(_ln(txt_ref[...], tg_ref[...], tb_ref[...])), tproj_ref[...],
                 preferred_element_type=jnp.float32)
    iv = iv * lax.rsqrt(jnp.sum(iv * iv, axis=-1, keepdims=True) + 1e-12)
    tv = tv * lax.rsqrt(jnp.sum(tv * tv, axis=-1, keepdims=True) + 1e-12)
    scale = jnp.exp(s_ref[0, 0])
    logits = lax.dot_general(iv, tv, (((1,), (1,)), ((), ())),
                             preferred_element_type=jnp.float32)        # (B, C), no explicit .T
    o_ref[...] = (scale * logits).astype(o_ref.dtype)


def clip_head(img_pooled, txt_pooled, p):
    B, Dv = img_pooled.shape
    C, Dt = txt_pooled.shape
    E = p["visual_proj_w"].shape[1]
    return pl.pallas_call(
        _head_kernel,
        out_shape=jax.ShapeDtypeStruct((B, C), jnp.float32),
        grid=(1,),
        in_specs=[_fixed((B, Dv)), _fixed((1, Dv)), _fixed((1, Dv)), _fixed((Dv, E)),
                  _fixed((C, Dt)), _fixed((1, Dt)), _fixed((1, Dt)), _fixed((Dt, E)),
                  _fixed((1, 1))],
        out_specs=pl.BlockSpec((B, C), lambda l: (0, 0)),
    )(img_pooled, p["v_post_ln_g"], p["v_post_ln_b"], p["visual_proj_w"],
      txt_pooled, p["t_final_ln_g"], p["t_final_ln_b"], p["text_proj_w"],
      p["logit_scale"])


# ----------------------------- params / forward glue -----------------------------

CFG = dict(
    image_size=32, patch=16, channels=3,
    v_dim=32, v_heads=2, v_layers=2, v_mlp=128,
    prompt_len=4, pmt_deep=True,
    vocab=64, t_len=8, t_dim=32, t_heads=2, t_layers=2, t_mlp=128,
    proj_dim=32, num_classes=3,
)


def _stacked_layer_params(key, L, d, mlp, num_heads, s=0.02):
    """Per-layer encoder weights stacked on a leading layer axis; MXU weights stored bf16."""
    hd = d // num_heads
    scale = hd ** -0.5
    ks = jax.random.split(key, 6 * L)

    def w(i, shape):
        return s * jax.random.normal(ks[i], shape, jnp.float32)

    wq = jnp.stack([w(6 * i + 0, (d, d)) for i in range(L)])
    wk = jnp.stack([w(6 * i + 1, (d, d)) for i in range(L)])
    wv = jnp.stack([w(6 * i + 2, (d, d)) for i in range(L)])
    return dict(
        ln1_g=jnp.ones((L, 1, d), jnp.float32), ln1_b=jnp.zeros((L, 1, d), jnp.float32),
        # fused QKV with the CLIP q-scale (hd**-0.5) folded into the q slice
        wqkv=jnp.concatenate([wq * scale, wk, wv], axis=2).astype(jnp.bfloat16),
        bqkv=jnp.zeros((L, 1, 3 * d), jnp.float32),
        wo=jnp.stack([w(6 * i + 3, (d, d)) for i in range(L)]).astype(jnp.bfloat16),
        bo=jnp.zeros((L, 1, d), jnp.float32),
        ln2_g=jnp.ones((L, 1, d), jnp.float32), ln2_b=jnp.zeros((L, 1, d), jnp.float32),
        wfc1=jnp.stack([w(6 * i + 4, (d, mlp)) for i in range(L)]).astype(jnp.bfloat16),
        bfc1=jnp.zeros((L, 1, mlp), jnp.float32),
        wfc2=jnp.stack([w(6 * i + 5, (mlp, d)) for i in range(L)]).astype(jnp.bfloat16),
        bfc2=jnp.zeros((L, 1, d), jnp.float32),
    )


def init_params(cfg, key):
    ks = iter(jax.random.split(key, 16))
    s = 0.02
    patch_dim = cfg["channels"] * cfg["patch"] ** 2
    num_patches = (cfg["image_size"] // cfg["patch"]) ** 2
    D, Lv, P = cfg["v_dim"], cfg["v_layers"], cfg["prompt_len"]
    pd = D // 2                                           # prompt_dim = hidden_size / 2
    val = math.sqrt(6.0 / float(3 * 16 * 16 + pd))        # VPT uniform init bound
    shallow = jax.random.uniform(next(ks), (1, P, pd), jnp.float32, minval=-val, maxval=val)
    deep = jax.random.uniform(next(ks), (Lv - 1, P, pd), jnp.float32, minval=-val, maxval=val)
    all_prompts = (jnp.concatenate([shallow, deep], axis=0) if cfg["pmt_deep"]
                   else jnp.broadcast_to(shallow, (Lv, P, pd)))
    return dict(
        v_patch_w=(s * jax.random.normal(next(ks), (patch_dim, D), jnp.float32)
                   ).astype(jnp.bfloat16),
        v_class_emb=s * jax.random.normal(next(ks), (1, D), jnp.float32),
        v_pos_emb=s * jax.random.normal(next(ks), (num_patches + 1, D), jnp.float32),
        v_pre_ln_g=jnp.ones((1, D), jnp.float32), v_pre_ln_b=jnp.zeros((1, D), jnp.float32),
        all_prompts=all_prompts,
        prompt_proj_w=(s * jax.random.normal(next(ks), (pd, D), jnp.float32)
                       ).astype(jnp.bfloat16),
        prompt_proj_b=jnp.zeros((1, D), jnp.float32),
        v_layers=_stacked_layer_params(next(ks), Lv, D, cfg["v_mlp"], cfg["v_heads"]),
        v_post_ln_g=jnp.ones((1, D), jnp.float32), v_post_ln_b=jnp.zeros((1, D), jnp.float32),
        visual_proj_w=(s * jax.random.normal(next(ks), (D, cfg["proj_dim"]), jnp.float32)
                       ).astype(jnp.bfloat16),
        t_tok_emb=s * jax.random.normal(next(ks), (cfg["vocab"], cfg["t_dim"]), jnp.float32),
        t_pos_emb=s * jax.random.normal(next(ks), (cfg["t_len"], cfg["t_dim"]), jnp.float32),
        t_layers=_stacked_layer_params(next(ks), cfg["t_layers"], cfg["t_dim"],
                                       cfg["t_mlp"], cfg["t_heads"]),
        t_final_ln_g=jnp.ones((1, cfg["t_dim"]), jnp.float32),
        t_final_ln_b=jnp.zeros((1, cfg["t_dim"]), jnp.float32),
        text_proj_w=(s * jax.random.normal(next(ks), (cfg["t_dim"], cfg["proj_dim"]),
                                           jnp.float32)).astype(jnp.bfloat16),
        logit_scale=jnp.full((1, 1), math.log(1.0 / 0.07), jnp.float32),
    )


def custom_clip_forward(cfg, p, image, text_ids):
    # ---- vision: NCHW image -> non-overlapping patches (XLA glue for the strided conv unfold)
    B, C, H, W = image.shape
    ph = cfg["patch"]
    gh, gw = H // ph, W // ph
    patches = image.reshape(B, C, gh, ph, gw, ph).transpose(0, 2, 4, 1, 3, 5)
    patches2d = patches.reshape(B * gh * gw, C * ph * ph)
    img_pooled = vision_tower(patches2d, B, p, cfg)                # (B, Dv) pooled CLS

    # ---- text: token-embedding gather + pos emb (XLA glue); EOT pooling matrix for the kernel
    # TODO(synk): HF tokenizer / prompt templating has no Pallas equivalent; ids are synthetic.
    Cn, L = text_ids.shape
    x_emb = p["t_tok_emb"][text_ids] + p["t_pos_emb"][None, :L]
    eot = jnp.argmax(text_ids, axis=-1)                            # CLIP pools at the EOT token
    pool = jax.nn.one_hot(jnp.arange(Cn) * L + eot, Cn * L, dtype=jnp.float32)
    txt_pooled = text_tower(x_emb.reshape(Cn * L, -1), pool, Cn, p, cfg)   # (Cn, Dt)

    # post-LN / final-LN, projections, L2 norm, exp(logit_scale) and the logit matmul fused.
    logits_img = clip_head(img_pooled, txt_pooled, p)
    return logits_img, logits_img.T


# ----------------------------- main -----------------------------

if __name__ == "__main__":
    cfg = CFG
    key = jax.random.PRNGKey(0)
    kp, ki = jax.random.split(key)
    params = init_params(cfg, kp)

    image = jax.random.normal(
        ki, (2, cfg["channels"], cfg["image_size"], cfg["image_size"]), jnp.float32)

    Cn, L = cfg["num_classes"], cfg["t_len"]
    base = (jnp.arange(Cn)[:, None] * 7 + jnp.arange(L)[None, :] * 3) % (cfg["vocab"] - 1)
    eos_pos = jnp.array([L - 1, L - 2, L - 3])
    text_ids = base.at[jnp.arange(Cn), eos_pos].set(cfg["vocab"] - 1).astype(jnp.int32)

    fwd = jax.jit(functools.partial(custom_clip_forward, cfg))
    logits_img, logits_text = fwd(params, image, text_ids)
    jax.block_until_ready((logits_img, logits_text))

    assert logits_img.shape == (2, Cn)
    assert logits_text.shape == (Cn, 2)
    assert bool(jnp.all(jnp.isfinite(logits_img)))
    print("KERNEL_OK")
</pallas_src>

<mosaic_0001>
module attributes {stable_mosaic.version = 11 : i64} {
  func.func @_vision_tower_kernel(%arg0: i32, %arg1: memref<8x768xf32, #tpu.memory_space<vmem>>, %arg2: memref<768x32xbf16, #tpu.memory_space<vmem>>, %arg3: memref<1x32xf32, #tpu.memory_space<vmem>>, %arg4: memref<5x32xf32, #tpu.memory_space<vmem>>, %arg5: memref<1x32xf32, #tpu.memory_space<vmem>>, %arg6: memref<1x32xf32, #tpu.memory_space<vmem>>, %arg7: memref<1x4x16xf32, #tpu.memory_space<vmem>>, %arg8: memref<16x32xbf16, #tpu.memory_space<vmem>>, %arg9: memref<1x32xf32, #tpu.memory_space<vmem>>, %arg10: memref<1x1x32xf32, #tpu.memory_space<vmem>>, %arg11: memref<1x1x32xf32, #tpu.memory_space<vmem>>, %arg12: memref<1x32x96xbf16, #tpu.memory_space<vmem>>, %arg13: memref<1x1x96xf32, #tpu.memory_space<vmem>>, %arg14: memref<1x32x32xbf16, #tpu.memory_space<vmem>>, %arg15: memref<1x1x32xf32, #tpu.memory_space<vmem>>, %arg16: memref<1x1x32xf32, #tpu.memory_space<vmem>>, %arg17: memref<1x1x32xf32, #tpu.memory_space<vmem>>, %arg18: memref<1x32x128xbf16, #tpu.memory_space<vmem>>, %arg19: memref<1x1x128xf32, #tpu.memory_space<vmem>>, %arg20: memref<1x128x32xbf16, #tpu.memory_space<vmem>>, %arg21: memref<1x1x32xf32, #tpu.memory_space<vmem>>, %arg22: memref<2x32xf32, #tpu.memory_space<vmem>>, %arg23: memref<18x32xf32, #tpu.memory_space<vmem>>) attributes {dimension_semantics = [#tpu.dimension_semantics<arbitrary>], iteration_bounds = array<i64: 2>, scalar_prefetch = 0 : i64, scratch_operands = 1 : i64, tpu.core_type = #tpu.core_type<tc>, window_params = [{pipeline_mode = #tpu.pipeline_mode<synchronous>, transform_indices = @transform_0, window_bounds = array<i64: 8, 768>}, {pipeline_mode = #tpu.pipeline_mode<synchronous>, transform_indices = @transform_1, window_bounds = array<i64: 768, 32>}, {pipeline_mode = #tpu.pipeline_mode<synchronous>, transform_indices = @transform_2, window_bounds = array<i64: 1, 32>}, {pipeline_mode = #tpu.pipeline_mode<synchronous>, transform_indices = @transform_3, window_bounds = array<i64: 5, 32>}, {pipeline_mode = #tpu.pipeline_mode<synchronous>, transform_indices = @transform_4, window_bounds = array<i64: 1, 32>}, {pipeline_mode = #tpu.pipeline_mode<synchronous>, transform_indices = @transform_5, window_bounds = array<i64: 1, 32>}, {transform_indices = @transform_6, window_bounds = array<i64: 1, 4, 16>}, {pipeline_mode = #tpu.pipeline_mode<synchronous>, transform_indices = @transform_7, window_bounds = array<i64: 16, 32>}, {pipeline_mode = #tpu.pipeline_mode<synchronous>, transform_indices = @transform_8, window_bounds = array<i64: 1, 32>}, {transform_indices = @transform_9, window_bounds = array<i64: 1, 1, 32>}, {transform_indices = @transform_10, window_bounds = array<i64: 1, 1, 32>}, {transform_indices = @transform_11, window_bounds = array<i64: 1, 32, 96>}, {transform_indices = @transform_12, window_bounds = array<i64: 1, 1, 96>}, {transform_indices = @transform_13, window_bounds = array<i64: 1, 32, 32>}, {transform_indices = @transform_14, window_bounds = array<i64: 1, 1, 32>}, {transform_indices = @transform_15, window_bounds = array<i64: 1, 1, 32>}, {transform_indices = @transform_16, window_bounds = array<i64: 1, 1, 32>}, {transform_indices = @transform_17, window_bounds = array<i64: 1, 32, 128>}, {transform_indices = @transform_18, window_bounds = array<i64: 1, 1, 128>}, {transform_indices = @transform_19, window_bounds = array<i64: 1, 128, 32>}, {transform_indices = @transform_20, window_bounds = array<i64: 1, 1, 32>}, {pipeline_mode = #tpu.pipeline_mode<synchronous>, transform_indices = @transform_21, window_bounds = array<i64: 2, 32>}]} {
    %c0_i32 = arith.constant 0 : i32
    %0 = arith.cmpi eq, %arg0, %c0_i32 : i32
    %1 = arith.extui %0 : i1 to i32
    %c0_i32_0 = arith.constant 0 : i32
    %2 = arith.cmpi ne, %1, %c0_i32_0 : i32
    scf.if %2 {
      %c0_83 = arith.constant 0 : index
      %c0_84 = arith.constant 0 : index
      %180 = vector.load %arg1[%c0_83, %c0_84] : memref<8x768xf32, #tpu.memory_space<vmem>>, vector<8x768xf32>
      %181 = arith.truncf %180 : vector<8x768xf32> to vector<8x768xbf16>
      %c0_85 = arith.constant 0 : index
      %c0_86 = arith.constant 0 : index
      %182 = vector.load %arg2[%c0_85, %c0_86] : memref<768x32xbf16, #tpu.memory_space<vmem>>, vector<768x32xbf16>
      %cst_87 = arith.constant dense<0.000000e+00> : vector<8x32xf32>
      %183 = tpu.matmul %181, %182, %cst_87 {dimension_numbers = #tpu.dot_dimension_numbers<[1], [0], [0], [1], [0, 0, 1, 1], [], []>} : vector<8x768xbf16>, vector<768x32xbf16>, vector<8x32xf32> -> vector<8x32xf32>
      %c0_88 = arith.constant 0 : index
      %c0_89 = arith.constant 0 : index
      %184 = vector.load %arg3[%c0_88, %c0_89] : memref<1x32xf32, #tpu.memory_space<vmem>>, vector<1x32xf32>
      %c0_90 = arith.constant 0 : index
      %c0_91 = arith.constant 0 : index
      %185 = vector.load %arg4[%c0_90, %c0_91] : memref<5x32xf32, #tpu.memory_space<vmem>>, vector<1x32xf32>
      %186 = arith.addf %184, %185 : vector<1x32xf32>
      %c0_92 = arith.constant 0 : index
      %c0_93 = arith.constant 0 : index
      %187 = vector.load %arg5[%c0_92, %c0_93] : memref<1x32xf32, #tpu.memory_space<vmem>>, vector<1x32xf32>
      %c0_94 = arith.constant 0 : index
      %c0_95 = arith.constant 0 : index
      %188 = vector.load %arg6[%c0_94, %c0_95] : memref<1x32xf32, #tpu.memory_space<vmem>>, vector<1x32xf32>
      %cst_96 = arith.constant dense<0.000000e+00> : vector<1xf32>
      %189 = vector.multi_reduction <add>, %186, %cst_96 [1] : vector<1x32xf32> to vector<1xf32>
      %190 = vector.shape_cast %189 : vector<1xf32> to vector<1x1xf32>
      %cst_97 = arith.constant 3.200000e+01 : f32
      %191 = vector.broadcast %cst_97 : f32 to vector<1x1xf32>
      %192 = arith.divf %190, %191 : vector<1x1xf32>
      %193 = vector.broadcast %192 : vector<1x1xf32> to vector<1x32xf32>
      %194 = arith.subf %186, %193 : vector<1x32xf32>
      %195 = arith.mulf %194, %194 : vector<1x32xf32>
      %cst_98 = arith.constant dense<0.000000e+00> : vector<1xf32>
      %196 = vector.multi_reduction <add>, %195, %cst_98 [1] : vector<1x32xf32> to vector<1xf32>
      %197 = vector.shape_cast %196 : vector<1xf32> to vector<1x1xf32>
      %cst_99 = arith.constant 3.200000e+01 : f32
      %198 = vector.broadcast %cst_99 : f32 to vector<1x1xf32>
      %199 = arith.divf %197, %198 : vector<1x1xf32>
      %cst_100 = arith.constant 9.99999974E-6 : f32
      %200 = vector.broadcast %cst_100 : f32 to vector<1x1xf32>
      %201 = arith.addf %199, %200 : vector<1x1xf32>
      %202 = math.rsqrt %201 : vector<1x1xf32>
      %203 = vector.broadcast %202 : vector<1x1xf32> to vector<1x32xf32>
      %204 = arith.mulf %194, %203 : vector<1x32xf32>
      %205 = arith.mulf %204, %187 : vector<1x32xf32>
      %206 = arith.addf %205, %188 : vector<1x32xf32>
      %c1_101 = arith.constant 1 : index
      %c0_102 = arith.constant 0 : index
      %207 = vector.load %arg4[%c1_101, %c0_102] : memref<5x32xf32, #tpu.memory_space<vmem>>, vector<4x32xf32>
      %c0_103 = arith.constant 0 : index
      %c0_104 = arith.constant 0 : index
      %208 = vector.load %arg23[%c0_103, %c0_104] : memref<18x32xf32, #tpu.memory_space<vmem>>, vector<1x32xf32>
      tpu.vector_store %arg23[%c0_103, %c0_104], %206 {strides = array<i32>} : memref<18x32xf32, #tpu.memory_space<vmem>>, vector<1x32xf32>,
      %209 = vector.extract_strided_slice %183 {offsets = [0, 0], sizes = [4, 32], strides = [1, 1]} : vector<8x32xf32> to vector<4x32xf32>
      %210 = arith.addf %209, %207 : vector<4x32xf32>
      %c0_105 = arith.constant 0 : index
      %c0_106 = arith.constant 0 : index
      %211 = vector.load %arg5[%c0_105, %c0_106] : memref<1x32xf32, #tpu.memory_space<vmem>>, vector<1x32xf32>
      %c0_107 = arith.constant 0 : index
      %c0_108 = arith.constant 0 : index
      %212 = vector.load %arg6[%c0_107, %c0_108] : memref<1x32xf32, #tpu.memory_space<vmem>>, vector<1x32xf32>
      %cst_109 = arith.constant dense<0.000000e+00> : vector<4xf32>
      %213 = vector.multi_reduction <add>, %210, %cst_109 [1] : vector<4x32xf32> to vector<4xf32>
      %214 = vector.shape_cast %213 : vector<4xf32> to vector<4x1xf32>
      %cst_110 = arith.constant 3.200000e+01 : f32
      %215 = vector.broadcast %cst_110 : f32 to vector<4x1xf32>
      %216 = arith.divf %214, %215 : vector<4x1xf32>
      %217 = vector.broadcast %216 : vector<4x1xf32> to vector<4x32xf32>
      %218 = arith.subf %210, %217 : vector<4x32xf32>
      %219 = arith.mulf %218, %218 : vector<4x32xf32>
      %cst_111 = arith.constant dense<0.000000e+00> : vector<4xf32>
      %220 = vector.multi_reduction <add>, %219, %cst_111 [1] : vector<4x32xf32> to vector<4xf32>
      %221 = vector.shape_cast %220 : vector<4xf32> to vector<4x1xf32>
      %cst_112 = arith.constant 3.200000e+01 : f32
      %222 = vector.broadcast %cst_112 : f32 to vector<4x1xf32>
      %223 = arith.divf %221, %222 : vector<4x1xf32>
      %cst_113 = arith.constant 9.99999974E-6 : f32
      %224 = vector.broadcast %cst_113 : f32 to vector<4x1xf32>
      %225 = arith.addf %223, %224 : vector<4x1xf32>
      %226 = math.rsqrt %225 : vector<4x1xf32>
      %227 = vector.broadcast %226 : vector<4x1xf32> to vector<4x32xf32>
      %228 = arith.mulf %218, %227 : vector<4x32xf32>
      %229 = vector.broadcast %211 : vector<1x32xf32> to vector<4x32xf32>
      %230 = arith.mulf %228, %229 : vector<4x32xf32>
      %231 = vector.broadcast %212 : vector<1x32xf32> to vector<4x32xf32>
      %232 = arith.addf %230, %231 : vector<4x32xf32>
      %c5 = arith.constant 5 : index
      %c0_114 = arith.constant 0 : index
      %233 = vector.load %arg23[%c5, %c0_114] : memref<18x32xf32, #tpu.memory_space<vmem>>, vector<4x32xf32>
      tpu.vector_store %arg23[%c5, %c0_114], %232 {strides = array<i32>} : memref<18x32xf32, #tpu.memory_space<vmem>>, vector<4x32xf32>,
      %c9 = arith.constant 9 : index
      %c0_115 = arith.constant 0 : index
      %234 = vector.load %arg23[%c9, %c0_115] : memref<18x32xf32, #tpu.memory_space<vmem>>, vector<1x32xf32>
      tpu.vector_store %arg23[%c9, %c0_115], %206 {strides = array<i32>} : memref<18x32xf32, #tpu.memory_space<vmem>>, vector<1x32xf32>,
      %235 = vector.extract_strided_slice %183 {offsets = [4, 0], sizes = [4, 32], strides = [1, 1]} : vector<8x32xf32> to vector<4x32xf32>
      %236 = arith.addf %235, %207 : vector<4x32xf32>
      %c0_116 = arith.constant 0 : index
      %c0_117 = arith.constant 0 : index
      %237 = vector.load %arg5[%c0_116, %c0_117] : memref<1x32xf32, #tpu.memory_space<vmem>>, vector<1x32xf32>
      %c0_118 = arith.constant 0 : index
      %c0_119 = arith.constant 0 : index
      %238 = vector.load %arg6[%c0_118, %c0_119] : memref<1x32xf32, #tpu.memory_space<vmem>>, vector<1x32xf32>
      %cst_120 = arith.constant dense<0.000000e+00> : vector<4xf32>
      %239 = vector.multi_reduction <add>, %236, %cst_120 [1] : vector<4x32xf32> to vector<4xf32>
      %240 = vector.shape_cast %239 : vector<4xf32> to vector<4x1xf32>
      %cst_121 = arith.constant 3.200000e+01 : f32
      %241 = vector.broadcast %cst_121 : f32 to vector<4x1xf32>
      %242 = arith.divf %240, %241 : vector<4x1xf32>
      %243 = vector.broadcast %242 : vector<4x1xf32> to vector<4x32xf32>
      %244 = arith.subf %236, %243 : vector<4x32xf32>
      %245 = arith.mulf %244, %244 : vector<4x32xf32>
      %cst_122 = arith.constant dense<0.000000e+00> : vector<4xf32>
      %246 = vector.multi_reduction <add>, %245, %cst_122 [1] : vector<4x32xf32> to vector<4xf32>
      %247 = vector.shape_cast %246 : vector<4xf32> to vector<4x1xf32>
      %cst_123 = arith.constant 3.200000e+01 : f32
      %248 = vector.broadcast %cst_123 : f32 to vector<4x1xf32>
      %249 = arith.divf %247, %248 : vector<4x1xf32>
      %cst_124 = arith.constant 9.99999974E-6 : f32
      %250 = vector.broadcast %cst_124 : f32 to vector<4x1xf32>
      %251 = arith.addf %249, %250 : vector<4x1xf32>
      %252 = math.rsqrt %251 : vector<4x1xf32>
      %253 = vector.broadcast %252 : vector<4x1xf32> to vector<4x32xf32>
      %254 = arith.mulf %244, %253 : vector<4x32xf32>
      %255 = vector.broadcast %237 : vector<1x32xf32> to vector<4x32xf32>
      %256 = arith.mulf %254, %255 : vector<4x32xf32>
      %257 = vector.broadcast %238 : vector<1x32xf32> to vector<4x32xf32>
      %258 = arith.addf %256, %257 : vector<4x32xf32>
      %c14 = arith.constant 14 : index
      %c0_125 = arith.constant 0 : index
      %259 = vector.load %arg23[%c14, %c0_125] : memref<18x32xf32, #tpu.memory_space<vmem>>, vector<4x32xf32>
      tpu.vector_store %arg23[%c14, %c0_125], %258 {strides = array<i32>} : memref<18x32xf32, #tpu.memory_space<vmem>>, vector<4x32xf32>,
    } else {
    }
    %c0 = arith.constant 0 : index
    %c0_1 = arith.constant 0 : index
    %c0_2 = arith.constant 0 : index
    %3 = vector.load %arg7[%c0, %c0_1, %c0_2] : memref<1x4x16xf32, #tpu.memory_space<vmem>>, vector<1x4x16xf32>
    %4 = vector.shape_cast %3 : vector<1x4x16xf32> to vector<4x16xf32>
    %5 = arith.truncf %4 : vector<4x16xf32> to vector<4x16xbf16>
    %c0_3 = arith.constant 0 : index
    %c0_4 = arith.constant 0 : index
    %6 = vector.load %arg8[%c0_3, %c0_4] : memref<16x32xbf16, #tpu.memory_space<vmem>>, vector<16x32xbf16>
    %cst = arith.constant dense<0.000000e+00> : vector<4x32xf32>
    %7 = tpu.matmul %5, %6, %cst {dimension_numbers = #tpu.dot_dimension_numbers<[1], [0], [0], [1], [0, 0, 1, 1], [], []>} : vector<4x16xbf16>, vector<16x32xbf16>, vector<4x32xf32> -> vector<4x32xf32>
    %c0_5 = arith.constant 0 : index
    %c0_6 = arith.constant 0 : index
    %8 = vector.load %arg9[%c0_5, %c0_6] : memref<1x32xf32, #tpu.memory_space<vmem>>, vector<1x32xf32>
    %9 = vector.broadcast %8 : vector<1x32xf32> to vector<4x32xf32>
    %10 = arith.addf %7, %9 : vector<4x32xf32>
    %c1 = arith.constant 1 : index
    %c0_7 = arith.constant 0 : index
    %11 = vector.load %arg23[%c1, %c0_7] : memref<18x32xf32, #tpu.memory_space<vmem>>, vector<4x32xf32>
    tpu.vector_store %arg23[%c1, %c0_7], %10 {strides = array<i32>} : memref<18x32xf32, #tpu.memory_space<vmem>>, vector<4x32xf32>,
    %c10 = arith.constant 10 : index
    %c0_8 = arith.constant 0 : index
    %12 = vector.load %arg23[%c10, %c0_8] : memref<18x32xf32, #tpu.memory_space<vmem>>, vector<4x32xf32>
    tpu.vector_store %arg23[%c10, %c0_8], %10 {strides = array<i32>} : memref<18x32xf32, #tpu.memory_space<vmem>>, vector<4x32xf32>,
    %c0_9 = arith.constant 0 : index
    %c0_10 = arith.constant 0 : index
    %c0_11 = arith.constant 0 : index
    %13 = vector.load %arg10[%c0_9, %c0_10, %c0_11] : memref<1x1x32xf32, #tpu.memory_space<vmem>>, vector<1x1x32xf32>
    %14 = vector.shape_cast %13 : vector<1x1x32xf32> to vector<1x32xf32>
    %c0_12 = arith.constant 0 : index
    %c0_13 = arith.constant 0 : index
    %c0_14 = arith.constant 0 : index
    %15 = vector.load %arg11[%c0_12, %c0_13, %c0_14] : memref<1x1x32xf32, #tpu.memory_space<vmem>>, vector<1x1x32xf32>
    %16 = vector.shape_cast %15 : vector<1x1x32xf32> to vector<1x32xf32>
    %c0_15 = arith.constant 0 : index
    %c0_16 = arith.constant 0 : index
    %c0_17 = arith.constant 0 : index
    %17 = vector.load %arg12[%c0_15, %c0_16, %c0_17] : memref<1x32x96xbf16, #tpu.memory_space<vmem>>, vector<1x32x96xbf16>
    %18 = vector.shape_cast %17 : vector<1x32x96xbf16> to vector<32x96xbf16>
    %c0_18 = arith.constant 0 : index
    %c0_19 = arith.constant 0 : index
    %c0_20 = arith.constant 0 : index
    %19 = vector.load %arg13[%c0_18, %c0_19, %c0_20] : memref<1x1x96xf32, #tpu.memory_space<vmem>>, vector<1x1x96xf32>
    %20 = vector.shape_cast %19 : vector<1x1x96xf32> to vector<1x96xf32>
    %c0_21 = arith.constant 0 : index
    %c0_22 = arith.constant 0 : index
    %c0_23 = arith.constant 0 : index
    %21 = vector.load %arg14[%c0_21, %c0_22, %c0_23] : memref<1x32x32xbf16, #tpu.memory_space<vmem>>, vector<1x32x32xbf16>
    %22 = vector.shape_cast %21 : vector<1x32x32xbf16> to vector<32x32xbf16>
    %c0_24 = arith.constant 0 : index
    %c0_25 = arith.constant 0 : index
    %c0_26 = arith.constant 0 : index
    %23 = vector.load %arg15[%c0_24, %c0_25, %c0_26] : memref<1x1x32xf32, #tpu.memory_space<vmem>>, vector<1x1x32xf32>
    %24 = vector.shape_cast %23 : vector<1x1x32xf32> to vector<1x32xf32>
    %c0_27 = arith.constant 0 : index
    %c0_28 = arith.constant 0 : index
    %c0_29 = arith.constant 0 : index
    %25 = vector.load %arg16[%c0_27, %c0_28, %c0_29] : memref<1x1x32xf32, #tpu.memory_space<vmem>>, vector<1x1x32xf32>
    %26 = vector.shape_cast %25 : vector<1x1x32xf32> to vector<1x32xf32>
    %c0_30 = arith.constant 0 : index
    %c0_31 = arith.constant 0 : index
    %c0_32 = arith.constant 0 : index
    %27 = vector.load %arg17[%c0_30, %c0_31, %c0_32] : memref<1x1x32xf32, #tpu.memory_space<vmem>>, vector<1x1x32xf32>
    %28 = vector.shape_cast %27 : vector<1x1x32xf32> to vector<1x32xf32>
    %c0_33 = arith.constant 0 : index
    %c0_34 = arith.constant 0 : index
    %c0_35 = arith.constant 0 : index
    %29 = vector.load %arg18[%c0_33, %c0_34, %c0_35] : memref<1x32x128xbf16, #tpu.memory_space<vmem>>, vector<1x32x128xbf16>
    %30 = vector.shape_cast %29 : vector<1x32x128xbf16> to vector<32x128xbf16>
    %c0_36 = arith.constant 0 : index
    %c0_37 = arith.constant 0 : index
    %c0_38 = arith.constant 0 : index
    %31 = vector.load %arg19[%c0_36, %c0_37, %c0_38] : memref<1x1x128xf32, #tpu.memory_space<vmem>>, vector<1x1x128xf32>
    %32 = vector.shape_cast %31 : vector<1x1x128xf32> to vector<1x128xf32>
    %c0_39 = arith.constant 0 : index
    %c0_40 = arith.constant 0 : index
    %c0_41 = arith.constant 0 : index
    %33 = vector.load %arg20[%c0_39, %c0_40, %c0_41] : memref<1x128x32xbf16, #tpu.memory_space<vmem>>, vector<1x128x32xbf16>
    %34 = vector.shape_cast %33 : vector<1x128x32xbf16> to vector<128x32xbf16>
    %c0_42 = arith.constant 0 : index
    %c0_43 = arith.constant 0 : index
    %c0_44 = arith.constant 0 : index
    %35 = vector.load %arg21[%c0_42, %c0_43, %c0_44] : memref<1x1x32xf32, #tpu.memory_space<vmem>>, vector<1x1x32xf32>
    %36 = vector.shape_cast %35 : vector<1x1x32xf32> to vector<1x32xf32>
    %c0_45 = arith.constant 0 : index
    %c0_46 = arith.constant 0 : index
    %37 = vector.load %arg23[%c0_45, %c0_46] : memref<18x32xf32, #tpu.memory_space<vmem>>, vector<18x32xf32>
    %cst_47 = arith.constant dense<0.000000e+00> : vector<18xf32>
    %38 = vector.multi_reduction <add>, %37, %cst_47 [1] : vector<18x32xf32> to vector<18xf32>
    %39 = vector.shape_cast %38 : vector<18xf32> to vector<18x1xf32>
    %cst_48 = arith.constant 3.200000e+01 : f32
    %40 = vector.broadcast %cst_48 : f32 to vector<18x1xf32>
    %41 = arith.divf %39, %40 : vector<18x1xf32>
    %42 = vector.broadcast %41 : vector<18x1xf32> to vector<18x32xf32>
    %43 = arith.subf %37, %42 : vector<18x32xf32>
    %44 = arith.mulf %43, %43 : vector<18x32xf32>
    %cst_49 = arith.constant dense<0.000000e+00> : vector<18xf32>
    %45 = vector.multi_reduction <add>, %44, %cst_49 [1] : vector<18x32xf32> to vector<18xf32>
    %46 = vector.shape_cast %45 : vector<18xf32> to vector<18x1xf32>
    %cst_50 = arith.constant 3.200000e+01 : f32
    %47 = vector.broadcast %cst_50 : f32 to vector<18x1xf32>
    %48 = arith.divf %46, %47 : vector<18x1xf32>
    %cst_51 = arith.constant 9.99999974E-6 : f32
    %49 = vector.broadcast %cst_51 : f32 to vector<18x1xf32>
    %50 = arith.addf %48, %49 : vector<18x1xf32>
    %51 = math.rsqrt %50 : vector<18x1xf32>
    %52 = vector.broadcast %51 : vector<18x1xf32> to vector<18x32xf32>
    %53 = arith.mulf %43, %52 : vector<18x32xf32>
    %54 = vector.broadcast %14 : vector<1x32xf32> to vector<18x32xf32>
    %55 = arith.mulf %53, %54 : vector<18x32xf32>
    %56 = vector.broadcast %16 : vector<1x32xf32> to vector<18x32xf32>
    %57 = arith.addf %55, %56 : vector<18x32xf32>
    %58 = arith.truncf %57 : vector<18x32xf32> to vector<18x32xbf16>
    %cst_52 = arith.constant dense<0.000000e+00> : vector<18x96xf32>
    %59 = tpu.matmul %58, %18, %cst_52 {dimension_numbers = #tpu.dot_dimension_numbers<[1], [0], [0], [1], [0, 0, 1, 1], [], []>} : vector<18x32xbf16>, vector<32x96xbf16>, vector<18x96xf32> -> vector<18x96xf32>
    %60 = vector.broadcast %20 : vector<1x96xf32> to vector<18x96xf32>
    %61 = arith.addf %59, %60 : vector<18x96xf32>
    %62 = tpu.iota {dimensions = array<i32: 0>} : vector<18x18xi32>
    %63 = tpu.iota {dimensions = array<i32: 1>} : vector<18x18xi32>
    %c0_i32_53 = arith.constant 0 : i32
    %64 = vector.broadcast %c0_i32_53 : i32 to vector<18x18xi32>
    %65 = arith.cmpi sge, %62, %64 : vector<18x18xi32>
    %c9_i32 = arith.constant 9 : i32
    %66 = vector.broadcast %c9_i32 : i32 to vector<18x18xi32>
    %67 = arith.cmpi slt, %62, %66 : vector<18x18xi32>
    %68 = arith.andi %65, %67 : vector<18x18xi1>
    %c0_i32_54 = arith.constant 0 : i32
    %69 = vector.broadcast %c0_i32_54 : i32 to vector<18x18xi32>
    %70 = arith.cmpi sge, %63, %69 : vector<18x18xi32>
    %c9_i32_55 = arith.constant 9 : i32
    %71 = vector.broadcast %c9_i32_55 : i32 to vector<18x18xi32>
    %72 = arith.cmpi slt, %63, %71 : vector<18x18xi32>
    %73 = arith.andi %70, %72 : vector<18x18xi1>
    %74 = arith.andi %68, %73 : vector<18x18xi1>
    %c9_i32_56 = arith.constant 9 : i32
    %75 = vector.broadcast %c9_i32_56 : i32 to vector<18x18xi32>
    %76 = arith.cmpi sge, %62, %75 : vector<18x18xi32>
    %c18_i32 = arith.constant 18 : i32
    %77 = vector.broadcast %c18_i32 : i32 to vector<18x18xi32>
    %78 = arith.cmpi slt, %62, %77 : vector<18x18xi32>
    %79 = arith.andi %76, %78 : vector<18x18xi1>
    %c9_i32_57 = arith.constant 9 : i32
    %80 = vector.broadcast %c9_i32_57 : i32 to vector<18x18xi32>
    %81 = arith.cmpi sge, %63, %80 : vector<18x18xi32>
    %c18_i32_58 = arith.constant 18 : i32
    %82 = vector.broadcast %c18_i32_58 : i32 to vector<18x18xi32>
    %83 = arith.cmpi slt, %63, %82 : vector<18x18xi32>
    %84 = arith.andi %81, %83 : vector<18x18xi1>
    %85 = arith.andi %79, %84 : vector<18x18xi1>
    %86 = arith.ori %74, %85 : vector<18x18xi1>
    %87 = vector.extract_strided_slice %61 {offsets = [0, 0], sizes = [18, 16], strides = [1, 1]} : vector<18x96xf32> to vector<18x16xf32>
    %88 = arith.truncf %87 : vector<18x16xf32> to vector<18x16xbf16>
    %89 = vector.extract_strided_slice %61 {offsets = [0, 32], sizes = [18, 16], strides = [1, 1]} : vector<18x96xf32> to vector<18x16xf32>
    %90 = arith.truncf %89 : vector<18x16xf32> to vector<18x16xbf16>
    %91 = vector.extract_strided_slice %61 {offsets = [0, 64], sizes = [18, 16], strides = [1, 1]} : vector<18x96xf32> to vector<18x16xf32>
    %92 = arith.truncf %91 : vector<18x16xf32> to vector<18x16xbf16>
    %cst_59 = arith.constant dense<0.000000e+00> : vector<18x18xf32>
    %93 = tpu.matmul %88, %90, %cst_59 {dimension_numbers = #tpu.dot_dimension_numbers<[1], [1], [0], [0], [0, 0, 1, 0], [], []>} : vector<18x16xbf16>, vector<18x16xbf16>, vector<18x18xf32> -> vector<18x18xf32>
    %cst_60 = arith.constant -1.000000e+30 : f32
    %94 = vector.broadcast %cst_60 : f32 to vector<18x18xf32>
    %95 = arith.select %86, %93, %94 : vector<18x18xi1>, vector<18x18xf32>
    %cst_61 = arith.constant dense<0xFF800000> : vector<18xf32>
    %96 = vector.multi_reduction <maximumf>, %95, %cst_61 [1] : vector<18x18xf32> to vector<18xf32>
    %97 = vector.shape_cast %96 : vector<18xf32> to vector<18x1xf32>
    %98 = vector.broadcast %97 : vector<18x1xf32> to vector<18x18xf32>
    %99 = arith.subf %95, %98 : vector<18x18xf32>
    %100 = math.exp %99 : vector<18x18xf32>
    %cst_62 = arith.constant dense<0.000000e+00> : vector<18xf32>
    %101 = vector.multi_reduction <add>, %100, %cst_62 [1] : vector<18x18xf32> to vector<18xf32>
    %102 = vector.shape_cast %101 : vector<18xf32> to vector<18x1xf32>
    %103 = tpu.reciprocal %102 {approx = true} : vector<18x1xf32> -> vector<18x1xf32>
    %104 = vector.broadcast %103 : vector<18x1xf32> to vector<18x18xf32>
    %105 = arith.mulf %100, %104 : vector<18x18xf32>
    %106 = arith.truncf %105 : vector<18x18xf32> to vector<18x18xbf16>
    %cst_63 = arith.constant dense<0.000000e+00> : vector<18x16xf32>
    %107 = tpu.matmul %106, %92, %cst_63 {dimension_numbers = #tpu.dot_dimension_numbers<[1], [0], [0], [1], [0, 0, 1, 1], [], []>} : vector<18x18xbf16>, vector<18x16xbf16>, vector<18x16xf32> -> vector<18x16xf32>
    %108 = arith.truncf %107 : vector<18x16xf32> to vector<18x16xbf16>
    %109 = vector.extract_strided_slice %22 {offsets = [0, 0], sizes = [16, 32], strides = [1, 1]} : vector<32x32xbf16> to vector<16x32xbf16>
    %cst_64 = arith.constant dense<0.000000e+00> : vector<18x32xf32>
    %110 = tpu.matmul %108, %109, %cst_64 {dimension_numbers = #tpu.dot_dimension_numbers<[1], [0], [0], [1], [0, 0, 1, 1], [], []>} : vector<18x16xbf16>, vector<16x32xbf16>, vector<18x32xf32> -> vector<18x32xf32>
    %111 = vector.extract_strided_slice %61 {offsets = [0, 16], sizes = [18, 16], strides = [1, 1]} : vector<18x96xf32> to vector<18x16xf32>
    %112 = arith.truncf %111 : vector<18x16xf32> to vector<18x16xbf16>
    %113 = vector.extract_strided_slice %61 {offsets = [0, 48], sizes = [18, 16], strides = [1, 1]} : vector<18x96xf32> to vector<18x16xf32>
    %114 = arith.truncf %113 : vector<18x16xf32> to vector<18x16xbf16>
    %115 = vector.extract_strided_slice %61 {offsets = [0, 80], sizes = [18, 16], strides = [1, 1]} : vector<18x96xf32> to vector<18x16xf32>
    %116 = arith.truncf %115 : vector<18x16xf32> to vector<18x16xbf16>
    %cst_65 = arith.constant dense<0.000000e+00> : vector<18x18xf32>
    %117 = tpu.matmul %112, %114, %cst_65 {dimension_numbers = #tpu.dot_dimension_numbers<[1], [1], [0], [0], [0, 0, 1, 0], [], []>} : vector<18x16xbf16>, vector<18x16xbf16>, vector<18x18xf32> -> vector<18x18xf32>
    %cst_66 = arith.constant -1.000000e+30 : f32
    %118 = vector.broadcast %cst_66 : f32 to vector<18x18xf32>
    %119 = arith.select %86, %117, %118 : vector<18x18xi1>, vector<18x18xf32>
    %cst_67 = arith.constant dense<0xFF800000> : vector<18xf32>
    %120 = vector.multi_reduction <maximumf>, %119, %cst_67 [1] : vector<18x18xf32> to vector<18xf32>
    %121 = vector.shape_cast %120 : vector<18xf32> to vector<18x1xf32>
    %122 = vector.broadcast %121 : vector<18x1xf32> to vector<18x18xf32>
    %123 = arith.subf %119, %122 : vector<18x18xf32>
    %124 = math.exp %123 : vector<18x18xf32>
    %cst_68 = arith.constant dense<0.000000e+00> : vector<18xf32>
    %125 = vector.multi_reduction <add>, %124, %cst_68 [1] : vector<18x18xf32> to vector<18xf32>
    %126 = vector.shape_cast %125 : vector<18xf32> to vector<18x1xf32>
    %127 = tpu.reciprocal %126 {approx = true} : vector<18x1xf32> -> vector<18x1xf32>
    %128 = vector.broadcast %127 : vector<18x1xf32> to vector<18x18xf32>
    %129 = arith.mulf %124, %128 : vector<18x18xf32>
    %130 = arith.truncf %129 : vector<18x18xf32> to vector<18x18xbf16>
    %cst_69 = arith.constant dense<0.000000e+00> : vector<18x16xf32>
    %131 = tpu.matmul %130, %116, %cst_69 {dimension_numbers = #tpu.dot_dimension_numbers<[1], [0], [0], [1], [0, 0, 1, 1], [], []>} : vector<18x18xbf16>, vector<18x16xbf16>, vector<18x16xf32> -> vector<18x16xf32>
    %132 = arith.truncf %131 : vector<18x16xf32> to vector<18x16xbf16>
    %133 = vector.extract_strided_slice %22 {offsets = [16, 0], sizes = [16, 32], strides = [1, 1]} : vector<32x32xbf16> to vector<16x32xbf16>
    %cst_70 = arith.constant dense<0.000000e+00> : vector<18x32xf32>
    %134 = tpu.matmul %132, %133, %cst_70 {dimension_numbers = #tpu.dot_dimension_numbers<[1], [0], [0], [1], [0, 0, 1, 1], [], []>} : vector<18x16xbf16>, vector<16x32xbf16>, vector<18x32xf32> -> vector<18x32xf32>
    %135 = arith.addf %110, %134 : vector<18x32xf32>
    %136 = arith.addf %37, %135 : vector<18x32xf32>
    %137 = vector.broadcast %24 : vector<1x32xf32> to vector<18x32xf32>
    %138 = arith.addf %136, %137 : vector<18x32xf32>
    %cst_71 = arith.constant dense<0.000000e+00> : vector<18xf32>
    %139 = vector.multi_reduction <add>, %138, %cst_71 [1] : vector<18x32xf32> to vector<18xf32>
    %140 = vector.shape_cast %139 : vector<18xf32> to vector<18x1xf32>
    %cst_72 = arith.constant 3.200000e+01 : f32
    %141 = vector.broadcast %cst_72 : f32 to vector<18x1xf32>
    %142 = arith.divf %140, %141 : vector<18x1xf32>
    %143 = vector.broadcast %142 : vector<18x1xf32> to vector<18x32xf32>
    %144 = arith.subf %138, %143 : vector<18x32xf32>
    %145 = arith.mulf %144, %144 : vector<18x32xf32>
    %cst_73 = arith.constant dense<0.000000e+00> : vector<18xf32>
    %146 = vector.multi_reduction <add>, %145, %cst_73 [1] : vector<18x32xf32> to vector<18xf32>
    %147 = vector.shape_cast %146 : vector<18xf32> to vector<18x1xf32>
    %cst_74 = arith.constant 3.200000e+01 : f32
    %148 = vector.broadcast %cst_74 : f32 to vector<18x1xf32>
    %149 = arith.divf %147, %148 : vector<18x1xf32>
    %cst_75 = arith.constant 9.99999974E-6 : f32
    %150 = vector.broadcast %cst_75 : f32 to vector<18x1xf32>
    %151 = arith.addf %149, %150 : vector<18x1xf32>
    %152 = math.rsqrt %151 : vector<18x1xf32>
    %153 = vector.broadcast %152 : vector<18x1xf32> to vector<18x32xf32>
    %154 = arith.mulf %144, %153 : vector<18x32xf32>
    %155 = vector.broadcast %26 : vector<1x32xf32> to vector<18x32xf32>
    %156 = arith.mulf %154, %155 : vector<18x32xf32>
    %157 = vector.broadcast %28 : vector<1x32xf32> to vector<18x32xf32>
    %158 = arith.addf %156, %157 : vector<18x32xf32>
    %159 = arith.truncf %158 : vector<18x32xf32> to vector<18x32xbf16>
    %cst_76 = arith.constant dense<0.000000e+00> : vector<18x128xf32>
    %160 = tpu.matmul %159, %30, %cst_76 {dimension_numbers = #tpu.dot_dimension_numbers<[1], [0], [0], [1], [0, 0, 1, 1], [], []>} : vector<18x32xbf16>, vector<32x128xbf16>, vector<18x128xf32> -> vector<18x128xf32>
    %161 = vector.broadcast %32 : vector<1x128xf32> to vector<18x128xf32>
    %162 = arith.addf %160, %161 : vector<18x128xf32>
    %cst_77 = arith.constant 1.702000e+00 : f32
    %163 = vector.broadcast %cst_77 : f32 to vector<18x128xf32>
    %164 = arith.mulf %163, %162 : vector<18x128xf32>
    %165 = arith.negf %164 : vector<18x128xf32>
    %166 = math.exp %165 : vector<18x128xf32>
    %cst_78 = arith.constant 1.000000e+00 : f32
    %167 = vector.broadcast %cst_78 : f32 to vector<18x128xf32>
    %168 = arith.addf %167, %166 : vector<18x128xf32>
    %169 = arith.divf %167, %168 : vector<18x128xf32>
    %170 = arith.mulf %162, %169 : vector<18x128xf32>
    %171 = arith.truncf %170 : vector<18x128xf32> to vector<18x128xbf16>
    %cst_79 = arith.constant dense<0.000000e+00> : vector<18x32xf32>
    %172 = tpu.matmul %171, %34, %cst_79 {dimension_numbers = #tpu.dot_dimension_numbers<[1], [0], [0], [1], [0, 0, 1, 1], [], []>} : vector<18x128xbf16>, vector<128x32xbf16>, vector<18x32xf32> -> vector<18x32xf32>
    %173 = vector.broadcast %36 : vector<1x32xf32> to vector<18x32xf32>
    %174 = arith.addf %172, %173 : vector<18x32xf32>
    %175 = arith.addf %138, %174 : vector<18x32xf32>
    %c0_80 = arith.constant 0 : index
    %c0_81 = arith.constant 0 : index
    %176 = vector.load %arg23[%c0_80, %c0_81] : memref<18x32xf32, #tpu.memory_space<vmem>>, vector<18x32xf32>
    tpu.vector_store %arg23[%c0_80, %c0_81], %175 {strides = array<i32>} : memref<18x32xf32, #tpu.memory_space<vmem>>, vector<18x32xf32>,
    %c1_i32 = arith.constant 1 : i32
    %177 = arith.cmpi eq, %arg0, %c1_i32 : i32
    %178 = arith.extui %177 : i1 to i32
    %c0_i32_82 = arith.constant 0 : i32
    %179 = arith.cmpi ne, %178, %c0_i32_82 : i32
    scf.if %179 {
      %180 = vector.extract_strided_slice %175 {offsets = [0, 0], sizes = [1, 32], strides = [1, 1]} : vector<18x32xf32> to vector<1x32xf32>
      %181 = vector.extract_strided_slice %175 {offsets = [9, 0], sizes = [1, 32], strides = [1, 1]} : vector<18x32xf32> to vector<1x32xf32>
      %182 = tpu.concatenate %180, %181 in 0 : vector<1x32xf32>, vector<1x32xf32> -> vector<2x32xf32>
      %c0_83 = arith.constant 0 : index
      %c0_84 = arith.constant 0 : index
      %183 = vector.load %arg22[%c0_83, %c0_84] : memref<2x32xf32, #tpu.memory_space<vmem>>, vector<2x32xf32>
      tpu.vector_store %arg22[%c0_83, %c0_84], %182 {strides = array<i32>} : memref<2x32xf32, #tpu.memory_space<vmem>>, vector<2x32xf32>,
    } else {
    }
    return
  }
  func.func @transform_0(%arg0: i32) -> (i32, i32) {
    %c0_i32 = arith.constant 0 : i32
    %c0_i32_0 = arith.constant 0 : i32
    %c0_i32_1 = arith.constant 0 : i32
    return %c0_i32, %c0_i32_0 : i32, i32
  }
  func.func @transform_1(%arg0: i32) -> (i32, i32) {
    %c0_i32 = arith.constant 0 : i32
    %c0_i32_0 = arith.constant 0 : i32
    %c0_i32_1 = arith.constant 0 : i32
    return %c0_i32, %c0_i32_0 : i32, i32
  }
  func.func @transform_2(%arg0: i32) -> (i32, i32) {
    %c0_i32 = arith.constant 0 : i32
    %c0_i32_0 = arith.constant 0 : i32
    %c0_i32_1 = arith.constant 0 : i32
    return %c0_i32, %c0_i32_0 : i32, i32
  }
  func.func @transform_3(%arg0: i32) -> (i32, i32) {
    %c0_i32 = arith.constant 0 : i32
    %c0_i32_0 = arith.constant 0 : i32
    %c0_i32_1 = arith.constant 0 : i32
    return %c0_i32, %c0_i32_0 : i32, i32
  }
  func.func @transform_4(%arg0: i32) -> (i32, i32) {
    %c0_i32 = arith.constant 0 : i32
    %c0_i32_0 = arith.constant 0 : i32
    %c0_i32_1 = arith.constant 0 : i32
    return %c0_i32, %c0_i32_0 : i32, i32
  }
  func.func @transform_5(%arg0: i32) -> (i32, i32) {
    %c0_i32 = arith.constant 0 : i32
    %c0_i32_0 = arith.constant 0 : i32
    %c0_i32_1 = arith.constant 0 : i32
    return %c0_i32, %c0_i32_0 : i32, i32
  }
  func.func @transform_6(%arg0: i32) -> (i32, i32, i32) {
    %c0_i32 = arith.constant 0 : i32
    %c0_i32_0 = arith.constant 0 : i32
    %c0_i32_1 = arith.constant 0 : i32
    return %arg0, %c0_i32, %c0_i32_0 : i32, i32, i32
  }
  func.func @transform_7(%arg0: i32) -> (i32, i32) {
    %c0_i32 = arith.constant 0 : i32
    %c0_i32_0 = arith.constant 0 : i32
    %c0_i32_1 = arith.constant 0 : i32
    return %c0_i32, %c0_i32_0 : i32, i32
  }
  func.func @transform_8(%arg0: i32) -> (i32, i32) {
    %c0_i32 = arith.constant 0 : i32
    %c0_i32_0 = arith.constant 0 : i32
    %c0_i32_1 = arith.constant 0 : i32
    return %c0_i32, %c0_i32_0 : i32, i32
  }
  func.func @transform_9(%arg0: i32) -> (i32, i32, i32) {
    %c0_i32 = arith.constant 0 : i32
    %c0_i32_0 = arith.constant 0 : i32
    %c0_i32_1 = arith.constant 0 : i32
    return %arg0, %c0_i32, %c0_i32_0 : i32, i32, i32
  }
  func.func @transform_10(%arg0: i32) -> (i32, i32, i32) {
    %c0_i32 = arith.constant 0 : i32
    %c0_i32_0 = arith.constant 0 : i32
    %c0_i32_1 = arith.constant 0 : i32
    return %arg0, %c0_i32, %c0_i32_0 : i32, i32, i32
  }
  func.func @transform_11(%arg0: i32) -> (i32, i32, i32) {
    %c0_i32 = arith.constant 0 : i32
    %c0_i32_0 = arith.constant 0 : i32
    %c0_i32_1 = arith.constant 0 : i32
    return %arg0, %c0_i32, %c0_i32_0 : i32, i32, i32
  }
  func.func @transform_12(%arg0: i32) -> (i32, i32, i32) {
    %c0_i32 = arith.constant 0 : i32
    %c0_i32_0 = arith.constant 0 : i32
    %c0_i32_1 = arith.constant 0 : i32
    return %arg0, %c0_i32, %c0_i32_0 : i32, i32, i32
  }
  func.func @transform_13(%arg0: i32) -> (i32, i32, i32) {
    %c0_i32 = arith.constant 0 : i32
    %c0_i32_0 = arith.constant 0 : i32
    %c0_i32_1 = arith.constant 0 : i32
    return %arg0, %c0_i32, %c0_i32_0 : i32, i32, i32
  }
  func.func @transform_14(%arg0: i32) -> (i32, i32, i32) {
    %c0_i32 = arith.constant 0 : i32
    %c0_i32_0 = arith.constant 0 : i32
    %c0_i32_1 = arith.constant 0 : i32
    return %arg0, %c0_i32, %c0_i32_0 : i32, i32, i32
  }
  func.func @transform_15(%arg0: i32) -> (i32, i32, i32) {
    %c0_i32 = arith.constant 0 : i32
    %c0_i32_0 = arith.constant 0 : i32
    %c0_i32_1 = arith.constant 0 : i32
    return %arg0, %c0_i32, %c0_i32_0 : i32, i32, i32
  }
  func.func @transform_16(%arg0: i32) -> (i32, i32, i32) {
    %c0_i32 = arith.constant 0 : i32
    %c0_i32_0 = arith.constant 0 : i32
    %c0_i32_1 = arith.constant 0 : i32
    return %arg0, %c0_i32, %c0_i32_0 : i32, i32, i32
  }
  func.func @transform_17(%arg0: i32) -> (i32, i32, i32) {
    %c0_i32 = arith.constant 0 : i32
    %c0_i32_0 = arith.constant 0 : i32
    %c0_i32_1 = arith.constant 0 : i32
    return %arg0, %c0_i32, %c0_i32_0 : i32, i32, i32
  }
  func.func @transform_18(%arg0: i32) -> (i32, i32, i32) {
    %c0_i32 = arith.constant 0 : i32
    %c0_i32_0 = arith.constant 0 : i32
    %c0_i32_1 = arith.constant 0 : i32
    return %arg0, %c0_i32, %c0_i32_0 : i32, i32, i32
  }
  func.func @transform_19(%arg0: i32) -> (i32, i32, i32) {
    %c0_i32 = arith.constant 0 : i32
    %c0_i32_0 = arith.constant 0 : i32
    %c0_i32_1 = arith.constant 0 : i32
    return %arg0, %c0_i32, %c0_i32_0 : i32, i32, i32
  }
  func.func @transform_20(%arg0: i32) -> (i32, i32, i32) {
    %c0_i32 = arith.constant 0 : i32
    %c0_i32_0 = arith.constant 0 : i32
    %c0_i32_1 = arith.constant 0 : i32
    return %arg0, %c0_i32, %c0_i32_0 : i32, i32, i32
  }
  func.func @transform_21(%arg0: i32) -> (i32, i32) {
    %c0_i32 = arith.constant 0 : i32
    %c0_i32_0 = arith.constant 0 : i32
    %c0_i32_1 = arith.constant 0 : i32
    return %c0_i32, %c0_i32_0 : i32, i32
  }
}

module attributes {stable_mosaic.version = 11 : i64} {
  func.func @_text_tower_kernel(%arg0: i32, %arg1: memref<24x32xf32, #tpu.memory_space<vmem>>, %arg2: memref<3x24xf32, #tpu.memory_space<vmem>>, %arg3: memref<1x1x32xf32, #tpu.memory_space<vmem>>, %arg4: memref<1x1x32xf32, #tpu.memory_space<vmem>>, %arg5: memref<1x32x96xbf16, #tpu.memory_space<vmem>>, %arg6: memref<1x1x96xf32, #tpu.memory_space<vmem>>, %arg7: memref<1x32x32xbf16, #tpu.memory_space<vmem>>, %arg8: memref<1x1x32xf32, #tpu.memory_space<vmem>>, %arg9: memref<1x1x32xf32, #tpu.memory_space<vmem>>, %arg10: memref<1x1x32xf32, #tpu.memory_space<vmem>>, %arg11: memref<1x32x128xbf16, #tpu.memory_space<vmem>>, %arg12: memref<1x1x128xf32, #tpu.memory_space<vmem>>, %arg13: memref<1x128x32xbf16, #tpu.memory_space<vmem>>, %arg14: memref<1x1x32xf32, #tpu.memory_space<vmem>>, %arg15: memref<3x32xf32, #tpu.memory_space<vmem>>, %arg16: memref<24x32xf32, #tpu.memory_space<vmem>>) attributes {dimension_semantics = [#tpu.dimension_semantics<arbitrary>], iteration_bounds = array<i64: 2>, scalar_prefetch = 0 : i64, scratch_operands = 1 : i64, tpu.core_type = #tpu.core_type<tc>, window_params = [{pipeline_mode = #tpu.pipeline_mode<synchronous>, transform_indices = @transform_0, window_bounds = array<i64: 24, 32>}, {pipeline_mode = #tpu.pipeline_mode<synchronous>, transform_indices = @transform_1, window_bounds = array<i64: 3, 24>}, {transform_indices = @transform_2, window_bounds = array<i64: 1, 1, 32>}, {transform_indices = @transform_3, window_bounds = array<i64: 1, 1, 32>}, {transform_indices = @transform_4, window_bounds = array<i64: 1, 32, 96>}, {transform_indices = @transform_5, window_bounds = array<i64: 1, 1, 96>}, {transform_indices = @transform_6, window_bounds = array<i64: 1, 32, 32>}, {transform_indices = @transform_7, window_bounds = array<i64: 1, 1, 32>}, {transform_indices = @transform_8, window_bounds = array<i64: 1, 1, 32>}, {transform_indices = @transform_9, window_bounds = array<i64: 1, 1, 32>}, {transform_indices = @transform_10, window_bounds = array<i64: 1, 32, 128>}, {transform_indices = @transform_11, window_bounds = array<i64: 1, 1, 128>}, {transform_indices = @transform_12, window_bounds = array<i64: 1, 128, 32>}, {transform_indices = @transform_13, window_bounds = array<i64: 1, 1, 32>}, {pipeline_mode = #tpu.pipeline_mode<synchronous>, transform_indices = @transform_14, window_bounds = array<i64: 3, 32>}]} {
    %c0_i32 = arith.constant 0 : i32
    %0 = arith.cmpi eq, %arg0, %c0_i32 : i32
    %1 = arith.extui %0 : i1 to i32
    %c0_i32_0 = arith.constant 0 : i32
    %2 = arith.cmpi ne, %1, %c0_i32_0 : i32
    scf.if %2 {
      %c0_76 = arith.constant 0 : index
      %c0_77 = arith.constant 0 : index
      %184 = vector.load %arg1[%c0_76, %c0_77] : memref<24x32xf32, #tpu.memory_space<vmem>>, vector<24x32xf32>
      %c0_78 = arith.constant 0 : index
      %c0_79 = arith.constant 0 : index
      %185 = vector.load %arg16[%c0_78, %c0_79] : memref<24x32xf32, #tpu.memory_space<vmem>>, vector<24x32xf32>
      tpu.vector_store %arg16[%c0_78, %c0_79], %184 {strides = array<i32>} : memref<24x32xf32, #tpu.memory_space<vmem>>, vector<24x32xf32>,
    } else {
    }
    %c0 = arith.constant 0 : index
    %c0_1 = arith.constant 0 : index
    %c0_2 = arith.constant 0 : index
    %3 = vector.load %arg3[%c0, %c0_1, %c0_2] : memref<1x1x32xf32, #tpu.memory_space<vmem>>, vector<1x1x32xf32>
    %4 = vector.shape_cast %3 : vector<1x1x32xf32> to vector<1x32xf32>
    %c0_3 = arith.constant 0 : index
    %c0_4 = arith.constant 0 : index
    %c0_5 = arith.constant 0 : index
    %5 = vector.load %arg4[%c0_3, %c0_4, %c0_5] : memref<1x1x32xf32, #tpu.memory_space<vmem>>, vector<1x1x32xf32>
    %6 = vector.shape_cast %5 : vector<1x1x32xf32> to vector<1x32xf32>
    %c0_6 = arith.constant 0 : index
    %c0_7 = arith.constant 0 : index
    %c0_8 = arith.constant 0 : index
    %7 = vector.load %arg5[%c0_6, %c0_7, %c0_8] : memref<1x32x96xbf16, #tpu.memory_space<vmem>>, vector<1x32x96xbf16>
    %8 = vector.shape_cast %7 : vector<1x32x96xbf16> to vector<32x96xbf16>
    %c0_9 = arith.constant 0 : index
    %c0_10 = arith.constant 0 : index
    %c0_11 = arith.constant 0 : index
    %9 = vector.load %arg6[%c0_9, %c0_10, %c0_11] : memref<1x1x96xf32, #tpu.memory_space<vmem>>, vector<1x1x96xf32>
    %10 = vector.shape_cast %9 : vector<1x1x96xf32> to vector<1x96xf32>
    %c0_12 = arith.constant 0 : index
    %c0_13 = arith.constant 0 : index
    %c0_14 = arith.constant 0 : index
    %11 = vector.load %arg7[%c0_12, %c0_13, %c0_14] : memref<1x32x32xbf16, #tpu.memory_space<vmem>>, vector<1x32x32xbf16>
    %12 = vector.shape_cast %11 : vector<1x32x32xbf16> to vector<32x32xbf16>
    %c0_15 = arith.constant 0 : index
    %c0_16 = arith.constant 0 : index
    %c0_17 = arith.constant 0 : index
    %13 = vector.load %arg8[%c0_15, %c0_16, %c0_17] : memref<1x1x32xf32, #tpu.memory_space<vmem>>, vector<1x1x32xf32>
    %14 = vector.shape_cast %13 : vector<1x1x32xf32> to vector<1x32xf32>
    %c0_18 = arith.constant 0 : index
    %c0_19 = arith.constant 0 : index
    %c0_20 = arith.constant 0 : index
    %15 = vector.load %arg9[%c0_18, %c0_19, %c0_20] : memref<1x1x32xf32, #tpu.memory_space<vmem>>, vector<1x1x32xf32>
    %16 = vector.shape_cast %15 : vector<1x1x32xf32> to vector<1x32xf32>
    %c0_21 = arith.constant 0 : index
    %c0_22 = arith.constant 0 : index
    %c0_23 = arith.constant 0 : index
    %17 = vector.load %arg10[%c0_21, %c0_22, %c0_23] : memref<1x1x32xf32, #tpu.memory_space<vmem>>, vector<1x1x32xf32>
    %18 = vector.shape_cast %17 : vector<1x1x32xf32> to vector<1x32xf32>
    %c0_24 = arith.constant 0 : index
    %c0_25 = arith.constant 0 : index
    %c0_26 = arith.constant 0 : index
    %19 = vector.load %arg11[%c0_24, %c0_25, %c0_26] : memref<1x32x128xbf16, #tpu.memory_space<vmem>>, vector<1x32x128xbf16>
    %20 = vector.shape_cast %19 : vector<1x32x128xbf16> to vector<32x128xbf16>
    %c0_27 = arith.constant 0 : index
    %c0_28 = arith.constant 0 : index
    %c0_29 = arith.constant 0 : index
    %21 = vector.load %arg12[%c0_27, %c0_28, %c0_29] : memref<1x1x128xf32, #tpu.memory_space<vmem>>, vector<1x1x128xf32>
    %22 = vector.shape_cast %21 : vector<1x1x128xf32> to vector<1x128xf32>
    %c0_30 = arith.constant 0 : index
    %c0_31 = arith.constant 0 : index
    %c0_32 = arith.constant 0 : index
    %23 = vector.load %arg13[%c0_30, %c0_31, %c0_32] : memref<1x128x32xbf16, #tpu.memory_space<vmem>>, vector<1x128x32xbf16>
    %24 = vector.shape_cast %23 : vector<1x128x32xbf16> to vector<128x32xbf16>
    %c0_33 = arith.constant 0 : index
    %c0_34 = arith.constant 0 : index
    %c0_35 = arith.constant 0 : index
    %25 = vector.load %arg14[%c0_33, %c0_34, %c0_35] : memref<1x1x32xf32, #tpu.memory_space<vmem>>, vector<1x1x32xf32>
    %26 = vector.shape_cast %25 : vector<1x1x32xf32> to vector<1x32xf32>
    %c0_36 = arith.constant 0 : index
    %c0_37 = arith.constant 0 : index
    %27 = vector.load %arg16[%c0_36, %c0_37] : memref<24x32xf32, #tpu.memory_space<vmem>>, vector<24x32xf32>
    %cst = arith.constant dense<0.000000e+00> : vector<24xf32>
    %28 = vector.multi_reduction <add>, %27, %cst [1] : vector<24x32xf32> to vector<24xf32>
    %29 = vector.shape_cast %28 : vector<24xf32> to vector<24x1xf32>
    %cst_38 = arith.constant 3.200000e+01 : f32
    %30 = vector.broadcast %cst_38 : f32 to vector<24x1xf32>
    %31 = arith.divf %29, %30 : vector<24x1xf32>
    %32 = vector.broadcast %31 : vector<24x1xf32> to vector<24x32xf32>
    %33 = arith.subf %27, %32 : vector<24x32xf32>
    %34 = arith.mulf %33, %33 : vector<24x32xf32>
    %cst_39 = arith.constant dense<0.000000e+00> : vector<24xf32>
    %35 = vector.multi_reduction <add>, %34, %cst_39 [1] : vector<24x32xf32> to vector<24xf32>
    %36 = vector.shape_cast %35 : vector<24xf32> to vector<24x1xf32>
    %cst_40 = arith.constant 3.200000e+01 : f32
    %37 = vector.broadcast %cst_40 : f32 to vector<24x1xf32>
    %38 = arith.divf %36, %37 : vector<24x1xf32>
    %cst_41 = arith.constant 9.99999974E-6 : f32
    %39 = vector.broadcast %cst_41 : f32 to vector<24x1xf32>
    %40 = arith.addf %38, %39 : vector<24x1xf32>
    %41 = math.rsqrt %40 : vector<24x1xf32>
    %42 = vector.broadcast %41 : vector<24x1xf32> to vector<24x32xf32>
    %43 = arith.mulf %33, %42 : vector<24x32xf32>
    %44 = vector.broadcast %4 : vector<1x32xf32> to vector<24x32xf32>
    %45 = arith.mulf %43, %44 : vector<24x32xf32>
    %46 = vector.broadcast %6 : vector<1x32xf32> to vector<24x32xf32>
    %47 = arith.addf %45, %46 : vector<24x32xf32>
    %48 = arith.truncf %47 : vector<24x32xf32> to vector<24x32xbf16>
    %cst_42 = arith.constant dense<0.000000e+00> : vector<24x96xf32>
    %49 = tpu.matmul %48, %8, %cst_42 {dimension_numbers = #tpu.dot_dimension_numbers<[1], [0], [0], [1], [0, 0, 1, 1], [], []>} : vector<24x32xbf16>, vector<32x96xbf16>, vector<24x96xf32> -> vector<24x96xf32>
    %50 = vector.broadcast %10 : vector<1x96xf32> to vector<24x96xf32>
    %51 = arith.addf %49, %50 : vector<24x96xf32>
    %52 = tpu.iota {dimensions = array<i32: 0>} : vector<24x24xi32>
    %53 = tpu.iota {dimensions = array<i32: 1>} : vector<24x24xi32>
    %c0_i32_43 = arith.constant 0 : i32
    %54 = vector.broadcast %c0_i32_43 : i32 to vector<24x24xi32>
    %55 = arith.cmpi sge, %52, %54 : vector<24x24xi32>
    %c8_i32 = arith.constant 8 : i32
    %56 = vector.broadcast %c8_i32 : i32 to vector<24x24xi32>
    %57 = arith.cmpi slt, %52, %56 : vector<24x24xi32>
    %58 = arith.andi %55, %57 : vector<24x24xi1>
    %c0_i32_44 = arith.constant 0 : i32
    %59 = vector.broadcast %c0_i32_44 : i32 to vector<24x24xi32>
    %60 = arith.cmpi sge, %53, %59 : vector<24x24xi32>
    %c8_i32_45 = arith.constant 8 : i32
    %61 = vector.broadcast %c8_i32_45 : i32 to vector<24x24xi32>
    %62 = arith.cmpi slt, %53, %61 : vector<24x24xi32>
    %63 = arith.andi %60, %62 : vector<24x24xi1>
    %64 = arith.andi %58, %63 : vector<24x24xi1>
    %c8_i32_46 = arith.constant 8 : i32
    %65 = vector.broadcast %c8_i32_46 : i32 to vector<24x24xi32>
    %66 = arith.cmpi sge, %52, %65 : vector<24x24xi32>
    %c16_i32 = arith.constant 16 : i32
    %67 = vector.broadcast %c16_i32 : i32 to vector<24x24xi32>
    %68 = arith.cmpi slt, %52, %67 : vector<24x24xi32>
    %69 = arith.andi %66, %68 : vector<24x24xi1>
    %c8_i32_47 = arith.constant 8 : i32
    %70 = vector.broadcast %c8_i32_47 : i32 to vector<24x24xi32>
    %71 = arith.cmpi sge, %53, %70 : vector<24x24xi32>
    %c16_i32_48 = arith.constant 16 : i32
    %72 = vector.broadcast %c16_i32_48 : i32 to vector<24x24xi32>
    %73 = arith.cmpi slt, %53, %72 : vector<24x24xi32>
    %74 = arith.andi %71, %73 : vector<24x24xi1>
    %75 = arith.andi %69, %74 : vector<24x24xi1>
    %c16_i32_49 = arith.constant 16 : i32
    %76 = vector.broadcast %c16_i32_49 : i32 to vector<24x24xi32>
    %77 = arith.cmpi sge, %52, %76 : vector<24x24xi32>
    %c24_i32 = arith.constant 24 : i32
    %78 = vector.broadcast %c24_i32 : i32 to vector<24x24xi32>
    %79 = arith.cmpi slt, %52, %78 : vector<24x24xi32>
    %80 = arith.andi %77, %79 : vector<24x24xi1>
    %c16_i32_50 = arith.constant 16 : i32
    %81 = vector.broadcast %c16_i32_50 : i32 to vector<24x24xi32>
    %82 = arith.cmpi sge, %53, %81 : vector<24x24xi32>
    %c24_i32_51 = arith.constant 24 : i32
    %83 = vector.broadcast %c24_i32_51 : i32 to vector<24x24xi32>
    %84 = arith.cmpi slt, %53, %83 : vector<24x24xi32>
    %85 = arith.andi %82, %84 : vector<24x24xi1>
    %86 = arith.andi %80, %85 : vector<24x24xi1>
    %87 = arith.ori %64, %75 : vector<24x24xi1>
    %88 = arith.ori %87, %86 : vector<24x24xi1>
    %89 = arith.cmpi sge, %52, %53 : vector<24x24xi32>
    %90 = arith.andi %88, %89 : vector<24x24xi1>
    %91 = vector.extract_strided_slice %51 {offsets = [0, 0], sizes = [24, 16], strides = [1, 1]} : vector<24x96xf32> to vector<24x16xf32>
    %92 = arith.truncf %91 : vector<24x16xf32> to vector<24x16xbf16>
    %93 = vector.extract_strided_slice %51 {offsets = [0, 32], sizes = [24, 16], strides = [1, 1]} : vector<24x96xf32> to vector<24x16xf32>
    %94 = arith.truncf %93 : vector<24x16xf32> to vector<24x16xbf16>
    %95 = vector.extract_strided_slice %51 {offsets = [0, 64], sizes = [24, 16], strides = [1, 1]} : vector<24x96xf32> to vector<24x16xf32>
    %96 = arith.truncf %95 : vector<24x16xf32> to vector<24x16xbf16>
    %cst_52 = arith.constant dense<0.000000e+00> : vector<24x24xf32>
    %97 = tpu.matmul %92, %94, %cst_52 {dimension_numbers = #tpu.dot_dimension_numbers<[1], [1], [0], [0], [0, 0, 1, 0], [], []>} : vector<24x16xbf16>, vector<24x16xbf16>, vector<24x24xf32> -> vector<24x24xf32>
    %cst_53 = arith.constant -1.000000e+30 : f32
    %98 = vector.broadcast %cst_53 : f32 to vector<24x24xf32>
    %99 = arith.select %90, %97, %98 : vector<24x24xi1>, vector<24x24xf32>
    %cst_54 = arith.constant dense<0xFF800000> : vector<24xf32>
    %100 = vector.multi_reduction <maximumf>, %99, %cst_54 [1] : vector<24x24xf32> to vector<24xf32>
    %101 = vector.shape_cast %100 : vector<24xf32> to vector<24x1xf32>
    %102 = vector.broadcast %101 : vector<24x1xf32> to vector<24x24xf32>
    %103 = arith.subf %99, %102 : vector<24x24xf32>
    %104 = math.exp %103 : vector<24x24xf32>
    %cst_55 = arith.constant dense<0.000000e+00> : vector<24xf32>
    %105 = vector.multi_reduction <add>, %104, %cst_55 [1] : vector<24x24xf32> to vector<24xf32>
    %106 = vector.shape_cast %105 : vector<24xf32> to vector<24x1xf32>
    %107 = tpu.reciprocal %106 {approx = true} : vector<24x1xf32> -> vector<24x1xf32>
    %108 = vector.broadcast %107 : vector<24x1xf32> to vector<24x24xf32>
    %109 = arith.mulf %104, %108 : vector<24x24xf32>
    %110 = arith.truncf %109 : vector<24x24xf32> to vector<24x24xbf16>
    %cst_56 = arith.constant dense<0.000000e+00> : vector<24x16xf32>
    %111 = tpu.matmul %110, %96, %cst_56 {dimension_numbers = #tpu.dot_dimension_numbers<[1], [0], [0], [1], [0, 0, 1, 1], [], []>} : vector<24x24xbf16>, vector<24x16xbf16>, vector<24x16xf32> -> vector<24x16xf32>
    %112 = arith.truncf %111 : vector<24x16xf32> to vector<24x16xbf16>
    %113 = vector.extract_strided_slice %12 {offsets = [0, 0], sizes = [16, 32], strides = [1, 1]} : vector<32x32xbf16> to vector<16x32xbf16>
    %cst_57 = arith.constant dense<0.000000e+00> : vector<24x32xf32>
    %114 = tpu.matmul %112, %113, %cst_57 {dimension_numbers = #tpu.dot_dimension_numbers<[1], [0], [0], [1], [0, 0, 1, 1], [], []>} : vector<24x16xbf16>, vector<16x32xbf16>, vector<24x32xf32> -> vector<24x32xf32>
    %115 = vector.extract_strided_slice %51 {offsets = [0, 16], sizes = [24, 16], strides = [1, 1]} : vector<24x96xf32> to vector<24x16xf32>
    %116 = arith.truncf %115 : vector<24x16xf32> to vector<24x16xbf16>
    %117 = vector.extract_strided_slice %51 {offsets = [0, 48], sizes = [24, 16], strides = [1, 1]} : vector<24x96xf32> to vector<24x16xf32>
    %118 = arith.truncf %117 : vector<24x16xf32> to vector<24x16xbf16>
    %119 = vector.extract_strided_slice %51 {offsets = [0, 80], sizes = [24, 16], strides = [1, 1]} : vector<24x96xf32> to vector<24x16xf32>
    %120 = arith.truncf %119 : vector<24x16xf32> to vector<24x16xbf16>
    %cst_58 = arith.constant dense<0.000000e+00> : vector<24x24xf32>
    %121 = tpu.matmul %116, %118, %cst_58 {dimension_numbers = #tpu.dot_dimension_numbers<[1], [1], [0], [0], [0, 0, 1, 0], [], []>} : vector<24x16xbf16>, vector<24x16xbf16>, vector<24x24xf32> -> vector<24x24xf32>
    %cst_59 = arith.constant -1.000000e+30 : f32
    %122 = vector.broadcast %cst_59 : f32 to vector<24x24xf32>
    %123 = arith.select %90, %121, %122 : vector<24x24xi1>, vector<24x24xf32>
    %cst_60 = arith.constant dense<0xFF800000> : vector<24xf32>
    %124 = vector.multi_reduction <maximumf>, %123, %cst_60 [1] : vector<24x24xf32> to vector<24xf32>
    %125 = vector.shape_cast %124 : vector<24xf32> to vector<24x1xf32>
    %126 = vector.broadcast %125 : vector<24x1xf32> to vector<24x24xf32>
    %127 = arith.subf %123, %126 : vector<24x24xf32>
    %128 = math.exp %127 : vector<24x24xf32>
    %cst_61 = arith.constant dense<0.000000e+00> : vector<24xf32>
    %129 = vector.multi_reduction <add>, %128, %cst_61 [1] : vector<24x24xf32> to vector<24xf32>
    %130 = vector.shape_cast %129 : vector<24xf32> to vector<24x1xf32>
    %131 = tpu.reciprocal %130 {approx = true} : vector<24x1xf32> -> vector<24x1xf32>
    %132 = vector.broadcast %131 : vector<24x1xf32> to vector<24x24xf32>
    %133 = arith.mulf %128, %132 : vector<24x24xf32>
    %134 = arith.truncf %133 : vector<24x24xf32> to vector<24x24xbf16>
    %cst_62 = arith.constant dense<0.000000e+00> : vector<24x16xf32>
    %135 = tpu.matmul %134, %120, %cst_62 {dimension_numbers = #tpu.dot_dimension_numbers<[1], [0], [0], [1], [0, 0, 1, 1], [], []>} : vector<24x24xbf16>, vector<24x16xbf16>, vector<24x16xf32> -> vector<24x16xf32>
    %136 = arith.truncf %135 : vector<24x16xf32> to vector<24x16xbf16>
    %137 = vector.extract_strided_slice %12 {offsets = [16, 0], sizes = [16, 32], strides = [1, 1]} : vector<32x32xbf16> to vector<16x32xbf16>
    %cst_63 = arith.constant dense<0.000000e+00> : vector<24x32xf32>
    %138 = tpu.matmul %136, %137, %cst_63 {dimension_numbers = #tpu.dot_dimension_numbers<[1], [0], [0], [1], [0, 0, 1, 1], [], []>} : vector<24x16xbf16>, vector<16x32xbf16>, vector<24x32xf32> -> vector<24x32xf32>
    %139 = arith.addf %114, %138 : vector<24x32xf32>
    %140 = arith.addf %27, %139 : vector<24x32xf32>
    %141 = vector.broadcast %14 : vector<1x32xf32> to vector<24x32xf32>
    %142 = arith.addf %140, %141 : vector<24x32xf32>
    %cst_64 = arith.constant dense<0.000000e+00> : vector<24xf32>
    %143 = vector.multi_reduction <add>, %142, %cst_64 [1] : vector<24x32xf32> to vector<24xf32>
    %144 = vector.shape_cast %143 : vector<24xf32> to vector<24x1xf32>
    %cst_65 = arith.constant 3.200000e+01 : f32
    %145 = vector.broadcast %cst_65 : f32 to vector<24x1xf32>
    %146 = arith.divf %144, %145 : vector<24x1xf32>
    %147 = vector.broadcast %146 : vector<24x1xf32> to vector<24x32xf32>
    %148 = arith.subf %142, %147 : vector<24x32xf32>
    %149 = arith.mulf %148, %148 : vector<24x32xf32>
    %cst_66 = arith.constant dense<0.000000e+00> : vector<24xf32>
    %150 = vector.multi_reduction <add>, %149, %cst_66 [1] : vector<24x32xf32> to vector<24xf32>
    %151 = vector.shape_cast %150 : vector<24xf32> to vector<24x1xf32>
    %cst_67 = arith.constant 3.200000e+01 : f32
    %152 = vector.broadcast %cst_67 : f32 to vector<24x1xf32>
    %153 = arith.divf %151, %152 : vector<24x1xf32>
    %cst_68 = arith.constant 9.99999974E-6 : f32
    %154 = vector.broadcast %cst_68 : f32 to vector<24x1xf32>
    %155 = arith.addf %153, %154 : vector<24x1xf32>
    %156 = math.rsqrt %155 : vector<24x1xf32>
    %157 = vector.broadcast %156 : vector<24x1xf32> to vector<24x32xf32>
    %158 = arith.mulf %148, %157 : vector<24x32xf32>
    %159 = vector.broadcast %16 : vector<1x32xf32> to vector<24x32xf32>
    %160 = arith.mulf %158, %159 : vector<24x32xf32>
    %161 = vector.broadcast %18 : vector<1x32xf32> to vector<24x32xf32>
    %162 = arith.addf %160, %161 : vector<24x32xf32>
    %163 = arith.truncf %162 : vector<24x32xf32> to vector<24x32xbf16>
    %cst_69 = arith.constant dense<0.000000e+00> : vector<24x128xf32>
    %164 = tpu.matmul %163, %20, %cst_69 {dimension_numbers = #tpu.dot_dimension_numbers<[1], [0], [0], [1], [0, 0, 1, 1], [], []>} : vector<24x32xbf16>, vector<32x128xbf16>, vector<24x128xf32> -> vector<24x128xf32>
    %165 = vector.broadcast %22 : vector<1x128xf32> to vector<24x128xf32>
    %166 = arith.addf %164, %165 : vector<24x128xf32>
    %cst_70 = arith.constant 1.702000e+00 : f32
    %167 = vector.broadcast %cst_70 : f32 to vector<24x128xf32>
    %168 = arith.mulf %167, %166 : vector<24x128xf32>
    %169 = arith.negf %168 : vector<24x128xf32>
    %170 = math.exp %169 : vector<24x128xf32>
    %cst_71 = arith.constant 1.000000e+00 : f32
    %171 = vector.broadcast %cst_71 : f32 to vector<24x128xf32>
    %172 = arith.addf %171, %170 : vector<24x128xf32>
    %173 = arith.divf %171, %172 : vector<24x128xf32>
    %174 = arith.mulf %166, %173 : vector<24x128xf32>
    %175 = arith.truncf %174 : vector<24x128xf32> to vector<24x128xbf16>
    %cst_72 = arith.constant dense<0.000000e+00> : vector<24x32xf32>
    %176 = tpu.matmul %175, %24, %cst_72 {dimension_numbers = #tpu.dot_dimension_numbers<[1], [0], [0], [1], [0, 0, 1, 1], [], []>} : vector<24x128xbf16>, vector<128x32xbf16>, vector<24x32xf32> -> vector<24x32xf32>
    %177 = vector.broadcast %26 : vector<1x32xf32> to vector<24x32xf32>
    %178 = arith.addf %176, %177 : vector<24x32xf32>
    %179 = arith.addf %142, %178 : vector<24x32xf32>
    %c0_73 = arith.constant 0 : index
    %c0_74 = arith.constant 0 : index
    %180 = vector.load %arg16[%c0_73, %c0_74] : memref<24x32xf32, #tpu.memory_space<vmem>>, vector<24x32xf32>
    tpu.vector_store %arg16[%c0_73, %c0_74], %179 {strides = array<i32>} : memref<24x32xf32, #tpu.memory_space<vmem>>, vector<24x32xf32>,
    %c1_i32 = arith.constant 1 : i32
    %181 = arith.cmpi eq, %arg0, %c1_i32 : i32
    %182 = arith.extui %181 : i1 to i32
    %c0_i32_75 = arith.constant 0 : i32
    %183 = arith.cmpi ne, %182, %c0_i32_75 : i32
    scf.if %183 {
      %c0_76 = arith.constant 0 : index
      %c0_77 = arith.constant 0 : index
      %184 = vector.load %arg2[%c0_76, %c0_77] : memref<3x24xf32, #tpu.memory_space<vmem>>, vector<3x24xf32>
      %cst_78 = arith.constant dense<0.000000e+00> : vector<3x32xf32>
      %185 = tpu.matmul %184, %179, %cst_78 {dimension_numbers = #tpu.dot_dimension_numbers<[1], [0], [0], [1], [0, 0, 1, 1], [], []>} : vector<3x24xf32>, vector<24x32xf32>, vector<3x32xf32> -> vector<3x32xf32>
      %c0_79 = arith.constant 0 : index
      %c0_80 = arith.constant 0 : index
      %186 = vector.load %arg15[%c0_79, %c0_80] : memref<3x32xf32, #tpu.memory_space<vmem>>, vector<3x32xf32>
      tpu.vector_store %arg15[%c0_79, %c0_80], %185 {strides = array<i32>} : memref<3x32xf32, #tpu.memory_space<vmem>>, vector<3x32xf32>,
    } else {
    }
    return
  }
  func.func @transform_0(%arg0: i32) -> (i32, i32) {
    %c0_i32 = arith.constant 0 : i32
    %c0_i32_0 = arith.constant 0 : i32
    %c0_i32_1 = arith.constant 0 : i32
    return %c0_i32, %c0_i32_0 : i32, i32
  }
  func.func @transform_1(%arg0: i32) -> (i32, i32) {
    %c0_i32 = arith.constant 0 : i32
    %c0_i32_0 = arith.constant 0 : i32
    %c0_i32_1 = arith.constant 0 : i32
    return %c0_i32, %c0_i32_0 : i32, i32
  }
  func.func @transform_2(%arg0: i32) -> (i32, i32, i32) {
    %c0_i32 = arith.constant 0 : i32
    %c0_i32_0 = arith.constant 0 : i32
    %c0_i32_1 = arith.constant 0 : i32
    return %arg0, %c0_i32, %c0_i32_0 : i32, i32, i32
  }
  func.func @transform_3(%arg0: i32) -> (i32, i32, i32) {
    %c0_i32 = arith.constant 0 : i32
    %c0_i32_0 = arith.constant 0 : i32
    %c0_i32_1 = arith.constant 0 : i32
    return %arg0, %c0_i32, %c0_i32_0 : i32, i32, i32
  }
  func.func @transform_4(%arg0: i32) -> (i32, i32, i32) {
    %c0_i32 = arith.constant 0 : i32
    %c0_i32_0 = arith.constant 0 : i32
    %c0_i32_1 = arith.constant 0 : i32
    return %arg0, %c0_i32, %c0_i32_0 : i32, i32, i32
  }
  func.func @transform_5(%arg0: i32) -> (i32, i32, i32) {
    %c0_i32 = arith.constant 0 : i32
    %c0_i32_0 = arith.constant 0 : i32
    %c0_i32_1 = arith.constant 0 : i32
    return %arg0, %c0_i32, %c0_i32_0 : i32, i32, i32
  }
  func.func @transform_6(%arg0: i32) -> (i32, i32, i32) {
    %c0_i32 = arith.constant 0 : i32
    %c0_i32_0 = arith.constant 0 : i32
    %c0_i32_1 = arith.constant 0 : i32
    return %arg0, %c0_i32, %c0_i32_0 : i32, i32, i32
  }
  func.func @transform_7(%arg0: i32) -> (i32, i32, i32) {
    %c0_i32 = arith.constant 0 : i32
    %c0_i32_0 = arith.constant 0 : i32
    %c0_i32_1 = arith.constant 0 : i32
    return %arg0, %c0_i32, %c0_i32_0 : i32, i32, i32
  }
  func.func @transform_8(%arg0: i32) -> (i32, i32, i32) {
    %c0_i32 = arith.constant 0 : i32
    %c0_i32_0 = arith.constant 0 : i32
    %c0_i32_1 = arith.constant 0 : i32
    return %arg0, %c0_i32, %c0_i32_0 : i32, i32, i32
  }
  func.func @transform_9(%arg0: i32) -> (i32, i32, i32) {
    %c0_i32 = arith.constant 0 : i32
    %c0_i32_0 = arith.constant 0 : i32
    %c0_i32_1 = arith.constant 0 : i32
    return %arg0, %c0_i32, %c0_i32_0 : i32, i32, i32
  }
  func.func @transform_10(%arg0: i32) -> (i32, i32, i32) {
    %c0_i32 = arith.constant 0 : i32
    %c0_i32_0 = arith.constant 0 : i32
    %c0_i32_1 = arith.constant 0 : i32
    return %arg0, %c0_i32, %c0_i32_0 : i32, i32, i32
  }
  func.func @transform_11(%arg0: i32) -> (i32, i32, i32) {
    %c0_i32 = arith.constant 0 : i32
    %c0_i32_0 = arith.constant 0 : i32
    %c0_i32_1 = arith.constant 0 : i32
    return %arg0, %c0_i32, %c0_i32_0 : i32, i32, i32
  }
  func.func @transform_12(%arg0: i32) -> (i32, i32, i32) {
    %c0_i32 = arith.constant 0 : i32
    %c0_i32_0 = arith.constant 0 : i32
    %c0_i32_1 = arith.constant 0 : i32
    return %arg0, %c0_i32, %c0_i32_0 : i32, i32, i32
  }
  func.func @transform_13(%arg0: i32) -> (i32, i32, i32) {
    %c0_i32 = arith.constant 0 : i32
    %c0_i32_0 = arith.constant 0 : i32
    %c0_i32_1 = arith.constant 0 : i32
    return %arg0, %c0_i32, %c0_i32_0 : i32, i32, i32
  }
  func.func @transform_14(%arg0: i32) -> (i32, i32) {
    %c0_i32 = arith.constant 0 : i32
    %c0_i32_0 = arith.constant 0 : i32
    %c0_i32_1 = arith.constant 0 : i32
    return %c0_i32, %c0_i32_0 : i32, i32
  }
}

module attributes {stable_mosaic.version = 11 : i64} {
  func.func @_head_kernel(%arg0: i32, %arg1: memref<2x32xf32, #tpu.memory_space<vmem>>, %arg2: memref<1x32xf32, #tpu.memory_space<vmem>>, %arg3: memref<1x32xf32, #tpu.memory_space<vmem>>, %arg4: memref<32x32xbf16, #tpu.memory_space<vmem>>, %arg5: memref<3x32xf32, #tpu.memory_space<vmem>>, %arg6: memref<1x32xf32, #tpu.memory_space<vmem>>, %arg7: memref<1x32xf32, #tpu.memory_space<vmem>>, %arg8: memref<32x32xbf16, #tpu.memory_space<vmem>>, %arg9: memref<1x1xf32, #tpu.memory_space<vmem>>, %arg10: memref<2x3xf32, #tpu.memory_space<vmem>>) attributes {dimension_semantics = [#tpu.dimension_semantics<arbitrary>], iteration_bounds = array<i64: 1>, scalar_prefetch = 0 : i64, scratch_operands = 0 : i64, tpu.core_type = #tpu.core_type<tc>, window_params = [{pipeline_mode = #tpu.pipeline_mode<synchronous>, transform_indices = @transform_0, window_bounds = array<i64: 2, 32>}, {pipeline_mode = #tpu.pipeline_mode<synchronous>, transform_indices = @transform_1, window_bounds = array<i64: 1, 32>}, {pipeline_mode = #tpu.pipeline_mode<synchronous>, transform_indices = @transform_2, window_bounds = array<i64: 1, 32>}, {pipeline_mode = #tpu.pipeline_mode<synchronous>, transform_indices = @transform_3, window_bounds = array<i64: 32, 32>}, {pipeline_mode = #tpu.pipeline_mode<synchronous>, transform_indices = @transform_4, window_bounds = array<i64: 3, 32>}, {pipeline_mode = #tpu.pipeline_mode<synchronous>, transform_indices = @transform_5, window_bounds = array<i64: 1, 32>}, {pipeline_mode = #tpu.pipeline_mode<synchronous>, transform_indices = @transform_6, window_bounds = array<i64: 1, 32>}, {pipeline_mode = #tpu.pipeline_mode<synchronous>, transform_indices = @transform_7, window_bounds = array<i64: 32, 32>}, {pipeline_mode = #tpu.pipeline_mode<synchronous>, transform_indices = @transform_8, window_bounds = array<i64: 1, 1>}, {pipeline_mode = #tpu.pipeline_mode<synchronous>, transform_indices = @transform_9, window_bounds = array<i64: 2, 3>}]} {
    %c0 = arith.constant 0 : index
    %c0_0 = arith.constant 0 : index
    %0 = vector.load %arg1[%c0, %c0_0] : memref<2x32xf32, #tpu.memory_space<vmem>>, vector<2x32xf32>
    %c0_1 = arith.constant 0 : index
    %c0_2 = arith.constant 0 : index
    %1 = vector.load %arg2[%c0_1, %c0_2] : memref<1x32xf32, #tpu.memory_space<vmem>>, vector<1x32xf32>
    %c0_3 = arith.constant 0 : index
    %c0_4 = arith.constant 0 : index
    %2 = vector.load %arg3[%c0_3, %c0_4] : memref<1x32xf32, #tpu.memory_space<vmem>>, vector<1x32xf32>
    %cst = arith.constant dense<0.000000e+00> : vector<2xf32>
    %3 = vector.multi_reduction <add>, %0, %cst [1] : vector<2x32xf32> to vector<2xf32>
    %4 = vector.shape_cast %3 : vector<2xf32> to vector<2x1xf32>
    %cst_5 = arith.constant 3.200000e+01 : f32
    %5 = vector.broadcast %cst_5 : f32 to vector<2x1xf32>
    %6 = arith.divf %4, %5 : vector<2x1xf32>
    %7 = vector.broadcast %6 : vector<2x1xf32> to vector<2x32xf32>
    %8 = arith.subf %0, %7 : vector<2x32xf32>
    %9 = arith.mulf %8, %8 : vector<2x32xf32>
    %cst_6 = arith.constant dense<0.000000e+00> : vector<2xf32>
    %10 = vector.multi_reduction <add>, %9, %cst_6 [1] : vector<2x32xf32> to vector<2xf32>
    %11 = vector.shape_cast %10 : vector<2xf32> to vector<2x1xf32>
    %cst_7 = arith.constant 3.200000e+01 : f32
    %12 = vector.broadcast %cst_7 : f32 to vector<2x1xf32>
    %13 = arith.divf %11, %12 : vector<2x1xf32>
    %cst_8 = arith.constant 9.99999974E-6 : f32
    %14 = vector.broadcast %cst_8 : f32 to vector<2x1xf32>
    %15 = arith.addf %13, %14 : vector<2x1xf32>
    %16 = math.rsqrt %15 : vector<2x1xf32>
    %17 = vector.broadcast %16 : vector<2x1xf32> to vector<2x32xf32>
    %18 = arith.mulf %8, %17 : vector<2x32xf32>
    %19 = vector.broadcast %1 : vector<1x32xf32> to vector<2x32xf32>
    %20 = arith.mulf %18, %19 : vector<2x32xf32>
    %21 = vector.broadcast %2 : vector<1x32xf32> to vector<2x32xf32>
    %22 = arith.addf %20, %21 : vector<2x32xf32>
    %23 = arith.truncf %22 : vector<2x32xf32> to vector<2x32xbf16>
    %c0_9 = arith.constant 0 : index
    %c0_10 = arith.constant 0 : index
    %24 = vector.load %arg4[%c0_9, %c0_10] : memref<32x32xbf16, #tpu.memory_space<vmem>>, vector<32x32xbf16>
    %cst_11 = arith.constant dense<0.000000e+00> : vector<2x32xf32>
    %25 = tpu.matmul %23, %24, %cst_11 {dimension_numbers = #tpu.dot_dimension_numbers<[1], [0], [0], [1], [0, 0, 1, 1], [], []>} : vector<2x32xbf16>, vector<32x32xbf16>, vector<2x32xf32> -> vector<2x32xf32>
    %c0_12 = arith.constant 0 : index
    %c0_13 = arith.constant 0 : index
    %26 = vector.load %arg5[%c0_12, %c0_13] : memref<3x32xf32, #tpu.memory_space<vmem>>, vector<3x32xf32>
    %c0_14 = arith.constant 0 : index
    %c0_15 = arith.constant 0 : index
    %27 = vector.load %arg6[%c0_14, %c0_15] : memref<1x32xf32, #tpu.memory_space<vmem>>, vector<1x32xf32>
    %c0_16 = arith.constant 0 : index
    %c0_17 = arith.constant 0 : index
    %28 = vector.load %arg7[%c0_16, %c0_17] : memref<1x32xf32, #tpu.memory_space<vmem>>, vector<1x32xf32>
    %cst_18 = arith.constant dense<0.000000e+00> : vector<3xf32>
    %29 = vector.multi_reduction <add>, %26, %cst_18 [1] : vector<3x32xf32> to vector<3xf32>
    %30 = vector.shape_cast %29 : vector<3xf32> to vector<3x1xf32>
    %cst_19 = arith.constant 3.200000e+01 : f32
    %31 = vector.broadcast %cst_19 : f32 to vector<3x1xf32>
    %32 = arith.divf %30, %31 : vector<3x1xf32>
    %33 = vector.broadcast %32 : vector<3x1xf32> to vector<3x32xf32>
    %34 = arith.subf %26, %33 : vector<3x32xf32>
    %35 = arith.mulf %34, %34 : vector<3x32xf32>
    %cst_20 = arith.constant dense<0.000000e+00> : vector<3xf32>
    %36 = vector.multi_reduction <add>, %35, %cst_20 [1] : vector<3x32xf32> to vector<3xf32>
    %37 = vector.shape_cast %36 : vector<3xf32> to vector<3x1xf32>
    %cst_21 = arith.constant 3.200000e+01 : f32
    %38 = vector.broadcast %cst_21 : f32 to vector<3x1xf32>
    %39 = arith.divf %37, %38 : vector<3x1xf32>
    %cst_22 = arith.constant 9.99999974E-6 : f32
    %40 = vector.broadcast %cst_22 : f32 to vector<3x1xf32>
    %41 = arith.addf %39, %40 : vector<3x1xf32>
    %42 = math.rsqrt %41 : vector<3x1xf32>
    %43 = vector.broadcast %42 : vector<3x1xf32> to vector<3x32xf32>
    %44 = arith.mulf %34, %43 : vector<3x32xf32>
    %45 = vector.broadcast %27 : vector<1x32xf32> to vector<3x32xf32>
    %46 = arith.mulf %44, %45 : vector<3x32xf32>
    %47 = vector.broadcast %28 : vector<1x32xf32> to vector<3x32xf32>
    %48 = arith.addf %46, %47 : vector<3x32xf32>
    %49 = arith.truncf %48 : vector<3x32xf32> to vector<3x32xbf16>
    %c0_23 = arith.constant 0 : index
    %c0_24 = arith.constant 0 : index
    %50 = vector.load %arg8[%c0_23, %c0_24] : memref<32x32xbf16, #tpu.memory_space<vmem>>, vector<32x32xbf16>
    %cst_25 = arith.constant dense<0.000000e+00> : vector<3x32xf32>
    %51 = tpu.matmul %49, %50, %cst_25 {dimension_numbers = #tpu.dot_dimension_numbers<[1], [0], [0], [1], [0, 0, 1, 1], [], []>} : vector<3x32xbf16>, vector<32x32xbf16>, vector<3x32xf32> -> vector<3x32xf32>
    %52 = arith.mulf %25, %25 : vector<2x32xf32>
    %cst_26 = arith.constant dense<0.000000e+00> : vector<2xf32>
    %53 = vector.multi_reduction <add>, %52, %cst_26 [1] : vector<2x32xf32> to vector<2xf32>
    %54 = vector.shape_cast %53 : vector<2xf32> to vector<2x1xf32>
    %cst_27 = arith.constant 9.99999996E-13 : f32
    %55 = vector.broadcast %cst_27 : f32 to vector<2x1xf32>
    %56 = arith.addf %54, %55 : vector<2x1xf32>
    %57 = math.rsqrt %56 : vector<2x1xf32>
    %58 = vector.broadcast %57 : vector<2x1xf32> to vector<2x32xf32>
    %59 = arith.mulf %25, %58 : vector<2x32xf32>
    %60 = arith.mulf %51, %51 : vector<3x32xf32>
    %cst_28 = arith.constant dense<0.000000e+00> : vector<3xf32>
    %61 = vector.multi_reduction <add>, %60, %cst_28 [1] : vector<3x32xf32> to vector<3xf32>
    %62 = vector.shape_cast %61 : vector<3xf32> to vector<3x1xf32>
    %cst_29 = arith.constant 9.99999996E-13 : f32
    %63 = vector.broadcast %cst_29 : f32 to vector<3x1xf32>
    %64 = arith.addf %62, %63 : vector<3x1xf32>
    %65 = math.rsqrt %64 : vector<3x1xf32>
    %66 = vector.broadcast %65 : vector<3x1xf32> to vector<3x32xf32>
    %67 = arith.mulf %51, %66 : vector<3x32xf32>
    %c0_30 = arith.constant 0 : index
    %c0_31 = arith.constant 0 : index
    %68 = vector.load %arg9[%c0_30, %c0_31] : memref<1x1xf32, #tpu.memory_space<vmem>>, vector<1x1xf32>
    %69 = vector.extract %68[0, 0] : f32 from vector<1x1xf32>
    %70 = math.exp %69 : f32
    %cst_32 = arith.constant dense<0.000000e+00> : vector<2x3xf32>
    %71 = tpu.matmul %59, %67, %cst_32 {dimension_numbers = #tpu.dot_dimension_numbers<[1], [1], [0], [0], [0, 0, 1, 0], [], []>} : vector<2x32xf32>, vector<3x32xf32>, vector<2x3xf32> -> vector<2x3xf32>
    %72 = vector.broadcast %70 : f32 to vector<2x3xf32>
    %73 = arith.mulf %72, %71 : vector<2x3xf32>
    %c0_33 = arith.constant 0 : index
    %c0_34 = arith.constant 0 : index
    %74 = vector.load %arg10[%c0_33, %c0_34] : memref<2x3xf32, #tpu.memory_space<vmem>>, vector<2x3xf32>
    tpu.vector_store %arg10[%c0_33, %c0_34], %73 {strides = array<i32>} : memref<2x3xf32, #tpu.memory_space<vmem>>, vector<2x3xf32>,
    return
  }
  func.func @transform_0(%arg0: i32) -> (i32, i32) {
    %c0_i32 = arith.constant 0 : i32
    %c0_i32_0 = arith.constant 0 : i32
    %c0_i32_1 = arith.constant 0 : i32
    return %c0_i32, %c0_i32_0 : i32, i32
  }
  func.func @transform_1(%arg0: i32) -> (i32, i32) {
    %c0_i32 = arith.constant 0 : i32
    %c0_i32_0 = arith.constant 0 : i32
    %c0_i32_1 = arith.constant 0 : i32
    return %c0_i32, %c0_i32_0 : i32, i32
  }
  func.func @transform_2(%arg0: i32) -> (i32, i32) {
    %c0_i32 = arith.constant 0 : i32
    %c0_i32_0 = arith.constant 0 : i32
    %c0_i32_1 = arith.constant 0 : i32
    return %c0_i32, %c0_i32_0 : i32, i32
  }
  func.func @transform_3(%arg0: i32) -> (i32, i32) {
    %c0_i32 = arith.constant 0 : i32
    %c0_i32_0 = arith.constant 0 : i32
    %c0_i32_1 = arith.constant 0 : i32
    return %c0_i32, %c0_i32_0 : i32, i32
  }
  func.func @transform_4(%arg0: i32) -> (i32, i32) {
    %c0_i32 = arith.constant 0 : i32
    %c0_i32_0 = arith.constant 0 : i32
    %c0_i32_1 = arith.constant 0 : i32
    return %c0_i32, %c0_i32_0 : i32, i32
  }
  func.func @transform_5(%arg0: i32) -> (i32, i32) {
    %c0_i32 = arith.constant 0 : i32
    %c0_i32_0 = arith.constant 0 : i32
    %c0_i32_1 = arith.constant 0 : i32
    return %c0_i32, %c0_i32_0 : i32, i32
  }
  func.func @transform_6(%arg0: i32) -> (i32, i32) {
    %c0_i32 = arith.constant 0 : i32
    %c0_i32_0 = arith.constant 0 : i32
    %c0_i32_1 = arith.constant 0 : i32
    return %c0_i32, %c0_i32_0 : i32, i32
  }
  func.func @transform_7(%arg0: i32) -> (i32, i32) {
    %c0_i32 = arith.constant 0 : i32
    %c0_i32_0 = arith.constant 0 : i32
    %c0_i32_1 = arith.constant 0 : i32
    return %c0_i32, %c0_i32_0 : i32, i32
  }
  func.func @transform_8(%arg0: i32) -> (i32, i32) {
    %c0_i32 = arith.constant 0 : i32
    %c0_i32_0 = arith.constant 0 : i32
    %c0_i32_1 = arith.constant 0 : i32
    return %c0_i32, %c0_i32_0 : i32, i32
  }
  func.func @transform_9(%arg0: i32) -> (i32, i32) {
    %c0_i32 = arith.constant 0 : i32
    %c0_i32_0 = arith.constant 0 : i32
    %c0_i32_1 = arith.constant 0 : i32
    return %c0_i32, %c0_i32_0 : i32, i32
  }
}

</mosaic_0001>

<bundles_post_ra>
// kernel: custom_clip_forward.5
= control target key start
LH: loop header
LB: loop body
LE: loop exit
PB: predicated region body
PF: predicated region fallthrough
CT: control target
= control target key end

     0   :  { %vm131_vm0 = vcmask 256000   ;;  %vm38_vm1 = vcmask 254976   ;;  %v384_v14 = vmov 0.0   ;;  %vm385_vm2 = vmmov 0   ;;  %s485_s4 = inlined_call_operand.vmem [shape: f32[3,32], index: 4, kind: input, shape index: {}]   ;;  %s486_s0 = inlined_call_operand.vmem [shape: f32[2,32], index: 0, kind: input, shape index: {}]   ;;  %s487_s7 = inlined_call_operand.vmem [shape: bf16[32,32], index: 7, kind: input, shape index: {}]   ;;  %s488_s3 = inlined_call_operand.vmem [shape: bf16[32,32], index: 3, kind: input, shape index: {}]   ;;  %s489_s5 = inlined_call_operand.vmem [shape: f32[1,32], index: 5, kind: input, shape index: {}]   ;;  %s490_s6 = inlined_call_operand.vmem [shape: f32[1,32], index: 6, kind: input, shape index: {}]   ;;  %s491_s1 = inlined_call_operand.vmem [shape: f32[1,32], index: 1, kind: input, shape index: {}]   ;;  %s492_s2 = inlined_call_operand.vmem [shape: f32[1,32], index: 2, kind: input, shape index: {}]   ;;  %s493_s8 = inlined_call_operand.<no memory space> [shape: f32[1,1], index: 8, kind: input, shape index: {}]   ;;  %s494_s9 = inlined_call_operand.vmem [shape: f32[2,3], index: 9, kind: output, shape index: {}]  }
   0x1   :  { %v128_v0 = vld [vmem:[%s485_s4] sm:$0x7]  ;;  %351 = vmatprep.subr.bf16.mxu1 %v384_v14  ;;  %343 = vmatprep.subr.bf16.mxu0 %v384_v14  ;;  %v372_v17 = vld [vmem:[%s487_s7 + $0x8] sm:$0xff]   ;;  %vm84_vm3 = vcmask 261120   ;;  %v14_v51 = vstv %s493_s8  ;;  %vm317_vm4 = vcmask 17408  }
   0x2   :  { %v35_v1 = vld [vmem:[%s486_s0] sm:$0x3]  ;;  %v132_v2 = vsel %vm131_vm0, %v128_v0, 0.0  ;;  %355 = vmatprep.mubr.msk.bf16.mxu1 %vm385_vm2, %v384_v14  ;;  %347 = vmatprep.mubr.msk.bf16.mxu0 %vm385_vm2, %v384_v14  ;;  %v373_v18 = vld [vmem:[%s488_s3 + $0x8] sm:$0xff]   ;;  %15 = vst [vmem:[#allocation2] sm:$0x1] %v14_v51 }
   0x3   :  { %133 = vadd.xlane.f32.xlu0 %v132_v2  ;;  %v39_v3 = vsel %vm38_vm1, %v35_v1, 0.0  ;;  %v370_v15 = vld [vmem:[%s487_s7] sm:$0xff]  }
   0x4   :  { %v371_v16 = vld [vmem:[%s488_s3] sm:$0xff]   ;;  %352 = vmatpush3.bf16.msra.mxu1 %v370_v15 }
   0x5   :  { %353 = vmatprep.subr.bf16.mxu1 %v384_v14  ;;  %344 = vmatpush3.bf16.msra.mxu0 %v371_v16  ;;  %v328_v26 = vld [vmem:[%s489_s5] ss:$0 sm:$0xff] }
   0x6   :  { %345 = vmatprep.subr.bf16.mxu0 %v384_v14  ;;  %v329_v28 = vld [vmem:[%s490_s6] ss:$0 sm:$0xff] }
   0x7   :  { %40 = vadd.xlane.f32.xlu0 %v39_v3  ;;  %v323_v31 = vld [vmem:[%s491_s1] ss:$0 sm:$0xff] }
   0x8   :  { %354 = vmatpush3.bf16.msra.mxu1 %v372_v17  ;;  %v324_v34 = vld [vmem:[%s492_s2] ss:$0 sm:$0xff] }
   0x9   :  { %346 = vmatpush3.bf16.msra.mxu0 %v373_v18  ;;  %v233_v52 = vld [vmem:[#allocation2] sm:$0x1] }
   0xa   :  { %359 = vmatprep.subr.mxu0 %v384_v14  ;;  %364 = vpush %v233_v52 }
  0x3b   :  { %s365_s5 = spop %364 }
  0x3c   :  { %v235_v53 = vstv %s365_s5 }
  0x3d   :  { %v236_v54 = vmul.f32 1.442695, %v235_v53 }
  0x90   :  { %v134_v4 = vpop.xlane.xlu0 %133 }
  0x91   :  { %v135_v5 = vmul.f32 0.03125, %v134_v4 }
  0x93   :  { %v136_v6 = vsub.f32 %v128_v0, %v135_v5 }
  0x94   :  { %v41_v7 = vpop.xlane.xlu0 %40 }
  0x95   :  { %v43_v8 = vmul.f32 0.03125, %v41_v7  ;;  %v137_v9 = vmul.f32 %v136_v6, %v136_v6 }
  0x97   :  { %v44_v10 = vsub.f32 %v35_v1, %v43_v8  ;;  %v138_v11 = vsel %vm131_vm0, %v137_v9, 0.0 }
  0x98   :  { %139 = vadd.xlane.f32.xlu1 %v138_v11 }
  0x99   :  { %v45_v12 = vmul.f32 %v44_v10, %v44_v10 }
  0x9b   :  { %v46_v13 = vsel %vm38_vm1, %v45_v12, 0.0 }
  0x9c   :  { %47 = vadd.xlane.f32.xlu1 %v46_v13 }
 0x125   :  { %v140_v19 = vpop.xlane.xlu1 %139 }
 0x126   :  { %v141_v20 = vmul.f32 0.03125, %v140_v19 }
 0x128   :  { %v142_v21 = vadd.f32 1e-05, %v141_v20 }
 0x129   :  { %v48_v22 = vpop.xlane.xlu1 %47 }
 0x12a   :  { %374 = vrsqrt.f32 %v142_v21  ;;  %v49_v23 = vmul.f32 0.03125, %v48_v22 }
 0x12c   :  { %v50_v24 = vadd.f32 1e-05, %v49_v23 }
 0x12e   :  { %376 = vrsqrt.f32 %v50_v24 }
 0x12f   :  { %378 = vpow2.f32 %v236_v54 }
 0x134   :  { %v375_v25 = vpop.eup %374 }
 0x135   :  { %v144_v27 = vmul.f32 %v375_v25, %v136_v6 }
 0x137   :  { %v151_v29 = vmul.f32 %v328_v26, %v144_v27 }
 0x138   :  { %v377_v30 = vpop.eup %376 }
 0x139   :  { %v158_v32 = vadd.f32 %v329_v28, %v151_v29  ;;  %v52_v33 = vmul.f32 %v377_v30, %v44_v10  ;;  %v379_v55 = vpop.eup %378 }
 0x13a   :  { %366 = vpush %v379_v55 }
 0x13b   :  { %v159_v35 = vpack.c.bf16 %v158_v32, %v158_v32  ;;  %v59_v36 = vmul.f32 %v323_v31, %v52_v33 }
 0x13d   :  { %356 = vmatmul.mubr.msk.bf16.vlgmr.msra.gmra.mrb[0].mxu1 %vm84_vm3, %v159_v35  ;;  %v66_v37 = vadd.f32 %v324_v34, %v59_v36 }
 0x13f   :  { %v67_v38 = vpack.c.bf16 %v66_v37, %v66_v37 }
 0x141   :  { %348 = vmatmul.mubr.msk.bf16.vlgmr.msra.gmra.mrb[0].mxu0 %vm84_vm3, %v67_v38 }
 0x142   :  { %361 = vmatprep.mubr.msk.f32.mxu0 %vm385_vm2, %v384_v14 }
 0x16b   :  { %s367_s6 = spop %366 }
 0x16c   :  { %v315_v0 = vstv %s367_s6 }
 0x210   :  { %v213_v39 = vpop.f32.mrb[0].mxu1 }
 0x211   :  { %v226_v40 = vmul.f32 %v213_v39, %v213_v39  ;;  %v357_v41 = vpop.f32.mrb[1].mxu1 }
 0x212   :  { %v216_v42 = vpop.f32.mrb[2].mxu1 }
 0x213   :  { %v358_v43 = vpop.f32.mrb[3].mxu1  ;;  %v227_v44 = vsel %vm131_vm0, %v226_v40, 0.0 }
 0x214   :  { %228 = vadd.xlane.f32.xlu0 %v227_v44  ;;  %v122_v45 = vpop.f32.mrb[0].mxu0 }
 0x215   :  { %v219_v46 = vmul.f32 %v122_v45, %v122_v45  ;;  %v349_v47 = vpop.f32.mrb[1].mxu0 }
 0x216   :  { %v125_v48 = vpop.f32.mrb[2].mxu0 }
 0x217   :  { %v350_v49 = vpop.f32.mrb[3].mxu0  ;;  %v220_v50 = vsel %vm38_vm1, %v219_v46, 0.0 }
 0x218   :  { %221 = vadd.xlane.f32.xlu1 %v220_v50 }
 0x2a1   :  { %v229_v56 = vpop.xlane.xlu0 %228 }
 0x2a2   :  { %v230_v57 = vadd.f32 1e-12, %v229_v56 }
 0x2a4   :  { %380 = vrsqrt.f32 %v230_v57 }
 0x2a5   :  { %v222_v58 = vpop.xlane.xlu1 %221 }
 0x2a6   :  { %v223_v59 = vadd.f32 1e-12, %v222_v58 }
 0x2a8   :  { %382 = vrsqrt.f32 %v223_v59 }
 0x2ae   :  { %v381_v60 = vpop.eup %380 }
 0x2af   :  { %v232_v61 = vmul.f32 %v381_v60, %v213_v39 }
 0x2b1   :  { %360 = vmatpush3.xpose.msk.msra.mxu0 %vm84_vm3, %v232_v61 }
 0x2b2   :  { %v383_v62 = vpop.eup %382 }
 0x2b3   :  { %v225_v63 = vmul.f32 %v383_v62, %v122_v45 }
 0x2b5   :  { %362 = vmatmul.mubr.msk.f32.vlgmr.msra.gmra.mrb[4].mxu0 %vm84_vm3, %v225_v63 }
 0x388   :  { %v311_v1 = vpop.f32.mrb[4].mxu0 }
 0x389   :  { %v316_v2 = vmul.f32 %v315_v0, %v311_v1  ;;  %v363_v3 = vpop.f32.mrb[5].mxu0 }
 0x38b   :  { %318 = vst.msk [vmem:[%s494_s9] sm:$0x3] %vm317_vm4, %v316_v2 }

// kernel: custom_clip_forward.4
= control target key start
LH: loop header
LB: loop body
LE: loop exit
PB: predicated region body
PF: predicated region fallthrough
CT: control target
= control target key end

     0   :  { %s2201_s29 = smov 0   ;;  %s2465_s0 = inlined_call_operand.vmem [shape: f32[24,32], index: 0, kind: input, shape index: {}]   ;;  %s2466_s1 = inlined_call_operand.vmem [shape: f32[3,24], index: 1, kind: input, shape index: {}]   ;;  %s2467_s2 = inlined_call_operand.vmem [shape: f32[2,1,32], index: 2, kind: input, shape index: {}]   ;;  %s2468_s3 = inlined_call_operand.vmem [shape: f32[2,1,32], index: 3, kind: input, shape index: {}]   ;;  %s2469_s4 = inlined_call_operand.vmem [shape: bf16[2,32,96], index: 4, kind: input, shape index: {}]   ;;  %s2470_s5 = inlined_call_operand.vmem [shape: f32[2,1,96], index: 5, kind: input, shape index: {}]   ;;  %s2471_s6 = inlined_call_operand.vmem [shape: bf16[2,32,32], index: 6, kind: input, shape index: {}]   ;;  %s2472_s7 = inlined_call_operand.vmem [shape: f32[2,1,32], index: 7, kind: input, shape index: {}]   ;;  %s2473_s8 = inlined_call_operand.vmem [shape: f32[2,1,32], index: 8, kind: input, shape index: {}]   ;;  %s2474_s9 = inlined_call_operand.vmem [shape: f32[2,1,32], index: 9, kind: input, shape index: {}]   ;;  %s2475_s10 = inlined_call_operand.vmem [shape: bf16[2,32,128], index: 10, kind: input, shape index: {}]   ;;  %s2476_s11 = inlined_call_operand.vmem [shape: f32[2,1,128], index: 11, kind: input, shape index: {}]   ;;  %s2477_s12 = inlined_call_operand.vmem [shape: bf16[2,128,32], index: 12, kind: input, shape index: {}]   ;;  %s2478_s13 = inlined_call_operand.vmem [shape: f32[2,1,32], index: 13, kind: input, shape index: {}]   ;;  %s2479_s14 = inlined_call_operand.vmem [shape: f32[3,32], index: 14, kind: output, shape index: {}]  }
   0x1   :  { %2482 = sst [smem:[#allocation5_spill]] %s2466_s1 }
   0x2   :  { %2483 = sst [smem:[#allocation6_spill]] %s2469_s4 }
   0x3   :  { %2484 = sst [smem:[#allocation7_spill]] %s2471_s6 }
   0x4   :  { %2485 = sst [smem:[#allocation8_spill]] %s2479_s14 }
   0x5 LB: > { %2486 = sst [smem:[#allocation3_spill]] %s2116_s29  ;;  %s2207_s30 = sadd.s32 4294967295, %s2116_s29   ;;  %s2116_s29 = sphi %s2201_s29, %s24_s29  }
   0x6   : > { %p1831_p0 = scmp.ge.s32.totalorder %s2116_s29, 1  ;;  %p501_p1 = scmp.lt.s32.totalorder %s2116_s29, 3 }
   0x8   : > { %p502_p2 = pnand %p1831_p0, %p501_p1 }
   0xa   : > { %505 = sbr.rel (%p502_p2) target bundleno = 2749 (0xabd), region = 76 }
  0x11   : > { %p581_p3 = scmp.lt.s32.totalorder %s2207_s30, 1  ;;  %s2487_s4 = sld [smem:[#allocation6_spill]] }
  0x12   : > { %s2488_s6 = sld [smem:[#allocation7_spill]]  ;;  %p1840_p4 = scmp.ne.s32.totalorder %s2207_s30, 0 }
  0x13   : > { %s2213_s15 = scalar_select %p581_p3, %s2207_s30, 1 }
  0x14   : > { %629 = sbr.rel (%p1840_p4) target bundleno = 27 (0x1b), region = 80  ;;  %v630_v0 = vld [vmem:[%s2465_s0] sm:$0xff] (!%p1840_p4)  ;;  %vm633_vm0 = vcmask (!%p1840_p4), 261120   ;;  %v631_v1 = vld [vmem:[%s2465_s0 + $0x8] sm:$0xff] (!%p1840_p4)  ;;  %v632_v2 = vld [vmem:[%s2465_s0 + $0x10] sm:$0xff] (!%p1840_p4) }
  0x15   : > { %s1886_s22 = sshll.u32 %s2213_s15, 4  ;;  %s605_s1 = scalar_lea.vmem %s2473_s8, %s2213_s15  ;;  %634 = vst.msk [vmem:[#allocation2] sm:$0xff] (!%p1840_p4), %vm633_vm0, %v630_v0  ;;  %635 = vst.msk [vmem:[#allocation2 + $0x8] sm:$0xff] (!%p1840_p4), %vm633_vm0, %v631_v1 }
  0x16   : > { %s608_s25 = scalar_lea.vmem %s2474_s9, %s2213_s15  ;;  %s624_s23 = scalar_lea.vmem %s2478_s13, %s2213_s15  ;;  %636 = vst.msk [vmem:[#allocation2 + $0x10] sm:$0xff] (!%p1840_p4), %vm633_vm0, %v632_v2 }
  0x17   : > { %s2231_s28 = scalar_lea.vmem %s2487_s4, %s1886_s22  ;;  %s2253_s4 = scalar_lea.vmem %s2475_s10, %s1886_s22 }
  0x18   : > { %s2236_s29 = scalar_lea.vmem %s2488_s6, %s1886_s22  ;;  %s616_s6 = scalar_lea.vmem %s2476_s11, %s2213_s15 }
  0x19   : > { %2489 = sst [smem:[#allocation4_spill]] %s2236_s29  ;;  %s1889_s29 = sshll.u32 %s2213_s15, 6 }
  0x1a   : > { %s2263_s19 = scalar_lea.vmem %s2477_s12, %s1889_s29 }
  0x1b PF: > { %vm676_vm1 = vcmask 261120   ;;  %v2048_v24 = vld [vmem:[%s2231_s28] sm:$0xff]   ;;  %v2049_v25 = vld [vmem:[%s2231_s28 + $0x8] sm:$0xff]   ;;  %s2490_s14 = scalar_lea.vmem %s2467_s2, %s2213_s15  ;;  %s2491_s20 = scalar_lea.vmem %s2468_s3, %s2213_s15  ;;  %vm880_vm2 = vcmask 130048   ;;  %vm944_vm10 = vcmask 195584  }
  0x1c   : > { %v2279_v3 = vld [vmem:[#allocation2] sm:$0xff]  ;;  %v2283_v5 = vld [vmem:[#allocation2 + $0x8] sm:$0xff]  ;;  %1934 = vmatprep.subr.bf16.mxu0 %v2048_v24  ;;  %s2492_s26 = scalar_lea.vmem %s2470_s5, %s2213_s15  ;;  %s2118_s27 = smov 96  }
  0x1d   : > { %v2281_v4 = vld [vmem:[#allocation2 + $0x10] sm:$0xff]  ;;  %v677_v6 = vsel %vm676_vm1, %v2279_v3, 0.0  ;;  %v680_v8 = vsel %vm676_vm1, %v2283_v5, 0.0  ;;  %1935 = vmatpush3.bf16.msra.mxu0 %v2048_v24  ;;  %v1841_v37 = vld [vmem:[%s2490_s14] ss:$0 sm:$0xff]  ;;  %s2119_s16 = smov 80  }
  0x1e   : > { %v683_v7 = vsel %vm676_vm1, %v2281_v4, 0.0  ;;  %678 = vadd.xlane.f32.xlu0 %v677_v6  ;;  %1936 = vmatprep.subr.bf16.mxu0 %v2049_v25  ;;  %v1842_v43 = vld [vmem:[%s2491_s20] ss:$0 sm:$0xff]  ;;  %s2120_s17 = smov 112   ;;  %s2121_s29 = smov 48  }
  0x1f   : > { %684 = vadd.xlane.f32.xlu1 %v683_v7  ;;  %v1843_v51 = vld [vmem:[%s2492_s26] ss:$0 sm:$0xff]  ;;  %s2122_s28 = smov 64   ;;  %s2497_s14 = sld [smem:[#allocation4_spill]] }
  0x20   : > { %s2498_s20 = scalar_lea.vmem %s2472_s7, %s2213_s15  ;;  %p1882_p5 = scmp.ne.s32.totalorder %s2207_s30, 1 }
  0x21   : > { %1937 = vmatpush3.bf16.msra.mxu0 %v2049_v25 }
  0x22   : > { %681 = vadd.xlane.f32.xlu0 %v680_v8 }
  0xab   : > { %v679_v9 = vpop.xlane.xlu0 %678 }
  0xac   : > { %v685_v10 = vpop.xlane.xlu1 %684  ;;  %v687_v11 = vmul.f32 0.03125, %v679_v9 }
  0xad   : > { %v689_v12 = vmul.f32 0.03125, %v685_v10  ;;  %v809_v10 = vlaneseq }
  0xae   : > { %v690_v13 = vsub.f32 %v2279_v3, %v687_v11 }
  0xaf   : > { %v692_v14 = vsub.f32 %v2281_v4, %v689_v12  ;;  %v682_v15 = vpop.xlane.xlu0 %681  ;;  %v810_v11 = vshrl.u32 %v809_v10, 7  ;;  %v814_v12 = vand.u32 127, %v809_v10 }
  0xb0   : > { %v688_v16 = vmul.f32 0.03125, %v682_v15  ;;  %v693_v17 = vmul.f32 %v690_v13, %v690_v13 }
  0xb1   : > { %v695_v18 = vmul.f32 %v692_v14, %v692_v14  ;;  %vm839_vm3 = vcmp.ge.s32.totalorder %v814_v12, 8  ;;  %vm840_vm4 = vcmp.lt.s32.totalorder %v814_v12, 16  ;;  %vm825_vm5 = vcmp.lt.s32.totalorder %v814_v12, 8 }
  0xb2   : > { %v691_v19 = vsub.f32 %v2283_v5, %v688_v16  ;;  %v696_v20 = vsel %vm676_vm1, %v693_v17, 0.0  ;;  %vm866_vm6 = vcmp.ge.s32.totalorder %v810_v11, %v814_v12  ;;  %vm841_vm7 = vmand %vm839_vm3, %vm840_vm4  ;;  %v812_v24 = vadd.s32 16, %v810_v11 }
  0xb3   : > { %697 = vadd.xlane.f32.xlu1 %v696_v20  ;;  %v702_v21 = vsel %vm676_vm1, %v695_v18, 0.0  ;;  %vm2340_vm9 = vmand %vm825_vm5, %vm866_vm6  ;;  %vm854_vm12 = vcmp.ge.s32.totalorder %v814_v12, 16  ;;  %vm855_vm13 = vcmp.lt.s32.totalorder %v814_v12, 24  ;;  %vm991_vm3 = vcmask 1043456  }
  0xb4   : > { %v694_v22 = vmul.f32 %v691_v19, %v691_v19  ;;  %vm856_vm14 = vmand %vm854_vm12, %vm855_vm13  ;;  %vm868_vm15 = vcmp.ge.s32.totalorder %v812_v24, %v814_v12  ;;  %vm1690_vm4 = vcmask (!%p1882_p5), 256000  }
  0xb5   : > { %vm871_vm0 = vmand %vm856_vm14, %vm868_vm15 }
  0xb6   : > { %v699_v23 = vsel %vm676_vm1, %v694_v22, 0.0 }
  0xb7   : > { %703 = vadd.xlane.f32.xlu1 %v702_v21  ;;  %700 = vadd.xlane.f32.xlu0 %v699_v23 }
 0x140   : > { %v698_v26 = vpop.xlane.xlu1 %697 }
 0x141   : > { %v705_v27 = vmul.f32 0.03125, %v698_v26 }
 0x143   : > { %v708_v28 = vadd.f32 1e-05, %v705_v27 }
 0x144   : > { %v704_v29 = vpop.xlane.xlu1 %703  ;;  %v701_v30 = vpop.xlane.xlu0 %700 }
 0x145   : > { %2062 = vrsqrt.f32 %v708_v28  ;;  %v707_v31 = vmul.f32 0.03125, %v704_v29  ;;  %v706_v32 = vmul.f32 0.03125, %v701_v30 }
 0x147   : > { %v710_v33 = vadd.f32 1e-05, %v707_v31  ;;  %v709_v34 = vadd.f32 1e-05, %v706_v32 }
 0x149   : > { %2064 = vrsqrt.f32 %v710_v33 }
 0x14a   : > { %2066 = vrsqrt.f32 %v709_v34 }
 0x14f   : > { %v2063_v35 = vpop.eup %2062 }
 0x150   : > { %v714_v36 = vmul.f32 %v2063_v35, %v690_v13  ;;  %v811_v13 = vadd.s32 8, %v810_v11 }
 0x152   : > { %v723_v42 = vmul.f32 %v1841_v37, %v714_v36  ;;  %vm867_vm8 = vcmp.ge.s32.totalorder %v811_v13, %v814_v12 }
 0x153   : > { %v2065_v38 = vpop.eup %2064  ;;  %vm2344_vm11 = vmand %vm841_vm7, %vm867_vm8 }
 0x154   : > { %v2067_v39 = vpop.eup %2066  ;;  %v716_v40 = vmul.f32 %v2065_v38, %v692_v14  ;;  %v732_v47 = vadd.f32 %v1842_v43, %v723_v42 }
 0x155   : > { %v715_v41 = vmul.f32 %v2067_v39, %v691_v19 }
 0x156   : > { %v725_v44 = vmul.f32 %v1841_v37, %v716_v40 }
 0x157   : > { %v724_v45 = vmul.f32 %v1841_v37, %v715_v41 }
 0x158   : > { %v734_v46 = vadd.f32 %v1842_v43, %v725_v44 }
 0x159   : > { %v733_v48 = vadd.f32 %v1842_v43, %v724_v45 }
 0x15a   : > { %v736_v49 = vpack.c.bf16 %v734_v46, %v734_v46 }
 0x15b   : > { %v735_v50 = vpack.c.bf16 %v733_v48, %v732_v47 }
 0x15d   : > { %1938 = vmatprep.mubr.msk.bf16.mxu0 %vm676_vm1, %v735_v50 }
 0x15e   : > { %1939 = vmatmul.mubr.msk.bf16.vlgmr.msra.gmra.mrb[0].mxu0 %vm676_vm1, %v736_v49 }
 0x231   : > { %v1940_v52 = vpop.f32.mrb[0].mxu0 }
 0x232   : > { %v804_v53 = vadd.f32 %v1940_v52, %v1843_v51  ;;  %v795_v54 = vpop.f32.mrb[1].mxu0 }
 0x233   : > { %v1941_v55 = vpop.f32.mrb[2].mxu0  ;;  %v796_v58 = vadd.f32 %v1843_v51, %v795_v54 }
 0x234   : > { %v2316_v56 = vpack.c.bf16 %v804_v53, %v804_v53  ;;  %v798_v57 = vpop.f32.mrb[3].mxu0 }
 0x235   : > { %v799_v59 = vadd.f32 %v1843_v51, %v798_v57 }
 0x236   : > { %878 = vrot.lane.b32.xlu1 %v2316_v56, %s2118_s27 }
 0x237   : > { %v2319_v60 = vpack.c.bf16 %v799_v59, %v796_v58 }
 0x239   : > { %876 = vrot.lane.b32.xlu0 %v2319_v60, %s2118_s27  ;;  %1946 = vmatprep.mubr.msk.bf16.mxu1 %vm880_vm2, %v2319_v60  ;;  %s2499_s27 = sld [smem:[#allocation5_spill]] (!%p1882_p5) }
 0x23a   : > { %1049 = vrot.lane.b32.xlu1 %v2319_v60, %s2119_s16 }
 0x23d   : > { %1045 = vrot.lane.b32.xlu0 %v2319_v60, %s2120_s17 }
 0x23e   : > { %1051 = vrot.lane.b32.xlu1 %v2316_v56, %s2119_s16 }
 0x242   : > { %1047 = vrot.lane.b32.xlu1 %v2316_v56, %s2120_s17  ;;  %s2500_s17 = sld [smem:[#allocation8_spill]] (!%p1882_p5) }
 0x2a8   : > { %v879_v63 = vpop.permute.xlu1 %878 }
 0x2a9   : > { %v891_v0 = vsel %vm880_vm2, %v879_v63, 0 }
 0x2ab   : > { %v877_v61 = vpop.permute.xlu0 %876 }
 0x2ac   : > { %2026 = vmatprep.subr.msk.bf16.mxu1 %vm880_vm2, %v877_v61  ;;  %v888_v62 = vsel %vm880_vm2, %v877_v61, 0  ;;  %v1050_v1 = vpop.permute.xlu1 %1049 }
 0x2ad   : > { %1943 = vmatpush3.bf16.xpose.msra.mxu1 %v888_v62  ;;  %v1060_v2 = vsel %vm880_vm2, %v1050_v1, 0 }
 0x2ae   : > { %2027 = vmatprep.subr.msk.bf16.mxu1 %vm880_vm2, %v879_v63 }
 0x2af   : > { %v1046_v6 = vpop.permute.xlu0 %1045 }
 0x2b0   : > { %v1052_v7 = vpop.permute.xlu1 %1051 }
 0x2b1   : > { %v1063_v8 = vsel %vm880_vm2, %v1052_v7, 0 }
 0x2b4   : > { %v1048_v9 = vpop.permute.xlu1 %1047 }
 0x2b5   : > { %1945 = vmatpush3.bf16.xpose.msra.mxu1 %v891_v0 }
 0x2b6   : > { %2029 = vmatprep.subr.msk.bf16.mxu1 %vm880_vm2, %v1050_v1 }
 0x2bc   : > { %1947 = vmatmul.mubr.msk.bf16.vlgmr.msra.gmra.mrb[0].mxu1 %vm880_vm2, %v2316_v56 }
 0x2bd   : > { %1959 = vmatpush3.bf16.xpose.msra.mxu1 %v1060_v2  ;;  %1962 = vmatprep.mubr.msk.bf16.mxu1 %vm880_vm2, %v1046_v6 }
 0x2be   : > { %2030 = vmatprep.subr.msk.bf16.mxu1 %vm880_vm2, %v1052_v7 }
 0x2c5   : > { %1961 = vmatpush3.bf16.xpose.msra.mxu1 %v1063_v8 }
 0x2cc   : > { %1963 = vmatmul.mubr.msk.bf16.vlgmr.msra.gmra.mrb[4].mxu1 %vm880_vm2, %v1048_v9 }
 0x38f   : > { %v1948_v15 = vpop.f32.mrb[0].mxu1 }
 0x390   : > { %v927_v16 = vpop.f32.mrb[1].mxu1  ;;  %v943_v35 = vsel %vm871_vm0, %v1948_v15, -1e+30 }
 0x391   : > { %v941_v18 = vsel %vm2340_vm9, %v927_v16, -1e+30  ;;  %v1949_v19 = vpop.f32.mrb[2].mxu1  ;;  %v951_v36 = vsel %vm944_vm10, %v943_v35, -inf }
 0x392   : > { %v930_v20 = vpop.f32.mrb[3].mxu1  ;;  %v945_v21 = vsel %vm944_vm10, %v941_v18, -inf }
 0x393   : > { %v942_v22 = vsel %vm2344_vm11, %v930_v20, -1e+30  ;;  %946 = vmax.xlane.f32.xlu0 %v945_v21 }
 0x394   : > { %v948_v23 = vsel %vm944_vm10, %v942_v22, -inf }
 0x395   : > { %949 = vmax.xlane.f32.xlu1 %v948_v23 }
 0x39f   : > { %v1964_v25 = vpop.f32.mrb[4].mxu1 }
 0x3a0   : > { %v1115_v26 = vsel %vm871_vm0, %v1964_v25, -1e+30  ;;  %v1099_v27 = vpop.f32.mrb[5].mxu1 }
 0x3a1   : > { %v1113_v28 = vsel %vm2340_vm9, %v1099_v27, -1e+30  ;;  %v1965_v29 = vpop.f32.mrb[6].mxu1  ;;  %v1122_v30 = vsel %vm944_vm10, %v1115_v26, -inf }
 0x3a2   : > { %v1102_v31 = vpop.f32.mrb[7].mxu1  ;;  %1123 = vmax.xlane.f32.xlu1 %v1122_v30  ;;  %v1116_v32 = vsel %vm944_vm10, %v1113_v28, -inf }
 0x3a3   : > { %v1114_v33 = vsel %vm2344_vm11, %v1102_v31, -1e+30  ;;  %1117 = vmax.xlane.f32.xlu0 %v1116_v32 }
 0x3a4   : > { %v1119_v34 = vsel %vm944_vm10, %v1114_v33, -inf }
 0x3a7   : > { %1120 = vmax.xlane.f32.xlu0 %v1119_v34  ;;  %v2050_v34 = vld [vmem:[%s2497_s14] sm:$0xff]  }
 0x3ab   : > { %952 = vmax.xlane.f32.xlu0 %v951_v36 }
 0x420   : > { %v947_v40 = vpop.xlane.xlu0 %946 }
 0x421   : > { %v954_v48 = vsub.f32 %v941_v18, %v947_v40 }
 0x422   : > { %v950_v37 = vpop.xlane.xlu1 %949 }
 0x423   : > { %v955_v38 = vsub.f32 %v942_v22, %v950_v37  ;;  %v957_v51 = vmul.f32 1.442695, %v954_v48 }
 0x425   : > { %v959_v39 = vmul.f32 1.442695, %v955_v38 }
 0x427   : > { %2068 = vpow2.f32 %v959_v39 }
 0x42f   : > { %v1124_v41 = vpop.xlane.xlu1 %1123 }
 0x430   : > { %v1127_v42 = vsub.f32 %v1115_v26, %v1124_v41  ;;  %v1118_v43 = vpop.xlane.xlu0 %1117 }
 0x431   : > { %v2069_v44 = vpop.eup %2068  ;;  %v1125_v52 = vsub.f32 %v1113_v28, %v1118_v43 }
 0x432   : > { %v1132_v45 = vmul.f32 1.442695, %v1127_v42  ;;  %v966_v46 = vsel %vm944_vm10, %v2069_v44, 0.0 }
 0x433   : > { %967 = vadd.xlane.f32.xlu1 %v966_v46  ;;  %v1128_v55 = vmul.f32 1.442695, %v1125_v52 }
 0x434   : > { %2070 = vpow2.f32 %v1132_v45  ;;  %v1121_v47 = vpop.xlane.xlu0 %1120 }
 0x435   : > { %v1126_v1 = vsub.f32 %v1114_v33, %v1121_v47 }
 0x437   : > { %v1130_v2 = vmul.f32 1.442695, %v1126_v1 }
 0x438   : > { %v953_v49 = vpop.xlane.xlu0 %952 }
 0x439   : > { %v956_v50 = vsub.f32 %v943_v35, %v953_v49  ;;  %v2051_v35 = vld [vmem:[%s2497_s14 + $0x8] sm:$0xff]  }
 0x43b   : > { %v961_v53 = vmul.f32 1.442695, %v956_v50 }
 0x43d   : > { %2072 = vpow2.f32 %v961_v53 }
 0x43e   : > { %v2363_v54 = vpop.eup %2070  ;;  %2074 = vpow2.f32 %v957_v51 }
 0x43f   : > { %v1140_v57 = vsel %vm944_vm10, %v2363_v54, 0.0  ;;  %2076 = vpow2.f32 %v1128_v55 }
 0x440   : > { %1141 = vadd.xlane.f32.xlu1 %v1140_v57  ;;  %2078 = vpow2.f32 %v1130_v2 }
 0x447   : > { %v2073_v58 = vpop.eup %2072 }
 0x448   : > { %v969_v59 = vsel %vm944_vm10, %v2073_v58, 0.0  ;;  %v2075_v61 = vpop.eup %2074 }
 0x449   : > { %970 = vadd.xlane.f32.xlu0 %v969_v59  ;;  %v963_v62 = vsel %vm944_vm10, %v2075_v61, 0.0  ;;  %v2077_v63 = vpop.eup %2076 }
 0x44a   : > { %v1134_v0 = vsel %vm944_vm10, %v2077_v63, 0.0  ;;  %v2079_v6 = vpop.eup %2078 }
 0x44b   : > { %v1137_v7 = vsel %vm944_vm10, %v2079_v6, 0.0 }
 0x44d   : > { %964 = vadd.xlane.f32.xlu0 %v963_v62 }
 0x451   : > { %1135 = vadd.xlane.f32.xlu0 %v1134_v0  ;;  %1151 = vrot.lane.b32.xlu1 %v2319_v60, %s2121_s29 }
 0x455   : > { %982 = vrot.lane.b32.xlu1 %v2316_v56, %s2122_s28 }
 0x467   : > { %980 = vrot.lane.b32.xlu0 %v2319_v60, %s2122_s28 }
 0x479   : > { %1138 = vadd.xlane.f32.xlu1 %v1137_v7 }
 0x48a   : > { %1153 = vrot.lane.b32.xlu1 %v2316_v56, %s2121_s29 }
 0x4c0   : > { %v968_v8 = vpop.xlane.xlu1 %967 }
 0x4cd   : > { %v1142_v9 = vpop.xlane.xlu1 %1141 }
 0x4d1   : > { %v1152_v10 = vpop.permute.xlu1 %1151 }
 0x4d2   : > { %1966 = vmatprep.subr.bf16.mxu1 %v1152_v10 }
 0x4d3   : > { %1967 = vmatpush3.bf16.msra.mxu1 %v1152_v10 }
 0x4d5   : > { %v983_v16 = vpop.permute.xlu1 %982 }
 0x4d6   : > { %v971_v11 = vpop.xlane.xlu0 %970  ;;  %v993_v20 = vsel %vm991_vm3, %v983_v16, 0 }
 0x4d7   : > { %2080 = vrcp.f32 %v971_v11 }
 0x4d8   : > { %2082 = vrcp.f32 %v968_v8 }
 0x4da   : > { %v965_v12 = vpop.xlane.xlu0 %964 }
 0x4db   : > { %2084 = vrcp.f32 %v965_v12 }
 0x4dc   : > { %2086 = vrcp.f32 %v1142_v9 }
 0x4de   : > { %v1136_v13 = vpop.xlane.xlu0 %1135 }
 0x4df   : > { %2088 = vrcp.f32 %v1136_v13 }
 0x4e1   : > { %v2081_v14 = vpop.eup %2080 }
 0x4e2   : > { %v981_v60 = vpop.permute.xlu0 %980  ;;  %v2083_v15 = vpop.eup %2082  ;;  %v977_v56 = vmul.f32 %v2081_v14, %v2073_v58  ;;  %v1862_v58 = vld [vmem:[%s2498_s20] ss:$0 sm:$0xff] }
 0x4e3   : > { %1950 = vmatprep.subr.bf16.mxu0 %v981_v60  ;;  %v976_v19 = vmul.f32 %v2083_v15, %v2069_v44 }
 0x4e4   : > { %1951 = vmatpush3.bf16.msra.mxu0 %v981_v60  ;;  %v979_v22 = vpack.c.bf16 %v977_v56, %v977_v56 }
 0x4e5   : > { %v2085_v17 = vpop.eup %2084  ;;  %2028 = vmatprep.subr.msk.bf16.mxu0 %vm991_vm3, %v983_v16 }
 0x4e6   : > { %v975_v18 = vmul.f32 %v2085_v17, %v2075_v61  ;;  %v2087_v26 = vpop.eup %2086 }
 0x4e7   : > { %v1148_v29 = vmul.f32 %v2087_v26, %v2363_v54 }
 0x4e8   : > { %1953 = vmatpush3.bf16.msra.mxu0 %v993_v20  ;;  %v978_v21 = vpack.c.bf16 %v976_v19, %v975_v18  ;;  %v2052_v20 = vld [vmem:[%s2253_s4] sm:$0xff]  }
 0x4e9   : > { %v2089_v27 = vpop.eup %2088  ;;  %v1150_v33 = vpack.c.bf16 %v1148_v29, %v1148_v29  ;;  %1980 = vmatprep.subr.bf16.mxu0 %v2050_v34 }
 0x4ea   : > { %1954 = vmatprep.mubr.msk.bf16.mxu0 %vm944_vm10, %v978_v21  ;;  %v1146_v30 = vmul.f32 %v2089_v27, %v2077_v63  ;;  %v2053_v21 = vld [vmem:[%s2253_s4 + $0x8] sm:$0xff]  }
 0x4eb   : > { %1955 = vmatmul.mubr.msk.bf16.vlgmr.msra.gmra.mrb[4].mxu0 %vm944_vm10, %v979_v22 }
 0x4ec   : > { %1981 = vmatpush3.bf16.msra.mxu0 %v2050_v34 }
 0x506   : > { %v1139_v23 = vpop.xlane.xlu1 %1138 }
 0x507   : > { %2090 = vrcp.f32 %v1139_v23 }
 0x50a   : > { %v1154_v24 = vpop.permute.xlu1 %1153 }
 0x50b   : > { %v1163_v25 = vsel %vm991_vm3, %v1154_v24, 0  ;;  %2031 = vmatprep.subr.msk.bf16.mxu1 %vm991_vm3, %v1154_v24 }
 0x50c   : > { %1969 = vmatpush3.bf16.msra.mxu1 %v1163_v25 }
 0x50d   : > { %1974 = vmatprep.subr.bf16.mxu1 %v2051_v35 }
 0x511   : > { %v2091_v28 = vpop.eup %2090 }
 0x512   : > { %v1147_v31 = vmul.f32 %v2091_v28, %v2079_v6 }
 0x514   : > { %v1149_v32 = vpack.c.bf16 %v1147_v31, %v1146_v30 }
 0x516   : > { %1970 = vmatprep.mubr.msk.bf16.mxu1 %vm944_vm10, %v1149_v32 }
 0x517   : > { %1971 = vmatmul.mubr.msk.bf16.vlgmr.msra.gmra.mrb[8].mxu1 %vm944_vm10, %v1150_v33  ;;  %v1863_v33 = vld [vmem:[%s605_s1] ss:$0 sm:$0xff] }
 0x518   : > { %1975 = vmatpush3.bf16.msra.mxu1 %v2051_v35 }
 0x519   : > { %1986 = vmatprep.subr.bf16.mxu1 %v2052_v20 }
 0x5be   : > { %v1956_v36 = vpop.f32.mrb[4].mxu0 }
 0x5bf   : > { %v1029_v37 = vpop.f32.mrb[5].mxu0  ;;  %v1044_v41 = vpack.c.bf16 %v1956_v36, %v1956_v36 }
 0x5c0   : > { %v1957_v38 = vpop.f32.mrb[6].mxu0 }
 0x5c1   : > { %v1032_v39 = vpop.f32.mrb[7].mxu0 }
 0x5c2   : > { %v1043_v40 = vpack.c.bf16 %v1032_v39, %v1029_v37  ;;  %v1864_v39 = vld [vmem:[%s608_s25] ss:$0 sm:$0xff] }
 0x5c4   : > { %1982 = vmatprep.mubr.msk.bf16.mxu0 %vm880_vm2, %v1043_v40 }
 0x5c5   : > { %1983 = vmatmul.mubr.msk.bf16.vlgmr.msra.gmra.mrb[8].mxu0 %vm880_vm2, %v1044_v41 }
 0x5ea   : > { %v1972_v42 = vpop.f32.mrb[8].mxu1 }
 0x5eb   : > { %v1199_v43 = vpop.f32.mrb[9].mxu1  ;;  %v1214_v47 = vpack.c.bf16 %v1972_v42, %v1972_v42 }
 0x5ec   : > { %v1973_v44 = vpop.f32.mrb[10].mxu1 }
 0x5ed   : > { %v1202_v45 = vpop.f32.mrb[11].mxu1 }
 0x5ee   : > { %v1213_v46 = vpack.c.bf16 %v1202_v45, %v1199_v43 }
 0x5f0   : > { %1976 = vmatprep.mubr.msk.bf16.mxu1 %vm880_vm2, %v1213_v46 }
 0x5f1   : > { %1977 = vmatmul.mubr.msk.bf16.vlgmr.msra.gmra.mrb[12].mxu1 %vm880_vm2, %v1214_v47  ;;  %v2054_v47 = vld [vmem:[%s2263_s19] sm:$0xff]   ;;  %vm2124_vm2 = vmmov (!%p1882_p5), 0  }
 0x5f2   : > { %1987 = vmatpush3.bf16.msra.mxu1 %v2052_v20  ;;  %1994 = vmatprep.subr.bf16.mxu0 %v2054_v47 }
 0x5f3   : > { %1988 = vmatprep.subr.bf16.mxu1 %v2053_v21  ;;  %1995 = vmatpush3.bf16.msra.mxu0 %v2054_v47 }
 0x5f6   : > { %1989 = vmatpush3.bf16.msra.mxu1 %v2053_v21 }
 0x698   : > { %v1984_v48 = vpop.f32.mrb[8].mxu0 }
 0x699   : > { %v1321_v49 = vpop.f32.mrb[9].mxu0 }
 0x69a   : > { %v1985_v50 = vpop.f32.mrb[10].mxu0 }
 0x69b   : > { %v1324_v51 = vpop.f32.mrb[11].mxu0  ;;  %v2057_v50 = vld [vmem:[%s2263_s19 + $0x18] sm:$0xff]  }
 0x6c4   : > { %v1978_v52 = vpop.f32.mrb[12].mxu1 }
 0x6c5   : > { %v1330_v53 = vadd.f32 %v1984_v48, %v1978_v52  ;;  %v1261_v54 = vpop.f32.mrb[13].mxu1  ;;  %v2055_v48 = vld [vmem:[%s2263_s19 + $0x8] sm:$0xff]  }
 0x6c6   : > { %v1322_v55 = vadd.f32 %v1321_v49, %v1261_v54  ;;  %v1979_v57 = vpop.f32.mrb[14].mxu1  ;;  %1996 = vmatprep.subr.bf16.mxu0 %v2055_v48  ;;  %v2056_v49 = vld [vmem:[%s2263_s19 + $0x10] sm:$0xff]   ;;  %v2059_v52 = vld [vmem:[%s2263_s19 + $0x28] sm:$0xff]   ;;  %v2061_v54 = vld [vmem:[%s2263_s19 + $0x38] sm:$0xff]  }
 0x6c7   : > { %v1264_v59 = vpop.f32.mrb[15].mxu1  ;;  %v1337_v61 = vadd.f32 %v1330_v53, %v2281_v4  ;;  %1997 = vmatpush3.bf16.msra.mxu0 %v2055_v48  ;;  %v2060_v53 = vld [vmem:[%s2263_s19 + $0x30] sm:$0xff]  }
 0x6c8   : > { %v1335_v62 = vadd.f32 %v1322_v55, %v2279_v3  ;;  %v1325_v63 = vadd.f32 %v1324_v51, %v1264_v59  ;;  %1998 = vmatprep.subr.bf16.mxu0 %v2056_v49  ;;  %v2058_v51 = vld [vmem:[%s2263_s19 + $0x20] sm:$0xff]  }
 0x6c9   : > { %v2400_v2 = vadd.f32 %v1862_v58, %v1337_v61  ;;  %v1865_v55 = vld [vmem:[%s616_s6] ss:$0 sm:$0xff] }
 0x6ca   : > { %v2397_v0 = vadd.f32 %v1862_v58, %v1335_v62  ;;  %v1336_v1 = vadd.f32 %v1325_v63, %v2283_v5 }
 0x6cb   : > { %v1353_v3 = vsel %vm676_vm1, %v2400_v2, 0.0  ;;  %1999 = vmatpush3.bf16.msra.mxu0 %v2056_v49 }
 0x6cc   : > { %v2402_v6 = vadd.f32 %v1862_v58, %v1336_v1  ;;  %v1347_v7 = vsel %vm676_vm1, %v2397_v0, 0.0  ;;  %2000 = vmatprep.subr.bf16.mxu0 %v2057_v50 }
 0x6cd   : > { %1348 = vadd.xlane.f32.xlu0 %v1347_v7 }
 0x6ce   : > { %v1350_v8 = vsel %vm676_vm1, %v2402_v6, 0.0 }
 0x6cf   : > { %1351 = vadd.xlane.f32.xlu1 %v1350_v8  ;;  %2001 = vmatpush3.bf16.msra.mxu0 %v2057_v50 }
 0x6d0   : > { %2002 = vmatprep.subr.bf16.mxu0 %v2058_v51 }
 0x6d1   : > { %1354 = vadd.xlane.f32.xlu0 %v1353_v3 }
 0x6d3   : > { %2003 = vmatpush3.bf16.msra.mxu0 %v2058_v51 }
 0x6d4   : > { %2004 = vmatprep.subr.bf16.mxu0 %v2059_v52 }
 0x6d7   : > { %2005 = vmatpush3.bf16.msra.mxu0 %v2059_v52 }
 0x6d8   : > { %2006 = vmatprep.subr.bf16.mxu0 %v2060_v53 }
 0x6db   : > { %2007 = vmatpush3.bf16.msra.mxu0 %v2060_v53 }
 0x6dc   : > { %2008 = vmatprep.subr.bf16.mxu0 %v2061_v54 }
 0x6df   : > { %2009 = vmatpush3.bf16.msra.mxu0 %v2061_v54 }
 0x75a   : > { %v1349_v4 = vpop.xlane.xlu0 %1348 }
 0x75b   : > { %v1356_v9 = vmul.f32 0.03125, %v1349_v4 }
 0x75c   : > { %v1352_v10 = vpop.xlane.xlu1 %1351 }
 0x75d   : > { %v1359_v5 = vsub.f32 %v2397_v0, %v1356_v9  ;;  %v1357_v11 = vmul.f32 0.03125, %v1352_v10 }
 0x75e   : > { %v1355_v12 = vpop.xlane.xlu0 %1354 }
 0x75f   : > { %v1360_v13 = vsub.f32 %v2402_v6, %v1357_v11  ;;  %v1358_v14 = vmul.f32 0.03125, %v1355_v12  ;;  %v1362_v60 = vmul.f32 %v1359_v5, %v1359_v5 }
 0x761   : > { %v1361_v15 = vsub.f32 %v2400_v2, %v1358_v14  ;;  %v1365_v16 = vsel %vm676_vm1, %v1362_v60, 0.0  ;;  %v1363_v17 = vmul.f32 %v1360_v13, %v1360_v13 }
 0x762   : > { %1366 = vadd.xlane.f32.xlu0 %v1365_v16 }
 0x763   : > { %v1364_v56 = vmul.f32 %v1361_v15, %v1361_v15  ;;  %v1368_v19 = vsel %vm676_vm1, %v1363_v17, 0.0 }
 0x765   : > { %v1371_v18 = vsel %vm676_vm1, %v1364_v56, 0.0 }
 0x766   : > { %1372 = vadd.xlane.f32.xlu1 %v1371_v18  ;;  %1369 = vadd.xlane.f32.xlu0 %v1368_v19 }
 0x7ef   : > { %v1367_v22 = vpop.xlane.xlu0 %1366 }
 0x7f0   : > { %v1374_v23 = vmul.f32 0.03125, %v1367_v22  ;;  %v1873_v22 = vld [vmem:[%s624_s23] ss:$0 sm:$0xff] }
 0x7f2   : > { %v1377_v24 = vadd.f32 1e-05, %v1374_v23 }
 0x7f3   : > { %v1370_v25 = vpop.xlane.xlu0 %1369  ;;  %v1373_v26 = vpop.xlane.xlu1 %1372 }
 0x7f4   : > { %2092 = vrsqrt.f32 %v1377_v24  ;;  %v1375_v27 = vmul.f32 0.03125, %v1370_v25  ;;  %v1376_v28 = vmul.f32 0.03125, %v1373_v26 }
 0x7f6   : > { %v1378_v29 = vadd.f32 1e-05, %v1375_v27  ;;  %v1379_v30 = vadd.f32 1e-05, %v1376_v28 }
 0x7f8   : > { %2094 = vrsqrt.f32 %v1378_v29 }
 0x7f9   : > { %2096 = vrsqrt.f32 %v1379_v30 }
 0x7fe   : > { %v2093_v31 = vpop.eup %2092 }
 0x7ff   : > { %v1383_v32 = vmul.f32 %v2093_v31, %v1359_v5 }
 0x801   : > { %v1392_v37 = vmul.f32 %v1863_v33, %v1383_v32 }
 0x802   : > { %v2095_v34 = vpop.eup %2094 }
 0x803   : > { %v2097_v35 = vpop.eup %2096  ;;  %v1384_v36 = vmul.f32 %v2095_v34, %v1360_v13  ;;  %v1401_v42 = vadd.f32 %v1864_v39, %v1392_v37  ;;  %v2123_v34 = vmov (!%p1882_p5), 0.0|0.0  }
 0x804   : > { %v1385_v38 = vmul.f32 %v2097_v35, %v1361_v15  ;;  %2023 = vmatprep.subr.bf16.mxu0 (!%p1882_p5), %v2123_v34 }
 0x805   : > { %v1393_v40 = vmul.f32 %v1863_v33, %v1384_v36 }
 0x806   : > { %v1394_v41 = vmul.f32 %v1863_v33, %v1385_v38 }
 0x807   : > { %v1402_v43 = vadd.f32 %v1864_v39, %v1393_v40 }
 0x808   : > { %v1403_v44 = vadd.f32 %v1864_v39, %v1394_v41 }
 0x809   : > { %v1404_v45 = vpack.c.bf16 %v1402_v43, %v1401_v42 }
 0x80a   : > { %v1405_v46 = vpack.c.bf16 %v1403_v44, %v1403_v44 }
 0x80b   : > { %1990 = vmatprep.mubr.msk.bf16.mxu1 %vm676_vm1, %v1404_v45 }
 0x80c   : > { %1991 = vmatmul.mubr.msk.bf16.vlgmr.msra.gmra.mrb[16].mxu1 %vm676_vm1, %v1405_v46 }
 0x8df   : > { %v1992_v57 = vpop.f32.mrb[16].mxu1 }
 0x8e0   : > { %v1473_v58 = vadd.f32 %v1992_v57, %v1865_v55  ;;  %v1464_v59 = vpop.f32.mrb[17].mxu1 }
 0x8e1   : > { %v1465_v61 = vadd.f32 %v1865_v55, %v1464_v59  ;;  %v1993_v62 = vpop.f32.mrb[18].mxu1 }
 0x8e2   : > { %v1872_v63 = vmul.f32 -1.702, %v1473_v58  ;;  %v1467_v1 = vpop.f32.mrb[19].mxu1 }
 0x8e3   : > { %v1870_v7 = vmul.f32 -1.702, %v1465_v61  ;;  %v1468_v8 = vadd.f32 %v1865_v55, %v1467_v1 }
 0x8e4   : > { %v1488_v3 = vmul.f32 1.442695, %v1872_v63 }
 0x8e5   : > { %v1484_v4 = vmul.f32 1.442695, %v1870_v7  ;;  %v1871_v9 = vmul.f32 -1.702, %v1468_v8 }
 0x8e6   : > { %2098 = vpow2.f32 %v1488_v3 }
 0x8e7   : > { %2100 = vpow2.f32 %v1484_v4  ;;  %v1486_v10 = vmul.f32 1.442695, %v1871_v9 }
 0x8e9   : > { %2102 = vpow2.f32 %v1486_v10 }
 0x8f0   : > { %v2099_v5 = vpop.eup %2098 }
 0x8f1   : > { %v2101_v11 = vpop.eup %2100  ;;  %v1492_v12 = vadd.f32 1.0, %v2099_v5 }
 0x8f2   : > { %v1490_v13 = vadd.f32 1.0, %v2101_v11 }
 0x8f3   : > { %v2103_v14 = vpop.eup %2102  ;;  %2104 = vrcp.f32 %v1492_v12 }
 0x8f4   : > { %2106 = vrcp.f32 %v1490_v13  ;;  %v1491_v60 = vadd.f32 1.0, %v2103_v14 }
 0x8f6   : > { %2108 = vrcp.f32 %v1491_v60 }
 0x8fd   : > { %v2105_v15 = vpop.eup %2104 }
 0x8fe   : > { %v2107_v16 = vpop.eup %2106  ;;  %v1501_v56 = vmul.f32 %v2105_v15, %v1473_v58 }
 0x8ff   : > { %v1499_v18 = vmul.f32 %v2107_v16, %v1465_v61 }
 0x900   : > { %v2109_v17 = vpop.eup %2108  ;;  %v1503_v21 = vpack.c.bf16 %v1501_v56, %v1501_v56 }
 0x901   : > { %v1500_v19 = vmul.f32 %v2109_v17, %v1468_v8 }
 0x903   : > { %v1502_v20 = vpack.c.bf16 %v1500_v19, %v1499_v18 }
 0x905   : > { %2010 = vmatprep.mubr.bf16.mxu0 %v1502_v20 }
 0x906   : > { %2011 = vmatmul.mubr.bf16.vlgmr.msra.gmra.mrb[12].mxu0 %v1503_v21 }
 0x9d9   : > { %v2012_v23 = vpop.f32.mrb[12].mxu0 }
 0x9da   : > { %v1601_v24 = vadd.f32 %v2012_v23, %v1873_v22  ;;  %v1592_v25 = vpop.f32.mrb[13].mxu0 }
 0x9db   : > { %v1593_v26 = vadd.f32 %v1873_v22, %v1592_v25  ;;  %v2013_v27 = vpop.f32.mrb[14].mxu0  ;;  %1615 = sbr.rel (%p1882_p5) target bundleno = 2749 (0xabd), region = 84 }
 0x9dc   : > { %v1608_v28 = vadd.f32 %v1601_v24, %v2400_v2  ;;  %v1595_v29 = vpop.f32.mrb[15].mxu0  ;;  %v2125_v2 = vmov (!%p1882_p5), 0.0  }
 0x9dd   : > { %v1606_v30 = vadd.f32 %v1593_v26, %v2397_v0  ;;  %v1596_v31 = vadd.f32 %v1873_v22, %v1595_v29  ;;  %2020 = vmatprep.mubr.msk.f32.mxu0 (!%p1882_p5), %vm2124_vm2, %v2125_v2  ;;  %v1616_v0 = vld [vmem:[%s2499_s27] sm:$0x7] (!%p1882_p5) }
 0x9de   : > { %1611 = vst.msk [vmem:[#allocation2 + $0x10] sm:$0xff] %vm676_vm1, %v1608_v28 }
 0x9df   : > { %1609 = vst.msk [vmem:[#allocation2] sm:$0xff] %vm676_vm1, %v1606_v30  ;;  %v1607_v32 = vadd.f32 %v1596_v31, %v2402_v6 }
 0x9e1   : > { %1610 = vst.msk [vmem:[#allocation2 + $0x8] sm:$0xff] %vm676_vm1, %v1607_v32  ;;  %v2024_v33 = vpack.c.bf16 (!%p1882_p5), %v1607_v32, %v1606_v30 }
 0x9e3   : > { %2025 = vmatpush3.bf16.msra.mxu0 %v2024_v33 }
 0x9e4   : > { %2018 = vmatprep.subr.mxu0 %v2125_v2 }
 0x9e7   : > { %2019 = vmatpush3.msra.mxu0 %v1608_v28 }
 0x9e8   : > { %2021 = vmatmul.mubr.msk.f32.vlgmr.msra.gmra.mrb[0].mxu0 %vm944_vm10, %v1616_v0 }
 0xabb   : > { %v1686_v6 = vpop.f32.mrb[0].mxu0 }
 0xabc   : > { %1691 = vst.msk [vmem:[%s2500_s17] sm:$0x7] %vm1690_vm4, %v1686_v6  ;;  %v2022_v35 = vpop.f32.mrb[1].mxu0 }
 0xabd PF: > { %s2501_s29 = sld [smem:[#allocation3_spill]] }
 0xac3   : > { %s24_s29 = sadd.s32 1, %s2501_s29  }
 0xac4   : > { %p21_p6 = scmp.ge.s32.totalorder %s24_s29, 4  }
 0xac6   :  { %23 = sbr.rel (!%p21_p6) target bundleno = 5 (0x5), region = 143 }

// kernel: custom_clip_forward.3
= control target key start
LH: loop header
LB: loop body
LE: loop exit
PB: predicated region body
PF: predicated region fallthrough
CT: control target
= control target key end

     0   :  { %s3665_s0 = inlined_call_operand.vmem [shape: f32[8,768], index: 0, kind: input, shape index: {}]   ;;  %s3666_s1 = inlined_call_operand.vmem [shape: bf16[768,32], index: 1, kind: input, shape index: {}]   ;;  %s3667_s2 = inlined_call_operand.vmem [shape: f32[1,32], index: 2, kind: input, shape index: {}]   ;;  %s3668_s3 = inlined_call_operand.vmem [shape: f32[5,32], index: 3, kind: input, shape index: {}]   ;;  %s3669_s4 = inlined_call_operand.vmem [shape: f32[1,32], index: 4, kind: input, shape index: {}]   ;;  %s3670_s5 = inlined_call_operand.vmem [shape: f32[1,32], index: 5, kind: input, shape index: {}]   ;;  %s3671_s6 = inlined_call_operand.vmem [shape: f32[2,4,16], index: 6, kind: input, shape index: {}]   ;;  %s3672_s7 = inlined_call_operand.vmem [shape: bf16[16,32], index: 7, kind: input, shape index: {}]   ;;  %s3673_s8 = inlined_call_operand.vmem [shape: f32[1,32], index: 8, kind: input, shape index: {}]   ;;  %s3674_s9 = inlined_call_operand.vmem [shape: f32[2,1,32], index: 9, kind: input, shape index: {}]   ;;  %s3675_s10 = inlined_call_operand.vmem [shape: f32[2,1,32], index: 10, kind: input, shape index: {}]   ;;  %s3676_s11 = inlined_call_operand.vmem [shape: bf16[2,32,96], index: 11, kind: input, shape index: {}]   ;;  %s3677_s12 = inlined_call_operand.vmem [shape: f32[2,1,96], index: 12, kind: input, shape index: {}]   ;;  %s3678_s13 = inlined_call_operand.vmem [shape: bf16[2,32,32], index: 13, kind: input, shape index: {}]   ;;  %s3679_s14 = inlined_call_operand.vmem [shape: f32[2,1,32], index: 14, kind: input, shape index: {}]   ;;  %s3680_s15 = inlined_call_operand.vmem [shape: f32[2,1,32], index: 15, kind: input, shape index: {}]   ;;  %s3681_s16 = inlined_call_operand.vmem [shape: f32[2,1,32], index: 16, kind: input, shape index: {}]   ;;  %s3682_s17 = inlined_call_operand.vmem [shape: bf16[2,32,128], index: 17, kind: input, shape index: {}]   ;;  %s3683_s18 = inlined_call_operand.vmem [shape: f32[2,1,128], index: 18, kind: input, shape index: {}]   ;;  %s3684_s19 = inlined_call_operand.vmem [shape: bf16[2,128,32], index: 19, kind: input, shape index: {}]   ;;  %s3685_s20 = inlined_call_operand.vmem [shape: f32[2,1,32], index: 20, kind: input, shape index: {}]   ;;  %s3686_s21 = inlined_call_operand.vmem [shape: f32[2,32], index: 21, kind: output, shape index: {}]  }
   0x1   :  { %3694 = sst [smem:[#allocation5_spill]] %s3665_s0 }
   0x2   :  { %3695 = sst [smem:[#allocation6_spill]] %s3666_s1 }
   0x3   :  { %3696 = sst [smem:[#allocation7_spill]] %s3667_s2  ;;  %s3188_s2 = smov 0  }
   0x4   :  { %3697 = sst [smem:[#allocation8_spill]] %s3668_s3 }
   0x5   :  { %3698 = sst [smem:[#allocation9_spill]] %s3669_s4 }
   0x6   :  { %3699 = sst [smem:[#allocation10_spill]] %s3670_s5 }
   0x7   :  { %3700 = sst [smem:[#allocation11_spill]] %s3671_s6 }
   0x8   :  { %3701 = sst [smem:[#allocation12_spill]] %s3672_s7 }
   0x9   :  { %3702 = sst [smem:[#allocation13_spill]] %s3673_s8 }
   0xa   :  { %3703 = sst [smem:[#allocation14_spill]] %s3676_s11 }
   0xb   :  { %3704 = sst [smem:[#allocation15_spill]] %s3678_s13 }
   0xc   :  { %3705 = sst [smem:[#allocation16_spill]] %s3686_s21 }
   0xd LB: > { %3706 = sst [smem:[#allocation3_spill]] %s3069_s2  ;;  %s3194_s25 = sadd.s32 4294967295, %s3069_s2   ;;  %s3069_s2 = sphi %s3188_s2, %s31_s2  }
   0xe   : > { %3707 = sst [smem:[#allocation4_spill]] %s3194_s25  ;;  %p2617_p0 = scmp.ge.s32.totalorder %s3069_s2, 1 }
   0xf   : > { %p685_p1 = scmp.lt.s32.totalorder %s3069_s2, 3 }
  0x11   : > { %p686_p2 = pnand %p2617_p0, %p685_p1 }
  0x12   : > { %p783_p3 = scmp.lt.s32.totalorder (!%p686_p2), %s3194_s25, 1  ;;  %s3708_s6 = sld [smem:[#allocation11_spill]] (!%p686_p2) }
  0x13   : > { %689 = sbr.rel (%p686_p2) target bundleno = 3373 (0xd2d), region = 104  ;;  %s3709_s11 = sld [smem:[#allocation14_spill]] (!%p686_p2) }
  0x14   : > { %s3710_s13 = sld [smem:[#allocation15_spill]] (!%p686_p2)  ;;  %s3711_s24 = sld [smem:[#allocation4_spill]] (!%p686_p2) }
  0x1a   : > { %s3200_s26 = scalar_select %p783_p3, %s3194_s25, 1 }
  0x1b   : > { %p2627_p4 = scmp.ne.s32.totalorder %s3711_s24, 0 }
  0x1c   : > { %s2618_s27 = sshll.u32 %s3200_s26, 2  ;;  %s2727_s1 = sshll.u32 %s3200_s26, 4  ;;  %vm1357_vm0 = vcmask (!%p2627_p4), 253952   ;;  %vm1415_vm1 = vcmask (!%p2627_p4), 261124   ;;  %vm1379_vm2 = vcmask (!%p2627_p4), 257024  }
  0x1d   : > { %s3210_s30 = scalar_lea.vmem %s3708_s6, %s2618_s27  ;;  %s3224_s25 = scalar_lea.vmem %s3709_s11, %s2727_s1 }
  0x1e   : > { %s3229_s0 = scalar_lea.vmem %s3710_s13, %s2727_s1  ;;  %s811_s29 = scalar_lea.vmem %s3680_s15, %s3200_s26 }
  0x1f   : > { %s3246_s6 = scalar_lea.vmem %s3682_s17, %s2727_s1  ;;  %s2730_s13 = sshll.u32 %s3200_s26, 6 }
  0x20   : > { %s3256_s5 = scalar_lea.vmem %s3684_s19, %s2730_s13  ;;  %835 = sbr.rel (%p2627_p4) target bundleno = 639 (0x27f), region = 108 }
  0x21   : > { %s3712_s8 = sld [smem:[#allocation6_spill]] (!%p2627_p4)  ;;  %s3713_s7 = sld [smem:[#allocation5_spill]] (!%p2627_p4) }
  0x22   : > { %s3714_s2 = sld [smem:[#allocation7_spill]] (!%p2627_p4)  ;;  %s3715_s11 = sld [smem:[#allocation8_spill]] (!%p2627_p4) }
  0x23   : > { %s3716_s22 = sld [smem:[#allocation9_spill]] (!%p2627_p4)  ;;  %s3717_s1 = sld [smem:[#allocation10_spill]] (!%p2627_p4) }
  0x27   : > { %v2946_v0 = vld [vmem:[%s3712_s8 + $0x40] sm:$0xff]   ;;  %v2950_v4 = vld [vmem:[%s3712_s8 + $0x48] sm:$0xff]   ;;  %v2954_v8 = vld [vmem:[%s3712_s8 + $0x50] sm:$0xff]  }
  0x28   : > { %v2947_v1 = vld [vmem:[%s3712_s8 + $0xc0] sm:$0xff]   ;;  %2731 = vmatprep.subr.bf16.mxu0 %v2946_v0  ;;  %v2951_v5 = vld [vmem:[%s3712_s8 + $0xc8] sm:$0xff]   ;;  %v2955_v9 = vld [vmem:[%s3712_s8 + $0xd0] sm:$0xff]  }
  0x29   : > { %v2948_v2 = vld [vmem:[%s3712_s8] sm:$0xff]   ;;  %2753 = vmatprep.subr.bf16.mxu1 %v2947_v1  ;;  %v2952_v6 = vld [vmem:[%s3712_s8 + $0x8] sm:$0xff]   ;;  %v2956_v10 = vld [vmem:[%s3712_s8 + $0x10] sm:$0xff]  }
  0x2a   : > { %v2949_v3 = vld [vmem:[%s3712_s8 + $0x80] sm:$0xff]   ;;  %2732 = vmatpush3.bf16.msra.mxu0 %v2948_v2  ;;  %v2953_v7 = vld [vmem:[%s3712_s8 + $0x88] sm:$0xff]   ;;  %v2957_v11 = vld [vmem:[%s3712_s8 + $0x90] sm:$0xff]  }
  0x2b   : > { %2754 = vmatpush3.bf16.msra.mxu1 %v2949_v3  ;;  %2733 = vmatprep.subr.bf16.mxu0 %v2950_v4  ;;  %v2958_v12 = vld [vmem:[%s3712_s8 + $0x58] sm:$0xff]   ;;  %v2962_v16 = vld [vmem:[%s3712_s8 + $0x60] sm:$0xff]   ;;  %v2966_v20 = vld [vmem:[%s3712_s8 + $0x68] sm:$0xff]  }
  0x2c   : > { %2755 = vmatprep.subr.bf16.mxu1 %v2951_v5  ;;  %v2959_v13 = vld [vmem:[%s3712_s8 + $0xd8] sm:$0xff]   ;;  %v2963_v17 = vld [vmem:[%s3712_s8 + $0xe0] sm:$0xff]   ;;  %v2967_v21 = vld [vmem:[%s3712_s8 + $0xe8] sm:$0xff]  }
  0x2d   : > { %v2960_v14 = vld [vmem:[%s3712_s8 + $0x18] sm:$0xff]   ;;  %v2964_v18 = vld [vmem:[%s3712_s8 + $0x20] sm:$0xff]   ;;  %v2968_v22 = vld [vmem:[%s3712_s8 + $0x28] sm:$0xff]  }
  0x2e   : > { %2734 = vmatpush3.bf16.msra.mxu0 %v2952_v6  ;;  %v2961_v15 = vld [vmem:[%s3712_s8 + $0x98] sm:$0xff]   ;;  %v2965_v19 = vld [vmem:[%s3712_s8 + $0xa0] sm:$0xff]   ;;  %v2969_v23 = vld [vmem:[%s3712_s8 + $0xa8] sm:$0xff]  }
  0x2f   : > { %2756 = vmatpush3.bf16.msra.mxu1 %v2953_v7  ;;  %2735 = vmatprep.subr.bf16.mxu0 %v2954_v8  ;;  %v2970_v24 = vld [vmem:[%s3712_s8 + $0x70] sm:$0xff]   ;;  %v2974_v28 = vld [vmem:[%s3712_s8 + $0x78] sm:$0xff]   ;;  %v837_v32 = vld [vmem:[%s3713_s7 + $0x8] sm:$0xff] }
  0x30   : > { %2757 = vmatprep.subr.bf16.mxu1 %v2955_v9  ;;  %v2971_v25 = vld [vmem:[%s3712_s8 + $0xf0] sm:$0xff]   ;;  %v2975_v29 = vld [vmem:[%s3712_s8 + $0xf8] sm:$0xff]   ;;  %v836_v34 = vld [vmem:[%s3713_s7] sm:$0xff]  ;;  %v843_v35 = vpack.c.bf16 %v837_v32, %v837_v32 }
  0x31   : > { %v2972_v26 = vld [vmem:[%s3712_s8 + $0x30] sm:$0xff]   ;;  %v2976_v30 = vld [vmem:[%s3712_s8 + $0x38] sm:$0xff]   ;;  %v842_v37 = vpack.c.bf16 %v836_v34, %v836_v34  ;;  %v2978_v40 = vld [vmem:[%s3712_s8 + $0x140] sm:$0xff]  }
  0x32   : > { %2736 = vmatpush3.bf16.msra.mxu0 %v2956_v10  ;;  %v2973_v27 = vld [vmem:[%s3712_s8 + $0xb0] sm:$0xff]   ;;  %v2977_v31 = vld [vmem:[%s3712_s8 + $0xb8] sm:$0xff]   ;;  %1264 = vmatprep.mubr.bf16.mxu0 %v843_v35  ;;  %v2979_v41 = vld [vmem:[%s3712_s8 + $0x100] sm:$0xff]  }
  0x33   : > { %2758 = vmatpush3.bf16.msra.mxu1 %v2957_v11  ;;  %2737 = vmatprep.subr.bf16.mxu0 %v2958_v12  ;;  %v839_v33 = vld [vmem:[%s3713_s7 + $0x18] sm:$0xff]  ;;  %v838_v38 = vld [vmem:[%s3713_s7 + $0x10] sm:$0xff]  ;;  %v2980_v42 = vld [vmem:[%s3712_s8 + $0x148] sm:$0xff]  }
  0x34   : > { %2759 = vmatprep.subr.bf16.mxu1 %v2959_v13  ;;  %v845_v36 = vpack.c.bf16 %v839_v33, %v839_v33  ;;  %v844_v39 = vpack.c.bf16 %v838_v38, %v838_v38  ;;  %v2981_v43 = vld [vmem:[%s3712_s8 + $0x108] sm:$0xff]   ;;  %v2982_v44 = vld [vmem:[%s3712_s8 + $0x150] sm:$0xff]   ;;  %v2984_v46 = vld [vmem:[%s3712_s8 + $0x158] sm:$0xff]  }
  0x35   : > { %v2983_v45 = vld [vmem:[%s3712_s8 + $0x110] sm:$0xff]   ;;  %v2985_v47 = vld [vmem:[%s3712_s8 + $0x118] sm:$0xff]   ;;  %v2986_v48 = vld [vmem:[%s3712_s8 + $0x160] sm:$0xff]  }
  0x36   : > { %2738 = vmatpush3.bf16.msra.mxu0 %v2960_v14  ;;  %1304 = vmatprep.mubr.bf16.mxu1 %v845_v36  ;;  %v841_v49 = vld [vmem:[%s3713_s7 + $0x28] sm:$0xff]  ;;  %v2987_v50 = vld [vmem:[%s3712_s8 + $0x120] sm:$0xff]   ;;  %v2990_v58 = vld [vmem:[%s3712_s8 + $0x170] sm:$0xff]  }
  0x37   : > { %2760 = vmatpush3.bf16.msra.mxu1 %v2961_v15  ;;  %2739 = vmatprep.subr.bf16.mxu0 %v2962_v16  ;;  %v847_v51 = vpack.c.bf16 %v841_v49, %v841_v49  ;;  %v1352_v52 = vld [vmem:[%s3714_s2] sm:$0x1]  ;;  %v2988_v54 = vld [vmem:[%s3712_s8 + $0x168] sm:$0xff]   ;;  %v2991_v59 = vld [vmem:[%s3712_s8 + $0x130] sm:$0xff]  }
  0x38   : > { %2761 = vmatprep.subr.bf16.mxu1 %v2963_v17  ;;  %v1353_v53 = vld [vmem:[%s3715_s11] sm:$0x1]  ;;  %v2989_v57 = vld [vmem:[%s3712_s8 + $0x128] sm:$0xff]   ;;  %v2992_v60 = vld [vmem:[%s3712_s8 + $0x178] sm:$0xff]  }
  0x39   : > { %v1354_v55 = vadd.f32 %v1353_v53, %v1352_v52  ;;  %v2993_v61 = vld [vmem:[%s3712_s8 + $0x138] sm:$0xff]   ;;  %v840_v62 = vld [vmem:[%s3713_s7 + $0x20] sm:$0xff] }
  0x3a   : > { %2740 = vmatpush3.bf16.msra.mxu0 %v2964_v18  ;;  %v846_v63 = vpack.c.bf16 %v840_v62, %v840_v62  ;;  %v1374_v13 = vld [vmem:[%s3715_s11 + $0x1] sm:$0xf] }
  0x3b   : > { %2762 = vmatpush3.bf16.msra.mxu1 %v2965_v19  ;;  %2741 = vmatprep.subr.bf16.mxu0 %v2966_v20  ;;  %v1358_v56 = vsel %vm1357_vm0, %v1354_v55, 0.0  ;;  %v1410_v19 = vrot.slane %v1374_v13, 4 }
  0x3c   : > { %2763 = vmatprep.subr.bf16.mxu1 %v2967_v21  ;;  %1359 = vadd.xlane.f32.xlu0 %v1358_v56 }
  0x3e   : > { %2742 = vmatpush3.bf16.msra.mxu0 %v2968_v22 }
  0x3f   : > { %2764 = vmatpush3.bf16.msra.mxu1 %v2969_v23  ;;  %2743 = vmatprep.subr.bf16.mxu0 %v2970_v24 }
  0x40   : > { %2765 = vmatprep.subr.bf16.mxu1 %v2971_v25 }
  0x42   : > { %2744 = vmatpush3.bf16.msra.mxu0 %v2972_v26 }
  0x43   : > { %2766 = vmatpush3.bf16.msra.mxu1 %v2973_v27  ;;  %2745 = vmatprep.subr.bf16.mxu0 %v2974_v28 }
  0x44   : > { %2767 = vmatprep.subr.bf16.mxu1 %v2975_v29 }
  0x46   : > { %2746 = vmatpush3.bf16.msra.mxu0 %v2976_v30 }
  0x47   : > { %2768 = vmatpush3.bf16.msra.mxu1 %v2977_v31  ;;  %2775 = vmatprep.subr.bf16.mxu0 %v2978_v40 }
  0x49   : > { %1265 = vmatmul.mubr.bf16.vlgmr.msra.gmra.mrb[0].mxu0 %v842_v37 }
  0x4a   : > { %1305 = vmatmul.mubr.bf16.vlgmr.msra.gmra.mrb[0].mxu1 %v844_v39  ;;  %2776 = vmatpush3.bf16.msra.mxu0 %v2979_v41 }
  0x4b   : > { %2777 = vmatprep.subr.bf16.mxu0 %v2980_v42  ;;  %1344 = vmatprep.mubr.bf16.mxu0 %v847_v51  ;;  %v1355_v42 = vld [vmem:[%s3716_s22] sm:$0x1] }
  0x4e   : > { %2778 = vmatpush3.bf16.msra.mxu0 %v2981_v43 }
  0x4f   : > { %2779 = vmatprep.subr.bf16.mxu0 %v2982_v44  ;;  %v1356_v44 = vld [vmem:[%s3717_s1] sm:$0x1] }
  0x52   : > { %2780 = vmatpush3.bf16.msra.mxu0 %v2983_v45 }
  0x53   : > { %2781 = vmatprep.subr.bf16.mxu0 %v2984_v46 }
  0x56   : > { %2782 = vmatpush3.bf16.msra.mxu0 %v2985_v47 }
  0x57   : > { %2783 = vmatprep.subr.bf16.mxu0 %v2986_v48 }
  0x5a   : > { %2784 = vmatpush3.bf16.msra.mxu0 %v2987_v50 }
  0x5b   : > { %2785 = vmatprep.subr.bf16.mxu0 %v2988_v54  ;;  %v2678_v54 = vld [vmem:[%s3716_s22] ss:$0 sm:$0xff] }
  0x5e   : > { %2786 = vmatpush3.bf16.msra.mxu0 %v2989_v57  ;;  %v2679_v57 = vld [vmem:[%s3717_s1] ss:$0 sm:$0xff] }
  0x5f   : > { %2787 = vmatprep.subr.bf16.mxu0 %v2990_v58 }
  0x62   : > { %2788 = vmatpush3.bf16.msra.mxu0 %v2991_v59 }
  0x63   : > { %2789 = vmatprep.subr.bf16.mxu0 %v2992_v60 }
  0x66   : > { %2790 = vmatpush3.bf16.msra.mxu0 %v2993_v61 }
  0x69   : > { %1345 = vmatmul.mubr.bf16.vlgmr.msra.gmra.mrb[4].mxu0 %v846_v63 }
  0xc9   : > { %v1360_v11 = vpop.xlane.xlu0 %1359 }
  0xca   : > { %v1362_v12 = vmul.f32 0.03125, %v1360_v11 }
  0xcc   : > { %v1363_v18 = vsub.f32 %v1354_v55, %v1362_v12 }
  0xce   : > { %v1364_v24 = vmul.f32 %v1363_v18, %v1363_v18 }
  0xd0   : > { %v1365_v27 = vsel %vm1357_vm0, %v1364_v24, 0.0 }
 0x11c   : > { %v2747_v0 = vpop.f32.mrb[0].mxu0 }
 0x11d   : > { %v2769_v1 = vpop.f32.mrb[0].mxu1  ;;  %v2748_v2 = vpop.f32.mrb[1].mxu0 }
 0x11e   : > { %v2770_v3 = vpop.f32.mrb[1].mxu1  ;;  %v2749_v4 = vadd.f32 %v2748_v2, %v2747_v0  ;;  %v2750_v6 = vpop.f32.mrb[2].mxu0 }
 0x11f   : > { %v2771_v5 = vadd.f32 %v2770_v3, %v2769_v1  ;;  %v2772_v7 = vpop.f32.mrb[2].mxu1  ;;  %v2751_v8 = vpop.f32.mrb[3].mxu0 }
 0x120   : > { %v2773_v9 = vpop.f32.mrb[3].mxu1 }
 0x121   : > { %v1307_v10 = vadd.f32 %v2771_v5, %v2749_v4 }
 0x13c   : > { %v2791_v14 = vpop.f32.mrb[4].mxu0 }
 0x13d   : > { %v2792_v15 = vpop.f32.mrb[5].mxu0 }
 0x13e   : > { %v2793_v16 = vadd.f32 %v2792_v15, %v2791_v14  ;;  %v2794_v17 = vpop.f32.mrb[6].mxu0 }
 0x13f   : > { %v2795_v20 = vpop.f32.mrb[7].mxu0 }
 0x140   : > { %v1347_v21 = vadd.f32 %v2793_v16, %v1307_v10 }
 0x142   : > { %v1412_v22 = vadd.f32 %v1410_v19, %v1347_v21  ;;  %v1376_v23 = vadd.f32 %v1374_v13, %v1347_v21 }
 0x144   : > { %v1416_v25 = vsel %vm1415_vm1, %v1412_v22, 0.0  ;;  %v1380_v26 = vsel %vm1379_vm2, %v1376_v23, 0.0 }
 0x145   : > { %1417 = vadd.xlane.f32.xlu1 %v1416_v25  ;;  %1381 = vadd.xlane.f32.xlu0 %v1380_v26 }
 0x149   : > { %1366 = vadd.xlane.f32.xlu1 %v1365_v27 }
 0x1d2   : > { %v1418_v28 = vpop.xlane.xlu1 %1417  ;;  %v1382_v29 = vpop.xlane.xlu0 %1381 }
 0x1d3   : > { %v1419_v30 = vmul.f32 0.03125, %v1418_v28  ;;  %v1383_v31 = vmul.f32 0.03125, %v1382_v29 }
 0x1d5   : > { %v1420_v32 = vsub.f32 %v1412_v22, %v1419_v30  ;;  %v1384_v33 = vsub.f32 %v1376_v23, %v1383_v31 }
 0x1d6   : > { %v1367_v34 = vpop.xlane.xlu1 %1366 }
 0x1d7   : > { %v1368_v35 = vmul.f32 0.03125, %v1367_v34  ;;  %v1421_v36 = vmul.f32 %v1420_v32, %v1420_v32  ;;  %v1385_v37 = vmul.f32 %v1384_v33, %v1384_v33 }
 0x1d9   : > { %v1369_v38 = vadd.f32 1e-05, %v1368_v35  ;;  %v1422_v39 = vsel %vm1415_vm1, %v1421_v36, 0.0  ;;  %v1386_v40 = vsel %vm1379_vm2, %v1385_v37, 0.0 }
 0x1da   : > { %1423 = vadd.xlane.f32.xlu1 %v1422_v39  ;;  %1387 = vadd.xlane.f32.xlu0 %v1386_v40 }
 0x1db   : > { %2994 = vrsqrt.f32 %v1369_v38 }
 0x1e5   : > { %v2995_v41 = vpop.eup %2994 }
 0x1e6   : > { %v1371_v43 = vmul.f32 %v2995_v41, %v1363_v18 }
 0x1e8   : > { %v1372_v45 = vmul.f32 %v1371_v43, %v1355_v42 }
 0x1ea   : > { %v1373_v46 = vadd.f32 %v1372_v45, %v1356_v44 }
 0x1ec   : > { %1375 = vst.msk [vmem:[#allocation2] sm:$0x1] %vm1357_vm0, %v1373_v46  ;;  %1408 = vst.msk [vmem:[#allocation2 + $0x9] sm:$0x1] %vm1357_vm0, %v1373_v46 }
 0x267   : > { %v1424_v47 = vpop.xlane.xlu1 %1423  ;;  %v1388_v48 = vpop.xlane.xlu0 %1387 }
 0x268   : > { %v1425_v49 = vmul.f32 0.03125, %v1424_v47  ;;  %v1389_v50 = vmul.f32 0.03125, %v1388_v48 }
 0x26a   : > { %v1426_v51 = vadd.f32 1e-05, %v1425_v49  ;;  %v1390_v52 = vadd.f32 1e-05, %v1389_v50 }
 0x26c   : > { %2996 = vrsqrt.f32 %v1426_v51 }
 0x26d   : > { %2998 = vrsqrt.f32 %v1390_v52 }
 0x276   : > { %v2997_v53 = vpop.eup %2996 }
 0x277   : > { %v2999_v55 = vpop.eup %2998  ;;  %v1428_v56 = vmul.f32 %v2997_v53, %v1420_v32 }
 0x278   : > { %v1392_v58 = vmul.f32 %v2999_v55, %v1384_v33 }
 0x279   : > { %v1435_v59 = vmul.f32 %v2678_v54, %v1428_v56 }
 0x27a   : > { %v1399_v60 = vmul.f32 %v2678_v54, %v1392_v58 }
 0x27b   : > { %v1442_v61 = vadd.f32 %v2679_v57, %v1435_v59 }
 0x27c   : > { %v1406_v62 = vadd.f32 %v2679_v57, %v1399_v60 }
 0x27d   : > { %1443 = vst.msk [vmem:[#allocation2 + $0xa] sm:$0xf0] %vm1415_vm1, %v1442_v61 }
 0x27e   : > { %1407 = vst.msk [vmem:[#allocation2 + $0x5] sm:$0xf] %vm1379_vm2, %v1406_v62 }
 0x27f PF: > { %s3718_s23 = sld [smem:[#allocation12_spill]]  ;;  %v3071_v0 = vmov 0.0   ;;  %v1444_v1 = vld [vmem:[%s3210_s30] sm:$0xf]  ;;  %vm1461_vm3 = vcmask 130048   ;;  %vm3072_vm4 = vmmov 0   ;;  %s3720_s28 = scalar_lea.vmem %s3674_s9, %s3200_s26 }
 0x280   : > { %2839 = vmatprep.subr.bf16.mxu0 %v3071_v0  ;;  %2841 = vmatprep.mubr.msk.bf16.mxu0 %vm3072_vm4, %v3071_v0  ;;  %v1445_v2 = vpack.c.bf16 %v1444_v1, %v1444_v1  ;;  %vm1554_vm5 = vcmask 254976   ;;  %s3719_s3 = sld [smem:[#allocation13_spill]]  ;;  %vm1505_vm6 = vcmask 257024   ;;  %vm1547_vm7 = vcmask 261120   ;;  %v3001_v30 = vld [vmem:[%s3224_s25] sm:$0xff]   ;;  %v3002_v31 = vld [vmem:[%s3224_s25 + $0x8] sm:$0xff]   ;;  %s3721_s2 = scalar_lea.vmem %s3675_s10, %s3200_s26 }
 0x281   : > { %2845 = vmatprep.subr.bf16.mxu1 %v3001_v30  ;;  %v2683_v43 = vld [vmem:[%s3720_s28] ss:$0 sm:$0xff]  ;;  %s3722_s24 = scalar_lea.vmem %s3677_s12, %s3200_s26  ;;  %s3073_s21 = smov 96   ;;  %vm1791_vm0 = vcmask 146432  }
 0x282   : > { %2846 = vmatpush3.bf16.msra.mxu1 %v3001_v30  ;;  %v2684_v49 = vld [vmem:[%s3721_s2] ss:$0 sm:$0xff]  ;;  %s3075_s25 = smov 112   ;;  %s3076_s30 = smov 48  }
 0x283   : > { %2847 = vmatprep.subr.bf16.mxu1 %v3002_v31  ;;  %v2685_v57 = vld [vmem:[%s3722_s24] ss:$0 sm:$0xff]  ;;  %s3077_s28 = smov 64   ;;  %s3729_s13 = scalar_lea.vmem %s3679_s14, %s3200_s26 }
 0x284   : > { %v3461_v3 = vld [vmem:[#allocation2 + $0x10] sm:$0x3]  ;;  %s3730_s24 = scalar_lea.vmem %s3681_s16, %s3200_s26 }
 0x285   : > { %v3000_v63 = vld [vmem:[%s3718_s23] sm:$0xff]   ;;  %v1555_v4 = vsel %vm1554_vm5, %v3461_v3, 0.0 }
 0x286   : > { %2840 = vmatpush3.bf16.msra.mxu0 %v3000_v63  ;;  %1556 = vadd.xlane.f32.xlu1 %v1555_v4  ;;  %v2680_v5 = vld [vmem:[%s3719_s3] ss:$0 sm:$0xff]  ;;  %s3074_s3 = smov 80  }
 0x287   : > { %2848 = vmatpush3.bf16.msra.mxu1 %v3002_v31 }
 0x289   : > { %2842 = vmatmul.mubr.msk.bf16.vlgmr.msra.gmra.mrb[0].mxu0 %vm1461_vm3, %v1445_v2 }
 0x313   : > { %v1557_v15 = vpop.xlane.xlu1 %1556 }
 0x314   : > { %v1561_v16 = vmul.f32 0.03125, %v1557_v15 }
 0x316   : > { %v1564_v19 = vsub.f32 %v3461_v3, %v1561_v16  ;;  %v1681_v16 = vlaneseq }
 0x318   : > { %v1567_v24 = vmul.f32 %v1564_v19, %v1564_v19 }
 0x31a   : > { %v1574_v27 = vsel %vm1554_vm5, %v1567_v24, 0.0 }
 0x35c   : > { %v1499_v6 = vpop.f32.mrb[0].mxu0 }
 0x35d   : > { %v1500_v7 = vadd.f32 %v2680_v5, %v1499_v6  ;;  %v2843_v8 = vpop.f32.mrb[1].mxu0 }
 0x35e   : > { %v1502_v9 = vpop.f32.mrb[2].mxu0 }
 0x35f   : > { %1506 = vst.msk [vmem:[#allocation2 + $0x1] sm:$0xf] %vm1505_vm6, %v1500_v7  ;;  %1507 = vst.msk [vmem:[#allocation2 + $0xa] sm:$0xf] %vm1505_vm6, %v1500_v7  ;;  %v2844_v10 = vpop.f32.mrb[3].mxu0  ;;  %vm1798_vm6 = vcmask 140288  }
 0x366   : > { %v3468_v11 = vld [vmem:[#allocation2] sm:$0xff]  ;;  %v3472_v13 = vld [vmem:[#allocation2 + $0x8] sm:$0xff] }
 0x367   : > { %v1548_v12 = vsel %vm1547_vm7, %v3468_v11, 0.0  ;;  %v1551_v14 = vsel %vm1547_vm7, %v3472_v13, 0.0 }
 0x368   : > { %1549 = vadd.xlane.f32.xlu0 %v1548_v12 }
 0x36c   : > { %1552 = vadd.xlane.f32.xlu0 %v1551_v14 }
 0x3f5   : > { %v1550_v17 = vpop.xlane.xlu0 %1549 }
 0x3f6   : > { %v1559_v18 = vmul.f32 0.03125, %v1550_v17  ;;  %v1682_v17 = vshrl.u32 %v1681_v16, 7 }
 0x3f8   : > { %v1562_v20 = vsub.f32 %v3468_v11, %v1559_v18  ;;  %v1686_v18 = vand.u32 127, %v1681_v16  ;;  %v1684_v31 = vadd.s32 16, %v1682_v17 }
 0x3f9   : > { %v1553_v21 = vpop.xlane.xlu0 %1552 }
 0x3fa   : > { %v1560_v22 = vmul.f32 0.03125, %v1553_v21  ;;  %v1565_v23 = vmul.f32 %v1562_v20, %v1562_v20  ;;  %vm1711_vm8 = vcmp.ge.s32.totalorder %v1686_v18, 9  ;;  %vm1712_vm9 = vcmp.lt.s32.totalorder %v1686_v18, 18 }
 0x3fb   : > { %vm1697_vm10 = vcmp.lt.s32.totalorder %v1686_v18, 9  ;;  %vm3525_vm13 = vmand %vm1711_vm8, %vm1712_vm9  ;;  %vm1707_vm2 = vcmp.lt.s32.totalorder %v1684_v31, 18  ;;  %vm1839_vm8 = vcmask 1040384  }
 0x3fc   : > { %v1563_v25 = vsub.f32 %v3472_v13, %v1560_v22  ;;  %v1568_v26 = vsel %vm1547_vm7, %v1565_v23, 0.0  ;;  %vm1716_vm4 = vmand %vm1707_vm2, %vm3525_vm13 }
 0x3fd   : > { %1569 = vadd.xlane.f32.xlu1 %v1568_v26 }
 0x3fe   : > { %v1566_v28 = vmul.f32 %v1563_v25, %v1563_v25 }
 0x400   : > { %v1571_v29 = vsel %vm1547_vm7, %v1566_v28, 0.0 }
 0x401   : > { %1575 = vadd.xlane.f32.xlu1 %v1574_v27  ;;  %1572 = vadd.xlane.f32.xlu0 %v1571_v29 }
 0x48a   : > { %v1570_v32 = vpop.xlane.xlu1 %1569 }
 0x48b   : > { %v1577_v33 = vmul.f32 0.03125, %v1570_v32 }
 0x48d   : > { %v1580_v34 = vadd.f32 1e-05, %v1577_v33 }
 0x48e   : > { %v1576_v35 = vpop.xlane.xlu1 %1575  ;;  %v1573_v36 = vpop.xlane.xlu0 %1572 }
 0x48f   : > { %3015 = vrsqrt.f32 %v1580_v34  ;;  %v1579_v37 = vmul.f32 0.03125, %v1576_v35  ;;  %v1578_v38 = vmul.f32 0.03125, %v1573_v36 }
 0x491   : > { %v1582_v39 = vadd.f32 1e-05, %v1579_v37  ;;  %v1581_v40 = vadd.f32 1e-05, %v1578_v38 }
 0x493   : > { %3017 = vrsqrt.f32 %v1582_v39 }
 0x494   : > { %3019 = vrsqrt.f32 %v1581_v40 }
 0x499   : > { %v3016_v41 = vpop.eup %3015 }
 0x49a   : > { %v1586_v42 = vmul.f32 %v3016_v41, %v1562_v20 }
 0x49c   : > { %v1595_v48 = vmul.f32 %v2683_v43, %v1586_v42 }
 0x49d   : > { %v3018_v44 = vpop.eup %3017 }
 0x49e   : > { %v3020_v45 = vpop.eup %3019  ;;  %v1588_v46 = vmul.f32 %v3018_v44, %v1564_v19  ;;  %v1604_v53 = vadd.f32 %v2684_v49, %v1595_v48  ;;  %v1683_v19 = vadd.s32 8, %v1682_v17 }
 0x49f   : > { %v1587_v47 = vmul.f32 %v3020_v45, %v1563_v25 }
 0x4a0   : > { %v1597_v50 = vmul.f32 %v2683_v43, %v1588_v46  ;;  %vm1691_vm11 = vcmp.lt.s32.totalorder %v1683_v19, 9  ;;  %vm1703_vm12 = vcmp.ge.s32.totalorder %v1683_v19, 9 }
 0x4a1   : > { %v1596_v51 = vmul.f32 %v2683_v43, %v1587_v47  ;;  %vm3530_vm14 = vmand %vm1691_vm11, %vm1697_vm10 }
 0x4a2   : > { %v1606_v52 = vadd.f32 %v2684_v49, %v1597_v50  ;;  %vm3536_vm15 = vmand %vm1703_vm12, %vm3525_vm13 }
 0x4a3   : > { %v1605_v54 = vadd.f32 %v2684_v49, %v1596_v51  ;;  %vm1718_vm1 = vmor %vm3530_vm14, %vm3536_vm15 }
 0x4a4   : > { %v1608_v55 = vpack.c.bf16 %v1606_v52, %v1606_v52 }
 0x4a5   : > { %v1607_v56 = vpack.c.bf16 %v1605_v54, %v1604_v53 }
 0x4a7   : > { %2849 = vmatprep.mubr.msk.bf16.mxu1 %vm1547_vm7, %v1607_v56 }
 0x4a8   : > { %2850 = vmatmul.mubr.msk.bf16.vlgmr.msra.gmra.mrb[0].mxu1 %vm1547_vm7, %v1608_v55 }
 0x57b   : > { %v2851_v58 = vpop.f32.mrb[0].mxu1 }
 0x57c   : > { %v1676_v59 = vadd.f32 %v2851_v58, %v2685_v57  ;;  %v1667_v60 = vpop.f32.mrb[1].mxu1 }
 0x57d   : > { %v2852_v61 = vpop.f32.mrb[2].mxu1  ;;  %v1668_v0 = vadd.f32 %v2685_v57, %v1667_v60 }
 0x57e   : > { %v3501_v62 = vpack.c.bf16 %v1676_v59, %v1676_v59  ;;  %v1670_v63 = vpop.f32.mrb[3].mxu1 }
 0x57f   : > { %v1671_v1 = vadd.f32 %v2685_v57, %v1670_v63 }
 0x580   : > { %1726 = vrot.lane.b32.xlu1 %v3501_v62, %s3073_s21 }
 0x581   : > { %v3504_v2 = vpack.c.bf16 %v1671_v1, %v1668_v0 }
 0x583   : > { %1724 = vrot.lane.b32.xlu0 %v3504_v2, %s3073_s21  ;;  %2857 = vmatprep.mubr.msk.bf16.mxu0 %vm1461_vm3, %v3504_v2 }
 0x584   : > { %1897 = vrot.lane.b32.xlu1 %v3504_v2, %s3074_s3 }
 0x587   : > { %1893 = vrot.lane.b32.xlu0 %v3504_v2, %s3075_s25 }
 0x588   : > { %1899 = vrot.lane.b32.xlu1 %v3501_v62, %s3074_s3  ;;  %s3731_s3 = scalar_lea.vmem %s3683_s18, %s3200_s26 }
 0x58c   : > { %1895 = vrot.lane.b32.xlu1 %v3501_v62, %s3075_s25 }
 0x5f2   : > { %v1727_v6 = vpop.permute.xlu1 %1726 }
 0x5f3   : > { %v1738_v7 = vsel %vm1461_vm3, %v1727_v6, 0 }
 0x5f5   : > { %v1725_v4 = vpop.permute.xlu0 %1724 }
 0x5f6   : > { %v1735_v5 = vsel %vm1461_vm3, %v1725_v4, 0  ;;  %2925 = vmatprep.subr.msk.bf16.mxu0 %vm1461_vm3, %v1725_v4  ;;  %v1898_v8 = vpop.permute.xlu1 %1897 }
 0x5f7   : > { %2854 = vmatpush3.bf16.xpose.msra.mxu0 %v1735_v5  ;;  %v1908_v9 = vsel %vm1461_vm3, %v1898_v8, 0 }
 0x5f8   : > { %2926 = vmatprep.subr.msk.bf16.mxu0 %vm1461_vm3, %v1727_v6 }
 0x5f9   : > { %v1894_v10 = vpop.permute.xlu0 %1893 }
 0x5fa   : > { %v1900_v12 = vpop.permute.xlu1 %1899 }
 0x5fb   : > { %v1911_v14 = vsel %vm1461_vm3, %v1900_v12, 0 }
 0x5fe   : > { %v1896_v15 = vpop.permute.xlu1 %1895 }
 0x5ff   : > { %2856 = vmatpush3.bf16.xpose.msra.mxu0 %v1738_v7 }
 0x600   : > { %2928 = vmatprep.subr.msk.bf16.mxu0 %vm1461_vm3, %v1898_v8 }
 0x606   : > { %2858 = vmatmul.mubr.msk.bf16.vlgmr.msra.gmra.mrb[4].mxu0 %vm1461_vm3, %v3501_v62 }
 0x607   : > { %2870 = vmatpush3.bf16.xpose.msra.mxu0 %v1908_v9  ;;  %2873 = vmatprep.mubr.msk.bf16.mxu0 %vm1461_vm3, %v1894_v10 }
 0x608   : > { %2929 = vmatprep.subr.msk.bf16.mxu0 %vm1461_vm3, %v1900_v12 }
 0x60f   : > { %2872 = vmatpush3.bf16.xpose.msra.mxu0 %v1911_v14 }
 0x616   : > { %2874 = vmatmul.mubr.msk.bf16.vlgmr.msra.gmra.mrb[8].mxu0 %vm1461_vm3, %v1896_v15 }
 0x6d9   : > { %v2859_v23 = vpop.f32.mrb[4].mxu0 }
 0x6da   : > { %v1774_v24 = vpop.f32.mrb[5].mxu0  ;;  %v1790_v42 = vsel %vm1716_vm4, %v2859_v23, -1e+30 }
 0x6db   : > { %v1788_v25 = vsel %vm1697_vm10, %v1774_v24, -1e+30  ;;  %v2860_v26 = vpop.f32.mrb[6].mxu0  ;;  %v1799_v43 = vsel %vm1798_vm6, %v1790_v42, -inf }
 0x6dc   : > { %v1777_v27 = vpop.f32.mrb[7].mxu0  ;;  %v1792_v28 = vsel %vm1791_vm0, %v1788_v25, -inf }
 0x6dd   : > { %v1789_v29 = vsel %vm1718_vm1, %v1777_v27, -1e+30  ;;  %1793 = vmax.xlane.f32.xlu0 %v1792_v28 }
 0x6de   : > { %v1795_v30 = vsel %vm1791_vm0, %v1789_v29, -inf }
 0x6df   : > { %1796 = vmax.xlane.f32.xlu1 %v1795_v30 }
 0x6e9   : > { %v2875_v32 = vpop.f32.mrb[8].mxu0 }
 0x6ea   : > { %v1963_v33 = vsel %vm1716_vm4, %v2875_v32, -1e+30  ;;  %v1947_v34 = vpop.f32.mrb[9].mxu0 }
 0x6eb   : > { %v1961_v35 = vsel %vm1697_vm10, %v1947_v34, -1e+30  ;;  %v2876_v36 = vpop.f32.mrb[10].mxu0  ;;  %v1970_v37 = vsel %vm1798_vm6, %v1963_v33, -inf }
 0x6ec   : > { %v1950_v38 = vpop.f32.mrb[11].mxu0  ;;  %1971 = vmax.xlane.f32.xlu1 %v1970_v37  ;;  %v1964_v39 = vsel %vm1791_vm0, %v1961_v35, -inf }
 0x6ed   : > { %v1962_v40 = vsel %vm1718_vm1, %v1950_v38, -1e+30  ;;  %1965 = vmax.xlane.f32.xlu0 %v1964_v39 }
 0x6ee   : > { %v1967_v41 = vsel %vm1791_vm0, %v1962_v40, -inf }
 0x6f1   : > { %1968 = vmax.xlane.f32.xlu0 %v1967_v41  ;;  %v3003_v41 = vld [vmem:[%s3229_s0] sm:$0xff]  }
 0x6f5   : > { %1800 = vmax.xlane.f32.xlu0 %v1799_v43 }
 0x76a   : > { %v1794_v47 = vpop.xlane.xlu0 %1793 }
 0x76b   : > { %v1802_v55 = vsub.f32 %v1788_v25, %v1794_v47 }
 0x76c   : > { %v1797_v44 = vpop.xlane.xlu1 %1796 }
 0x76d   : > { %v1803_v45 = vsub.f32 %v1789_v29, %v1797_v44  ;;  %v1805_v58 = vmul.f32 1.442695, %v1802_v55 }
 0x76f   : > { %v1807_v46 = vmul.f32 1.442695, %v1803_v45 }
 0x771   : > { %3021 = vpow2.f32 %v1807_v46 }
 0x779   : > { %v1972_v48 = vpop.xlane.xlu1 %1971 }
 0x77a   : > { %v1975_v49 = vsub.f32 %v1963_v33, %v1972_v48  ;;  %v1966_v50 = vpop.xlane.xlu0 %1965 }
 0x77b   : > { %v3022_v51 = vpop.eup %3021  ;;  %v1973_v59 = vsub.f32 %v1961_v35, %v1966_v50 }
 0x77c   : > { %v1980_v52 = vmul.f32 1.442695, %v1975_v49  ;;  %v1814_v53 = vsel %vm1791_vm0, %v3022_v51, 0.0 }
 0x77d   : > { %1815 = vadd.xlane.f32.xlu1 %v1814_v53  ;;  %v1976_v63 = vmul.f32 1.442695, %v1973_v59 }
 0x77e   : > { %3023 = vpow2.f32 %v1980_v52  ;;  %v1969_v54 = vpop.xlane.xlu0 %1968 }
 0x77f   : > { %v1974_v9 = vsub.f32 %v1962_v40, %v1969_v54 }
 0x781   : > { %v1978_v10 = vmul.f32 1.442695, %v1974_v9 }
 0x782   : > { %v1801_v56 = vpop.xlane.xlu0 %1800 }
 0x783   : > { %v1804_v57 = vsub.f32 %v1790_v42, %v1801_v56  ;;  %v3004_v42 = vld [vmem:[%s3229_s0 + $0x8] sm:$0xff]  }
 0x785   : > { %v1809_v60 = vmul.f32 1.442695, %v1804_v57 }
 0x787   : > { %3025 = vpow2.f32 %v1809_v60 }
 0x788   : > { %v3565_v61 = vpop.eup %3023  ;;  %3027 = vpow2.f32 %v1805_v58 }
 0x789   : > { %v1988_v0 = vsel %vm1798_vm6, %v3565_v61, 0.0  ;;  %3029 = vpow2.f32 %v1976_v63 }
 0x78a   : > { %1989 = vadd.xlane.f32.xlu1 %v1988_v0  ;;  %3031 = vpow2.f32 %v1978_v10 }
 0x791   : > { %v3026_v1 = vpop.eup %3025 }
 0x792   : > { %v1817_v4 = vsel %vm1798_vm6, %v3026_v1, 0.0  ;;  %v3028_v5 = vpop.eup %3027 }
 0x793   : > { %1818 = vadd.xlane.f32.xlu0 %v1817_v4  ;;  %v1811_v6 = vsel %vm1791_vm0, %v3028_v5, 0.0  ;;  %v3030_v7 = vpop.eup %3029 }
 0x794   : > { %v1982_v8 = vsel %vm1791_vm0, %v3030_v7, 0.0  ;;  %v3032_v12 = vpop.eup %3031 }
 0x795   : > { %v1985_v14 = vsel %vm1791_vm0, %v3032_v12, 0.0 }
 0x797   : > { %1812 = vadd.xlane.f32.xlu0 %v1811_v6 }
 0x79b   : > { %1983 = vadd.xlane.f32.xlu0 %v1982_v8  ;;  %1999 = vrot.lane.b32.xlu1 %v3504_v2, %s3076_s30 }
 0x79f   : > { %1830 = vrot.lane.b32.xlu1 %v3501_v62, %s3077_s28 }
 0x7b1   : > { %1828 = vrot.lane.b32.xlu0 %v3504_v2, %s3077_s28 }
 0x7c3   : > { %1986 = vadd.xlane.f32.xlu1 %v1985_v14 }
 0x7d4   : > { %2001 = vrot.lane.b32.xlu1 %v3501_v62, %s3076_s30  ;;  %s3732_s30 = scalar_lea.vmem %s3685_s20, %s3200_s26  ;;  %s3733_s26 = sld [smem:[#allocation4_spill]] }
 0x7da   : > { %p2724_p5 = scmp.ne.s32.totalorder %s3733_s26, 1 }
 0x7db   : > { %s3734_s27 = sld [smem:[#allocation16_spill]] (!%p2724_p5) }
 0x80a   : > { %v1816_v15 = vpop.xlane.xlu1 %1815 }
 0x817   : > { %v1990_v16 = vpop.xlane.xlu1 %1989 }
 0x81b   : > { %v2000_v17 = vpop.permute.xlu1 %1999 }
 0x81c   : > { %2877 = vmatprep.subr.bf16.mxu0 %v2000_v17 }
 0x81d   : > { %2878 = vmatpush3.bf16.msra.mxu0 %v2000_v17 }
 0x81f   : > { %v1831_v23 = vpop.permute.xlu1 %1830 }
 0x820   : > { %v1819_v18 = vpop.xlane.xlu0 %1818  ;;  %v1841_v27 = vsel %vm1839_vm8, %v1831_v23, 0 }
 0x821   : > { %3033 = vrcp.f32 %v1819_v18 }
 0x822   : > { %3035 = vrcp.f32 %v1816_v15 }
 0x824   : > { %v1813_v19 = vpop.xlane.xlu0 %1812 }
 0x825   : > { %3037 = vrcp.f32 %v1813_v19 }
 0x826   : > { %3039 = vrcp.f32 %v1990_v16 }
 0x828   : > { %v1984_v20 = vpop.xlane.xlu0 %1983 }
 0x829   : > { %3041 = vrcp.f32 %v1984_v20 }
 0x82b   : > { %v3034_v21 = vpop.eup %3033 }
 0x82c   : > { %v1829_v2 = vpop.permute.xlu0 %1828  ;;  %v3036_v22 = vpop.eup %3035  ;;  %v1825_v62 = vmul.f32 %v3034_v21, %v3026_v1  ;;  %v2704_v1 = vld [vmem:[%s3729_s13] ss:$0 sm:$0xff] }
 0x82d   : > { %2861 = vmatprep.subr.bf16.mxu1 %v1829_v2  ;;  %v1824_v26 = vmul.f32 %v3036_v22, %v3022_v51 }
 0x82e   : > { %2862 = vmatpush3.bf16.msra.mxu1 %v1829_v2  ;;  %v1827_v29 = vpack.c.bf16 %v1825_v62, %v1825_v62 }
 0x82f   : > { %v3038_v24 = vpop.eup %3037  ;;  %2927 = vmatprep.subr.msk.bf16.mxu1 %vm1839_vm8, %v1831_v23 }
 0x830   : > { %v1823_v25 = vmul.f32 %v3038_v24, %v3028_v5  ;;  %v3040_v33 = vpop.eup %3039 }
 0x831   : > { %v1996_v36 = vmul.f32 %v3040_v33, %v3565_v61 }
 0x832   : > { %2864 = vmatpush3.bf16.msra.mxu1 %v1841_v27  ;;  %v1826_v28 = vpack.c.bf16 %v1824_v26, %v1823_v25  ;;  %v3005_v27 = vld [vmem:[%s3246_s6] sm:$0xff]  }
 0x833   : > { %v3042_v34 = vpop.eup %3041  ;;  %v1998_v40 = vpack.c.bf16 %v1996_v36, %v1996_v36  ;;  %2891 = vmatprep.subr.bf16.mxu1 %v3003_v41 }
 0x834   : > { %2865 = vmatprep.mubr.msk.bf16.mxu1 %vm1791_vm0, %v1826_v28  ;;  %v1994_v37 = vmul.f32 %v3042_v34, %v3030_v7  ;;  %v3006_v28 = vld [vmem:[%s3246_s6 + $0x8] sm:$0xff]  }
 0x835   : > { %2866 = vmatmul.mubr.msk.bf16.vlgmr.msra.gmra.mrb[4].mxu1 %vm1791_vm0, %v1827_v29 }
 0x836   : > { %2892 = vmatpush3.bf16.msra.mxu1 %v3003_v41 }
 0x850   : > { %v1987_v30 = vpop.xlane.xlu1 %1986 }
 0x851   : > { %3043 = vrcp.f32 %v1987_v30 }
 0x854   : > { %v2002_v31 = vpop.permute.xlu1 %2001 }
 0x855   : > { %v2011_v32 = vsel %vm1839_vm8, %v2002_v31, 0  ;;  %2930 = vmatprep.subr.msk.bf16.mxu0 %vm1839_vm8, %v2002_v31 }
 0x856   : > { %2880 = vmatpush3.bf16.msra.mxu0 %v2011_v32 }
 0x857   : > { %2885 = vmatprep.subr.bf16.mxu0 %v3004_v42 }
 0x85b   : > { %v3044_v35 = vpop.eup %3043 }
 0x85c   : > { %v1995_v38 = vmul.f32 %v3044_v35, %v3032_v12 }
 0x85e   : > { %v1997_v39 = vpack.c.bf16 %v1995_v38, %v1994_v37 }
 0x860   : > { %2881 = vmatprep.mubr.msk.bf16.mxu0 %vm1791_vm0, %v1997_v39 }
 0x861   : > { %2882 = vmatmul.mubr.msk.bf16.vlgmr.msra.gmra.mrb[12].mxu0 %vm1791_vm0, %v1998_v40  ;;  %v2705_v40 = vld [vmem:[%s811_s29] ss:$0 sm:$0xff] }
 0x862   : > { %2886 = vmatpush3.bf16.msra.mxu0 %v3004_v42 }
 0x863   : > { %2897 = vmatprep.subr.bf16.mxu0 %v3005_v27 }
 0x908   : > { %v2867_v43 = vpop.f32.mrb[4].mxu1 }
 0x909   : > { %v1877_v44 = vpop.f32.mrb[5].mxu1  ;;  %v1892_v48 = vpack.c.bf16 %v2867_v43, %v2867_v43 }
 0x90a   : > { %v2868_v45 = vpop.f32.mrb[6].mxu1 }
 0x90b   : > { %v1880_v46 = vpop.f32.mrb[7].mxu1 }
 0x90c   : > { %v1891_v47 = vpack.c.bf16 %v1880_v46, %v1877_v44  ;;  %v2706_v46 = vld [vmem:[%s3730_s24] ss:$0 sm:$0xff] }
 0x90e   : > { %2893 = vmatprep.mubr.msk.bf16.mxu1 %vm1461_vm3, %v1891_v47 }
 0x90f   : > { %2894 = vmatmul.mubr.msk.bf16.vlgmr.msra.gmra.mrb[8].mxu1 %vm1461_vm3, %v1892_v48 }
 0x934   : > { %v2883_v49 = vpop.f32.mrb[12].mxu0 }
 0x935   : > { %v2047_v50 = vpop.f32.mrb[13].mxu0  ;;  %v2062_v54 = vpack.c.bf16 %v2883_v49, %v2883_v49 }
 0x936   : > { %v2884_v51 = vpop.f32.mrb[14].mxu0 }
 0x937   : > { %v2050_v52 = vpop.f32.mrb[15].mxu0 }
 0x938   : > { %v2061_v53 = vpack.c.bf16 %v2050_v52, %v2047_v50 }
 0x93a   : > { %2887 = vmatprep.mubr.msk.bf16.mxu0 %vm1461_vm3, %v2061_v53 }
 0x93b   : > { %2888 = vmatmul.mubr.msk.bf16.vlgmr.msra.gmra.mrb[16].mxu0 %vm1461_vm3, %v2062_v54  ;;  %v3007_v54 = vld [vmem:[%s3256_s5] sm:$0xff]  }
 0x93c   : > { %2898 = vmatpush3.bf16.msra.mxu0 %v3005_v27  ;;  %2905 = vmatprep.subr.bf16.mxu1 %v3007_v54 }
 0x93d   : > { %2899 = vmatprep.subr.bf16.mxu0 %v3006_v28  ;;  %2906 = vmatpush3.bf16.msra.mxu1 %v3007_v54 }
 0x940   : > { %2900 = vmatpush3.bf16.msra.mxu0 %v3006_v28 }
 0x9e2   : > { %v2895_v55 = vpop.f32.mrb[8].mxu1 }
 0x9e3   : > { %v2169_v56 = vpop.f32.mrb[9].mxu1 }
 0x9e4   : > { %v2896_v57 = vpop.f32.mrb[10].mxu1 }
 0x9e5   : > { %v2172_v58 = vpop.f32.mrb[11].mxu1  ;;  %v3010_v57 = vld [vmem:[%s3256_s5 + $0x18] sm:$0xff]  }
 0xa0e   : > { %v2889_v59 = vpop.f32.mrb[16].mxu0 }
 0xa0f   : > { %v2178_v60 = vadd.f32 %v2895_v55, %v2889_v59  ;;  %v2109_v61 = vpop.f32.mrb[17].mxu0  ;;  %v3008_v55 = vld [vmem:[%s3256_s5 + $0x8] sm:$0xff]  }
 0xa10   : > { %v2170_v63 = vadd.f32 %v2169_v56, %v2109_v61  ;;  %v2890_v0 = vpop.f32.mrb[18].mxu0  ;;  %2907 = vmatprep.subr.bf16.mxu1 %v3008_v55  ;;  %v3009_v56 = vld [vmem:[%s3256_s5 + $0x10] sm:$0xff]   ;;  %v3012_v59 = vld [vmem:[%s3256_s5 + $0x28] sm:$0xff]   ;;  %v3014_v61 = vld [vmem:[%s3256_s5 + $0x38] sm:$0xff]  }
 0xa11   : > { %v2112_v4 = vpop.f32.mrb[19].mxu0  ;;  %v2185_v5 = vadd.f32 %v2178_v60, %v3461_v3  ;;  %2908 = vmatpush3.bf16.msra.mxu1 %v3008_v55  ;;  %v3013_v60 = vld [vmem:[%s3256_s5 + $0x30] sm:$0xff]  }
 0xa12   : > { %v2183_v6 = vadd.f32 %v2170_v63, %v3468_v11  ;;  %v2173_v7 = vadd.f32 %v2172_v58, %v2112_v4  ;;  %2909 = vmatprep.subr.bf16.mxu1 %v3009_v56  ;;  %v3011_v58 = vld [vmem:[%s3256_s5 + $0x20] sm:$0xff]  }
 0xa13   : > { %v3602_v10 = vadd.f32 %v2704_v1, %v2185_v5  ;;  %v2707_v63 = vld [vmem:[%s3731_s3] ss:$0 sm:$0xff] }
 0xa14   : > { %v3599_v8 = vadd.f32 %v2704_v1, %v2183_v6  ;;  %v2184_v9 = vadd.f32 %v2173_v7, %v3472_v13 }
 0xa15   : > { %v2201_v3 = vsel %vm1554_vm5, %v3602_v10, 0.0  ;;  %2910 = vmatpush3.bf16.msra.mxu1 %v3009_v56 }
 0xa16   : > { %v3604_v12 = vadd.f32 %v2704_v1, %v2184_v9  ;;  %v2195_v14 = vsel %vm1547_vm7, %v3599_v8, 0.0  ;;  %2911 = vmatprep.subr.bf16.mxu1 %v3010_v57 }
 0xa17   : > { %2196 = vadd.xlane.f32.xlu0 %v2195_v14 }
 0xa18   : > { %v2198_v15 = vsel %vm1547_vm7, %v3604_v12, 0.0 }
 0xa19   : > { %2199 = vadd.xlane.f32.xlu1 %v2198_v15  ;;  %2912 = vmatpush3.bf16.msra.mxu1 %v3010_v57 }
 0xa1a   : > { %2913 = vmatprep.subr.bf16.mxu1 %v3011_v58 }
 0xa1b   : > { %2202 = vadd.xlane.f32.xlu0 %v2201_v3 }
 0xa1d   : > { %2914 = vmatpush3.bf16.msra.mxu1 %v3011_v58 }
 0xa1e   : > { %2915 = vmatprep.subr.bf16.mxu1 %v3012_v59 }
 0xa21   : > { %2916 = vmatpush3.bf16.msra.mxu1 %v3012_v59 }
 0xa22   : > { %2917 = vmatprep.subr.bf16.mxu1 %v3013_v60 }
 0xa25   : > { %2918 = vmatpush3.bf16.msra.mxu1 %v3013_v60 }
 0xa26   : > { %2919 = vmatprep.subr.bf16.mxu1 %v3014_v61 }
 0xa29   : > { %2920 = vmatpush3.bf16.msra.mxu1 %v3014_v61 }
 0xaa4   : > { %v2197_v11 = vpop.xlane.xlu0 %2196 }
 0xaa5   : > { %v2204_v16 = vmul.f32 0.03125, %v2197_v11 }
 0xaa6   : > { %v2200_v17 = vpop.xlane.xlu1 %2199 }
 0xaa7   : > { %v2207_v13 = vsub.f32 %v3599_v8, %v2204_v16  ;;  %v2205_v18 = vmul.f32 0.03125, %v2200_v17 }
 0xaa8   : > { %v2203_v19 = vpop.xlane.xlu0 %2202 }
 0xaa9   : > { %v2208_v20 = vsub.f32 %v3604_v12, %v2205_v18  ;;  %v2206_v21 = vmul.f32 0.03125, %v2203_v19  ;;  %v2210_v2 = vmul.f32 %v2207_v13, %v2207_v13 }
 0xaab   : > { %v2209_v22 = vsub.f32 %v3602_v10, %v2206_v21  ;;  %v2213_v23 = vsel %vm1547_vm7, %v2210_v2, 0.0  ;;  %v2211_v24 = vmul.f32 %v2208_v20, %v2208_v20 }
 0xaac   : > { %2214 = vadd.xlane.f32.xlu0 %v2213_v23 }
 0xaad   : > { %v2212_v62 = vmul.f32 %v2209_v22, %v2209_v22  ;;  %v2216_v26 = vsel %vm1547_vm7, %v2211_v24, 0.0 }
 0xaaf   : > { %v2219_v25 = vsel %vm1554_vm5, %v2212_v62, 0.0 }
 0xab0   : > { %2220 = vadd.xlane.f32.xlu1 %v2219_v25  ;;  %2217 = vadd.xlane.f32.xlu0 %v2216_v26 }
 0xb39   : > { %v2215_v29 = vpop.xlane.xlu0 %2214 }
 0xb3a   : > { %v2222_v30 = vmul.f32 0.03125, %v2215_v29  ;;  %v2715_v29 = vld [vmem:[%s3732_s30] ss:$0 sm:$0xff] }
 0xb3c   : > { %v2225_v31 = vadd.f32 1e-05, %v2222_v30 }
 0xb3d   : > { %v2218_v32 = vpop.xlane.xlu0 %2217  ;;  %v2221_v33 = vpop.xlane.xlu1 %2220 }
 0xb3e   : > { %3045 = vrsqrt.f32 %v2225_v31  ;;  %v2223_v34 = vmul.f32 0.03125, %v2218_v32  ;;  %v2224_v35 = vmul.f32 0.03125, %v2221_v33 }
 0xb40   : > { %v2226_v36 = vadd.f32 1e-05, %v2223_v34  ;;  %v2227_v37 = vadd.f32 1e-05, %v2224_v35 }
 0xb42   : > { %3047 = vrsqrt.f32 %v2226_v36 }
 0xb43   : > { %3049 = vrsqrt.f32 %v2227_v37 }
 0xb48   : > { %v3046_v38 = vpop.eup %3045 }
 0xb49   : > { %v2231_v39 = vmul.f32 %v3046_v38, %v2207_v13 }
 0xb4b   : > { %v2240_v44 = vmul.f32 %v2705_v40, %v2231_v39 }
 0xb4c   : > { %v3048_v41 = vpop.eup %3047 }
 0xb4d   : > { %v3050_v42 = vpop.eup %3049  ;;  %v2232_v43 = vmul.f32 %v3048_v41, %v2208_v20  ;;  %v2249_v49 = vadd.f32 %v2706_v46, %v2240_v44 }
 0xb4e   : > { %v2233_v45 = vmul.f32 %v3050_v42, %v2209_v22 }
 0xb4f   : > { %v2241_v47 = vmul.f32 %v2705_v40, %v2232_v43 }
 0xb50   : > { %v2242_v48 = vmul.f32 %v2705_v40, %v2233_v45 }
 0xb51   : > { %v2250_v50 = vadd.f32 %v2706_v46, %v2241_v47 }
 0xb52   : > { %v2251_v51 = vadd.f32 %v2706_v46, %v2242_v48 }
 0xb53   : > { %v2252_v52 = vpack.c.bf16 %v2250_v50, %v2249_v49 }
 0xb54   : > { %v2253_v53 = vpack.c.bf16 %v2251_v51, %v2251_v51 }
 0xb55   : > { %2901 = vmatprep.mubr.msk.bf16.mxu0 %vm1547_vm7, %v2252_v52 }
 0xb56   : > { %2902 = vmatmul.mubr.msk.bf16.vlgmr.msra.gmra.mrb[20].mxu0 %vm1547_vm7, %v2253_v53 }
 0xc29   : > { %v2903_v0 = vpop.f32.mrb[20].mxu0 }
 0xc2a   : > { %v2321_v1 = vadd.f32 %v2903_v0, %v2707_v63  ;;  %v2312_v4 = vpop.f32.mrb[21].mxu0 }
 0xc2b   : > { %v2313_v5 = vadd.f32 %v2707_v63, %v2312_v4  ;;  %v2904_v6 = vpop.f32.mrb[22].mxu0 }
 0xc2c   : > { %v2714_v7 = vmul.f32 -1.702, %v2321_v1  ;;  %v2315_v9 = vpop.f32.mrb[23].mxu0 }
 0xc2d   : > { %v2712_v14 = vmul.f32 -1.702, %v2313_v5  ;;  %v2316_v15 = vadd.f32 %v2707_v63, %v2315_v9 }
 0xc2e   : > { %v2336_v3 = vmul.f32 1.442695, %v2714_v7 }
 0xc2f   : > { %v2332_v11 = vmul.f32 1.442695, %v2712_v14  ;;  %v2713_v16 = vmul.f32 -1.702, %v2316_v15 }
 0xc30   : > { %3051 = vpow2.f32 %v2336_v3 }
 0xc31   : > { %3053 = vpow2.f32 %v2332_v11  ;;  %v2334_v17 = vmul.f32 1.442695, %v2713_v16 }
 0xc33   : > { %3055 = vpow2.f32 %v2334_v17 }
 0xc3a   : > { %v3052_v13 = vpop.eup %3051 }
 0xc3b   : > { %v3054_v18 = vpop.eup %3053  ;;  %v2340_v19 = vadd.f32 1.0, %v3052_v13 }
 0xc3c   : > { %v2338_v20 = vadd.f32 1.0, %v3054_v18 }
 0xc3d   : > { %v3056_v21 = vpop.eup %3055  ;;  %3057 = vrcp.f32 %v2340_v19 }
 0xc3e   : > { %3059 = vrcp.f32 %v2338_v20  ;;  %v2339_v2 = vadd.f32 1.0, %v3056_v21 }
 0xc40   : > { %3061 = vrcp.f32 %v2339_v2 }
 0xc47   : > { %v3058_v22 = vpop.eup %3057 }
 0xc48   : > { %v3060_v23 = vpop.eup %3059  ;;  %v2349_v62 = vmul.f32 %v3058_v22, %v2321_v1 }
 0xc49   : > { %v2347_v25 = vmul.f32 %v3060_v23, %v2313_v5 }
 0xc4a   : > { %v3062_v24 = vpop.eup %3061  ;;  %v2351_v28 = vpack.c.bf16 %v2349_v62, %v2349_v62 }
 0xc4b   : > { %v2348_v26 = vmul.f32 %v3062_v24, %v2316_v15 }
 0xc4d   : > { %v2350_v27 = vpack.c.bf16 %v2348_v26, %v2347_v25 }
 0xc4f   : > { %2921 = vmatprep.mubr.bf16.mxu1 %v2350_v27 }
 0xc50   : > { %2922 = vmatmul.mubr.bf16.vlgmr.msra.gmra.mrb[12].mxu1 %v2351_v28 }
 0xd23   : > { %v2923_v30 = vpop.f32.mrb[12].mxu1 }
 0xd24   : > { %v2449_v31 = vadd.f32 %v2923_v30, %v2715_v29  ;;  %v2440_v32 = vpop.f32.mrb[13].mxu1 }
 0xd25   : > { %v2441_v33 = vadd.f32 %v2715_v29, %v2440_v32  ;;  %v2924_v34 = vpop.f32.mrb[14].mxu1  ;;  %2463 = sbr.rel (%p2724_p5) target bundleno = 3373 (0xd2d), region = 112 }
 0xd26   : > { %v2456_v35 = vadd.f32 %v2449_v31, %v3602_v10  ;;  %v2443_v36 = vpop.f32.mrb[15].mxu1 }
 0xd27   : > { %v2454_v37 = vadd.f32 %v2441_v33, %v3599_v8  ;;  %v2444_v38 = vadd.f32 %v2715_v29, %v2443_v36 }
 0xd28   : > { %2459 = vst.msk [vmem:[#allocation2 + $0x10] sm:$0x3] %vm1554_vm5, %v2456_v35 }
 0xd29   : > { %2457 = vst.msk [vmem:[#allocation2] sm:$0xff] %vm1547_vm7, %v2454_v37  ;;  %v2455_v39 = vadd.f32 %v2444_v38, %v3604_v12 }
 0xd2b   : > { %2458 = vst.msk [vmem:[#allocation2 + $0x8] sm:$0xff] %vm1547_vm7, %v2455_v39  ;;  %v2464_v40 = vsel (!%p2724_p5), %vm1839_vm8, %v2454_v37, %v2455_v39 }
 0xd2c   : > { %2465 = vst.msk [vmem:[%s3734_s27] sm:$0x3] %vm1554_vm5, %v2464_v40 }
 0xd2d PF: > { %s3735_s13 = sld [smem:[#allocation3_spill]] }
 0xd33   : > { %s31_s2 = sadd.s32 1, %s3735_s13  }
 0xd34   : > { %p28_p6 = scmp.ge.s32.totalorder %s31_s2, 4  }
 0xd36   :  { %30 = sbr.rel (!%p28_p6) target bundleno = 13 (0xd), region = 174 }

</bundles_post_ra>
